<compile_context>
chip_gen: v5e
topology: v5e:2x2
jax: 0.10.0
libtpu: 0.0.40
codegen_flags: <defaults>
</compile_context>

<pallas_src>
import functools

import jax
import jax.numpy as jnp
from jax import lax
from jax.experimental import pallas as pl
from jax.experimental.pallas import tpu as pltpu


def _round_up(x, m):
    return ((x + m - 1) // m) * m


def _pick_chunk(T, target):
    """Largest divisor of T that is <= target (timesteps per grid step)."""
    for d in range(min(T, target), 0, -1):
        if T % d == 0:
            return d
    return T


# ----------------------------------------------------------------------------
# Fused kernel: all LSTM layers + Linear head, grid over time chunks
# ----------------------------------------------------------------------------
def _fused_lstm_kernel(x_ref, wih0_ref, wihr_ref, whh_ref, b_ref,
                       wh_ref, bh_ref, o_ref,
                       xg_scr, ybuf, h_scr, c_scr,
                       *, num_layers, tc, b_pad, h_pad, unroll):
    Hp = h_pad
    Bp = b_pad
    G = 4 * Hp

    # Zero the per-layer recurrent state once, at the first time chunk.
    # NOTE: correctness of this init + the cross-chunk h/c carry requires the
    # time-chunk grid axis to stay "arbitrary" (sequential). NEVER mark it
    # "parallel".
    @pl.when(pl.program_id(0) == 0)
    def _():
        h_scr[...] = jnp.zeros_like(h_scr)
        c_scr[...] = jnp.zeros_like(c_scr)

    # Gate-activation lane mask, hoisted out of all loops: lanes in the g-gate
    # range [2Hp, 3Hp) take tanh, everything else sigmoid -> 2 full-vreg EUP
    # ops per step instead of 4 serialized sub-vreg activations.
    lane = lax.broadcasted_iota(jnp.int32, (Bp, G), 1)
    g_mask = (lane >= 2 * Hp) & (lane < 3 * Hp)

    def run_layer(layer_idx, write_seq):
        whh = whh_ref[layer_idx]  # (Hp, 4Hp), compute dtype (bf16 or f32)

        def step(t, carry):
            h, c = carry                                   # f32 (Bp, Hp)
            row = pl.multiple_of(t * Bp, Bp)
            gates = xg_scr[pl.ds(row, Bp), :] + jnp.dot(
                h.astype(whh.dtype), whh,
                preferred_element_type=jnp.float32)        # (Bp, 4Hp) f32
            acts = jnp.where(g_mask, jnp.tanh(gates), jax.nn.sigmoid(gates))
            i_g = acts[:, 0 * Hp:1 * Hp]
            f_g = acts[:, 1 * Hp:2 * Hp]
            g_g = acts[:, 2 * Hp:3 * Hp]
            o_g = acts[:, 3 * Hp:4 * Hp]
            c_new = f_g * c + i_g * g_g
            h_new = o_g * jnp.tanh(c_new)
            if write_seq:
                ybuf[pl.ds(row, Bp), :] = h_new
            return h_new, c_new

        h_fin, c_fin = lax.fori_loop(
            0, tc, step, (h_scr[layer_idx], c_scr[layer_idx]), unroll=unroll)
        h_scr[layer_idx] = h_fin
        c_scr[layer_idx] = c_fin
        return h_fin

    # ---- Layer 0: input projection for the whole chunk is ONE MXU matmul ----
    xg_scr[...] = jnp.dot(x_ref[...], wih0_ref[...],
                          preferred_element_type=jnp.float32) + b_ref[0]
    h_last = run_layer(0, write_seq=(num_layers > 1))

    # ---- Layers 1..L-1: project previous layer's chunk, then recur ----------
    for l in range(1, num_layers):
        wihr = wihr_ref[l - 1]
        xg_scr[...] = jnp.dot(ybuf[...].astype(wihr.dtype), wihr,
                              preferred_element_type=jnp.float32) + b_ref[l]
        h_last = run_layer(l, write_seq=(l < num_layers - 1))

    # ---- Fused Linear head: write the (Bp, 1) result once, on the last chunk
    @pl.when(pl.program_id(0) == pl.num_programs(0) - 1)
    def _():
        o_ref[...] = (jnp.dot(h_last, wh_ref[...],
                              preferred_element_type=jnp.float32)
                      + bh_ref[...]).astype(o_ref.dtype)


# ----------------------------------------------------------------------------
# Parameter relayout / padding / casting for the kernel
# ----------------------------------------------------------------------------
def _pad_gate_axis(w, H, Hp):
    """Pad the trailing 4H gate axis to 4Hp, padding each of [i,f,g,o] to Hp."""
    lead = w.shape[:-1]
    w = w.reshape(lead + (4, H))
    pad = [(0, 0)] * len(lead) + [(0, 0), (0, Hp - H)]
    return jnp.pad(w, pad).reshape(lead + (4 * Hp,))


def prepare_kernel_params(params, *, compute_dtype=jnp.bfloat16):
    """PyTorch-shaped params -> padded / transposed / cast kernel layout."""
    lstm = params["lstm"]
    L = len(lstm)
    H = lstm[0]["w_hh"].shape[1]
    Hp = _round_up(H, 128)

    wih_l, whh_l, b_l = [], [], []
    for l, lay in enumerate(lstm):
        wih_t = _pad_gate_axis(lay["w_ih"].T.astype(jnp.float32), H, Hp)
        whh_t = _pad_gate_axis(lay["w_hh"].T.astype(jnp.float32), H, Hp)
        whh_t = jnp.pad(whh_t, ((0, Hp - H), (0, 0)))
        if l > 0:
            wih_t = jnp.pad(wih_t, ((0, Hp - H), (0, 0)))
        bias = _pad_gate_axis((lay["b_ih"] + lay["b_hh"])[None, :], H, Hp)
        wih_l.append(wih_t)
        whh_l.append(whh_t)
        b_l.append(bias)

    wih0 = wih_l[0].astype(compute_dtype)                       # (Din, 4Hp)
    if L > 1:
        wih_rest = jnp.stack(wih_l[1:]).astype(compute_dtype)   # (L-1, Hp, 4Hp)
    else:
        wih_rest = jnp.zeros((1, Hp, 4 * Hp), compute_dtype)    # unused dummy
    whh = jnp.stack(whh_l).astype(compute_dtype)                # (L, Hp, 4Hp)
    bias = jnp.stack(b_l).astype(jnp.float32)                   # (L, 1, 4Hp)
    w_head = jnp.pad(params["head_w"].T.astype(jnp.float32),
                     ((0, Hp - H), (0, 0)))                     # (Hp, 1)
    b_head = params["head_b"].reshape(1, 1).astype(jnp.float32)
    return dict(wih0=wih0, wih_rest=wih_rest, whh=whh, bias=bias,
                w_head=w_head, b_head=b_head, num_layers=L, H=H, Hp=Hp)


# ----------------------------------------------------------------------------
# Forward wrapper
# ----------------------------------------------------------------------------
def lstm_model_forward(x_btd, kp, *, tc=None, vmem_budget_bytes=24 << 20):
    """Forward pass of LSTMModel. x_btd: (B, T, D) f32 -> (B,) f32."""
    B, T, D = x_btd.shape
    L, Hp = kp["num_layers"], kp["Hp"]
    G = 4 * Hp
    Bp = _round_up(B, 8)
    cdt = kp["wih0"].dtype
    cbytes = jnp.dtype(cdt).itemsize

    if tc is None:
        # Derive the time chunk from a VMEM budget (safe for v7x's 64 MiB
        # physical / 32 MiB default scoped VMEM, instead of assuming v6e's
        # 128 MiB): double-buffered x block + xg/y scratch per chunk row.
        per_row = 2 * D * cbytes + 4 * G + 4 * Hp
        target = max(1, vmem_budget_bytes // max(1, Bp * per_row))
        tc = _pick_chunk(T, min(int(target), 128))
    assert T % tc == 0, (T, tc)
    unroll = int(min(tc, 8))  # explicit partial unroll of the inner time loop

    # One-time relayout: time-major, batch padded to a sublane multiple,
    # flattened to 2D so every per-timestep access is an aligned row block.
    x = jnp.transpose(x_btd, (1, 0, 2))                  # (T, B, D)
    x = jnp.pad(x, ((0, 0), (0, Bp - B), (0, 0)))        # (T, Bp, D)
    x2d = x.reshape(T * Bp, D).astype(cdt)               # (T*Bp, D)

    flops = 2 * T * Bp * G * (D + (2 * L - 1) * Hp) + 12 * L * T * Bp * Hp
    bytes_accessed = (x2d.size * cbytes
                      + kp["wih0"].size * cbytes + kp["wih_rest"].size * cbytes
                      + kp["whh"].size * cbytes + kp["bias"].size * 4
                      + kp["w_head"].size * 4 + 4 + Bp * 4)

    kernel = functools.partial(
        _fused_lstm_kernel, num_layers=L, tc=tc, b_pad=Bp, h_pad=Hp,
        unroll=unroll)

    out = pl.pallas_call(
        kernel,
        out_shape=jax.ShapeDtypeStruct((Bp, 1), jnp.float32),
        grid_spec=pltpu.PrefetchScalarGridSpec(
            num_scalar_prefetch=0,
            grid=(T // tc,),
            in_specs=[
                pl.BlockSpec((tc * Bp, D), lambda c: (c, 0)),       # x chunk
                pl.BlockSpec((D, G), lambda c: (0, 0)),             # W_ih^T l0
                pl.BlockSpec(kp["wih_rest"].shape, lambda c: (0, 0, 0)),
                pl.BlockSpec(kp["whh"].shape, lambda c: (0, 0, 0)),
                pl.BlockSpec(kp["bias"].shape, lambda c: (0, 0, 0)),
                pl.BlockSpec((Hp, 1), lambda c: (0, 0)),            # head W^T
                pl.BlockSpec((1, 1), lambda c: (0, 0)),             # head b
            ],
            # Constant index_map: output stays resident across all chunks and
            # is written once in the last-chunk epilogue.
            out_specs=pl.BlockSpec((Bp, 1), lambda c: (0, 0)),
            scratch_shapes=[
                pltpu.VMEM((tc * Bp, G), jnp.float32),   # xg chunk (projection)
                pltpu.VMEM((tc * Bp, Hp), jnp.float32),  # layer-output chunk
                pltpu.VMEM((L, Bp, Hp), jnp.float32),    # h state per layer
                pltpu.VMEM((L, Bp, Hp), jnp.float32),    # c state per layer
            ],
        ),
        compiler_params=pltpu.CompilerParams(
            # Time-recurrent: MUST stay sequential ("arbitrary").
            dimension_semantics=("arbitrary",),
        ),
        cost_estimate=pl.CostEstimate(
            flops=int(flops),
            transcendentals=int(3 * L * T * Bp * G),
            bytes_accessed=int(bytes_accessed)),
    )(x2d, kp["wih0"], kp["wih_rest"], kp["whh"], kp["bias"],
      kp["w_head"], kp["b_head"])
    return out[:B, 0]                                    # squeeze(-1)


# ----------------------------------------------------------------------------
# Deterministic parameter init (shapes mirror nn.LSTM / nn.Linear)
# ----------------------------------------------------------------------------
def init_params(key, input_size, hidden_size, num_layers):
    xavier = jax.nn.initializers.glorot_uniform()
    orth = jax.nn.initializers.orthogonal()
    layers = []
    for l in range(num_layers):
        in_sz = input_size if l == 0 else hidden_size
        key, k1, k2 = jax.random.split(key, 3)
        layers.append(dict(
            w_ih=xavier(k1, (4 * hidden_size, in_sz), jnp.float32),
            w_hh=orth(k2, (4 * hidden_size, hidden_size), jnp.float32),
            b_ih=jnp.zeros((4 * hidden_size,), jnp.float32),
            b_hh=jnp.zeros((4 * hidden_size,), jnp.float32),
        ))
    key, kh = jax.random.split(key)
    return dict(
        lstm=layers,
        head_w=xavier(kh, (1, hidden_size), jnp.float32),   # nn.Linear(H, 1)
        head_b=jnp.zeros((1,), jnp.float32),
    )


# ----------------------------------------------------------------------------
# Pure-JAX reference (lax.scan, f32) for correctness check
# ----------------------------------------------------------------------------
def reference_forward(x_btd, params):
    x = jnp.transpose(x_btd, (1, 0, 2)).astype(jnp.float32)   # (T, B, D)
    B = x.shape[1]
    for lay in params["lstm"]:
        H = lay["w_hh"].shape[1]
        wih_t, whh_t = lay["w_ih"].T, lay["w_hh"].T
        b = lay["b_ih"] + lay["b_hh"]

        def step(carry, x_t, wih_t=wih_t, whh_t=whh_t, b=b, H=H):
            h, c = carry
            gates = x_t @ wih_t + h @ whh_t + b
            i = jax.nn.sigmoid(gates[:, 0 * H:1 * H])
            f = jax.nn.sigmoid(gates[:, 1 * H:2 * H])
            g = jnp.tanh(gates[:, 2 * H:3 * H])
            o = jax.nn.sigmoid(gates[:, 3 * H:4 * H])
            c = f * c + i * g
            h = o * jnp.tanh(c)
            return (h, c), h

        init = (jnp.zeros((B, H), jnp.float32), jnp.zeros((B, H), jnp.float32))
        _, x = lax.scan(step, init, x)
    last = x[-1]
    return (last @ params["head_w"].T + params["head_b"])[:, 0]


# ----------------------------------------------------------------------------
if __name__ == "__main__":
    # Small shapes consistent with the module: x is (B, T, input_size).
    B, T, D, H, NUM_LAYERS, DROPOUT = 2, 8, 16, 32, 2, 0.0

    key = jax.random.PRNGKey(0)
    key, kx = jax.random.split(key)
    x = jax.random.normal(kx, (B, T, D), dtype=jnp.float32)
    params = init_params(key, input_size=D, hidden_size=H, num_layers=NUM_LAYERS)

    ref = reference_forward(x, params)

    # f32 compute path: tight check against the lax.scan reference.
    # tc=4 -> two time chunks, exercising the cross-chunk h/c carry.
    kp32 = prepare_kernel_params(params, compute_dtype=jnp.float32)
    fwd32 = jax.jit(functools.partial(lstm_model_forward, kp=kp32, tc=4))
    out32 = jax.block_until_ready(fwd32(x))
    assert out32.shape == (B,), out32.shape
    assert jnp.allclose(out32, ref, atol=1e-5, rtol=1e-5), (out32, ref)

    # bf16 MXU-operand path (production default): looser tolerance.
    kp16 = prepare_kernel_params(params, compute_dtype=jnp.bfloat16)
    fwd16 = jax.jit(functools.partial(lstm_model_forward, kp=kp16, tc=4))
    out16 = jax.block_until_ready(fwd16(x))
    assert out16.shape == (B,), out16.shape
    assert jnp.allclose(out16, ref, atol=5e-2, rtol=5e-2), (out16, ref)

    print("KERNEL_OK")
</pallas_src>

<mosaic_0001>
module attributes {stable_mosaic.version = 11 : i64} {
  func.func @_fused_lstm_kernel(%arg0: i32, %arg1: memref<32x16xf32, #tpu.memory_space<vmem>>, %arg2: memref<16x512xf32, #tpu.memory_space<vmem>>, %arg3: memref<1x128x512xf32, #tpu.memory_space<vmem>>, %arg4: memref<2x128x512xf32, #tpu.memory_space<vmem>>, %arg5: memref<2x1x512xf32, #tpu.memory_space<vmem>>, %arg6: memref<128x1xf32, #tpu.memory_space<vmem>>, %arg7: memref<1x1xf32, #tpu.memory_space<vmem>>, %arg8: memref<8x1xf32, #tpu.memory_space<vmem>>, %arg9: memref<32x512xf32, #tpu.memory_space<vmem>>, %arg10: memref<32x128xf32, #tpu.memory_space<vmem>>, %arg11: memref<2x8x128xf32, #tpu.memory_space<vmem>>, %arg12: memref<2x8x128xf32, #tpu.memory_space<vmem>>) attributes {dimension_semantics = [#tpu.dimension_semantics<arbitrary>], iteration_bounds = array<i64: 2>, scalar_prefetch = 0 : i64, scratch_operands = 4 : i64, tpu.core_type = #tpu.core_type<tc>, window_params = [{transform_indices = @transform_0, window_bounds = array<i64: 32, 16>}, {pipeline_mode = #tpu.pipeline_mode<synchronous>, transform_indices = @transform_1, window_bounds = array<i64: 16, 512>}, {pipeline_mode = #tpu.pipeline_mode<synchronous>, transform_indices = @transform_2, window_bounds = array<i64: 1, 128, 512>}, {pipeline_mode = #tpu.pipeline_mode<synchronous>, transform_indices = @transform_3, window_bounds = array<i64: 2, 128, 512>}, {pipeline_mode = #tpu.pipeline_mode<synchronous>, transform_indices = @transform_4, window_bounds = array<i64: 2, 1, 512>}, {pipeline_mode = #tpu.pipeline_mode<synchronous>, transform_indices = @transform_5, window_bounds = array<i64: 128, 1>}, {pipeline_mode = #tpu.pipeline_mode<synchronous>, transform_indices = @transform_6, window_bounds = array<i64: 1, 1>}, {pipeline_mode = #tpu.pipeline_mode<synchronous>, transform_indices = @transform_7, window_bounds = array<i64: 8, 1>}]} {
    %c0_i32 = arith.constant 0 : i32
    %0 = arith.cmpi eq, %arg0, %c0_i32 : i32
    %1 = arith.extui %0 : i1 to i32
    %c0_i32_0 = arith.constant 0 : i32
    %2 = arith.cmpi ne, %1, %c0_i32_0 : i32
    scf.if %2 {
      %cst_92 = arith.constant 0.000000e+00 : f32
      %237 = vector.broadcast %cst_92 : f32 to vector<2x8x128xf32>
      %c0_93 = arith.constant 0 : index
      %c0_94 = arith.constant 0 : index
      %c0_95 = arith.constant 0 : index
      %238 = vector.load %arg11[%c0_93, %c0_94, %c0_95] : memref<2x8x128xf32, #tpu.memory_space<vmem>>, vector<2x8x128xf32>
      tpu.vector_store %arg11[%c0_93, %c0_94, %c0_95], %237 {strides = array<i32>} : memref<2x8x128xf32, #tpu.memory_space<vmem>>, vector<2x8x128xf32>,
      %cst_96 = arith.constant 0.000000e+00 : f32
      %239 = vector.broadcast %cst_96 : f32 to vector<2x8x128xf32>
      %c0_97 = arith.constant 0 : index
      %c0_98 = arith.constant 0 : index
      %c0_99 = arith.constant 0 : index
      %240 = vector.load %arg12[%c0_97, %c0_98, %c0_99] : memref<2x8x128xf32, #tpu.memory_space<vmem>>, vector<2x8x128xf32>
      tpu.vector_store %arg12[%c0_97, %c0_98, %c0_99], %239 {strides = array<i32>} : memref<2x8x128xf32, #tpu.memory_space<vmem>>, vector<2x8x128xf32>,
    } else {
    }
    %3 = tpu.iota {dimensions = array<i32: 1>} : vector<8x512xi32>
    %c256_i32 = arith.constant 256 : i32
    %4 = vector.broadcast %c256_i32 : i32 to vector<8x512xi32>
    %5 = arith.cmpi sge, %3, %4 : vector<8x512xi32>
    %c384_i32 = arith.constant 384 : i32
    %6 = vector.broadcast %c384_i32 : i32 to vector<8x512xi32>
    %7 = arith.cmpi slt, %3, %6 : vector<8x512xi32>
    %8 = arith.andi %5, %7 : vector<8x512xi1>
    %c0 = arith.constant 0 : index
    %c0_1 = arith.constant 0 : index
    %9 = vector.load %arg1[%c0, %c0_1] : memref<32x16xf32, #tpu.memory_space<vmem>>, vector<32x16xf32>
    %c0_2 = arith.constant 0 : index
    %c0_3 = arith.constant 0 : index
    %10 = vector.load %arg2[%c0_2, %c0_3] : memref<16x512xf32, #tpu.memory_space<vmem>>, vector<16x512xf32>
    %cst = arith.constant dense<0.000000e+00> : vector<32x512xf32>
    %11 = tpu.matmul %9, %10, %cst {dimension_numbers = #tpu.dot_dimension_numbers<[1], [0], [0], [1], [0, 0, 1, 1], [], []>} : vector<32x16xf32>, vector<16x512xf32>, vector<32x512xf32> -> vector<32x512xf32>
    %c0_4 = arith.constant 0 : index
    %c0_5 = arith.constant 0 : index
    %c0_6 = arith.constant 0 : index
    %12 = vector.load %arg5[%c0_4, %c0_5, %c0_6] : memref<2x1x512xf32, #tpu.memory_space<vmem>>, vector<1x1x512xf32>
    %13 = vector.shape_cast %12 : vector<1x1x512xf32> to vector<1x512xf32>
    %14 = vector.broadcast %13 : vector<1x512xf32> to vector<32x512xf32>
    %15 = arith.addf %11, %14 : vector<32x512xf32>
    %c0_7 = arith.constant 0 : index
    %c0_8 = arith.constant 0 : index
    %16 = vector.load %arg9[%c0_7, %c0_8] : memref<32x512xf32, #tpu.memory_space<vmem>>, vector<32x512xf32>
    tpu.vector_store %arg9[%c0_7, %c0_8], %15 {strides = array<i32>} : memref<32x512xf32, #tpu.memory_space<vmem>>, vector<32x512xf32>,
    %c0_9 = arith.constant 0 : index
    %c0_10 = arith.constant 0 : index
    %c0_11 = arith.constant 0 : index
    %17 = vector.load %arg4[%c0_9, %c0_10, %c0_11] : memref<2x128x512xf32, #tpu.memory_space<vmem>>, vector<1x128x512xf32>
    %18 = vector.shape_cast %17 : vector<1x128x512xf32> to vector<128x512xf32>
    %c0_12 = arith.constant 0 : index
    %c0_13 = arith.constant 0 : index
    %c0_14 = arith.constant 0 : index
    %19 = vector.load %arg11[%c0_12, %c0_13, %c0_14] : memref<2x8x128xf32, #tpu.memory_space<vmem>>, vector<1x8x128xf32>
    %20 = vector.shape_cast %19 : vector<1x8x128xf32> to vector<8x128xf32>
    %c0_15 = arith.constant 0 : index
    %c0_16 = arith.constant 0 : index
    %c0_17 = arith.constant 0 : index
    %21 = vector.load %arg12[%c0_15, %c0_16, %c0_17] : memref<2x8x128xf32, #tpu.memory_space<vmem>>, vector<1x8x128xf32>
    %22 = vector.shape_cast %21 : vector<1x8x128xf32> to vector<8x128xf32>
    %c0_i32_18 = arith.constant 0 : i32
    %c8_i32 = arith.constant 8 : i32
    %23 = arith.muli %c0_i32_18, %c8_i32 : i32
    %24 = tpu.assume_multiple %23, 8 : i32
    %25 = arith.index_cast %24 : i32 to index
    %c0_19 = arith.constant 0 : index
    %26 = vector.load %arg9[%25, %c0_19] : memref<32x512xf32, #tpu.memory_space<vmem>>, vector<8x512xf32>
    %cst_20 = arith.constant dense<0.000000e+00> : vector<8x512xf32>
    %27 = tpu.matmul %20, %18, %cst_20 {dimension_numbers = #tpu.dot_dimension_numbers<[1], [0], [0], [1], [0, 0, 1, 1], [], []>} : vector<8x128xf32>, vector<128x512xf32>, vector<8x512xf32> -> vector<8x512xf32>
    %28 = arith.addf %26, %27 : vector<8x512xf32>
    %29 = math.tanh %28 : vector<8x512xf32>
    %30 = arith.negf %28 : vector<8x512xf32>
    %31 = math.exp %30 : vector<8x512xf32>
    %cst_21 = arith.constant 1.000000e+00 : f32
    %32 = vector.broadcast %cst_21 : f32 to vector<8x512xf32>
    %33 = arith.addf %32, %31 : vector<8x512xf32>
    %34 = arith.divf %32, %33 : vector<8x512xf32>
    %35 = arith.select %8, %29, %34 : vector<8x512xi1>, vector<8x512xf32>
    %36 = vector.extract_strided_slice %35 {offsets = [0, 0], sizes = [8, 128], strides = [1, 1]} : vector<8x512xf32> to vector<8x128xf32>
    %37 = vector.extract_strided_slice %35 {offsets = [0, 128], sizes = [8, 128], strides = [1, 1]} : vector<8x512xf32> to vector<8x128xf32>
    %38 = vector.extract_strided_slice %35 {offsets = [0, 256], sizes = [8, 128], strides = [1, 1]} : vector<8x512xf32> to vector<8x128xf32>
    %39 = vector.extract_strided_slice %35 {offsets = [0, 384], sizes = [8, 128], strides = [1, 1]} : vector<8x512xf32> to vector<8x128xf32>
    %40 = arith.mulf %37, %22 : vector<8x128xf32>
    %41 = arith.mulf %36, %38 : vector<8x128xf32>
    %42 = arith.addf %40, %41 : vector<8x128xf32>
    %43 = math.tanh %42 : vector<8x128xf32>
    %44 = arith.mulf %39, %43 : vector<8x128xf32>
    %45 = arith.index_cast %24 : i32 to index
    %c0_22 = arith.constant 0 : index
    %46 = vector.load %arg10[%45, %c0_22] : memref<32x128xf32, #tpu.memory_space<vmem>>, vector<8x128xf32>
    tpu.vector_store %arg10[%45, %c0_22], %44 {strides = array<i32>} : memref<32x128xf32, #tpu.memory_space<vmem>>, vector<8x128xf32>,
    %c1_i32 = arith.constant 1 : i32
    %c8_i32_23 = arith.constant 8 : i32
    %47 = arith.muli %c1_i32, %c8_i32_23 : i32
    %48 = tpu.assume_multiple %47, 8 : i32
    %49 = arith.index_cast %48 : i32 to index
    %c0_24 = arith.constant 0 : index
    %50 = vector.load %arg9[%49, %c0_24] : memref<32x512xf32, #tpu.memory_space<vmem>>, vector<8x512xf32>
    %cst_25 = arith.constant dense<0.000000e+00> : vector<8x512xf32>
    %51 = tpu.matmul %44, %18, %cst_25 {dimension_numbers = #tpu.dot_dimension_numbers<[1], [0], [0], [1], [0, 0, 1, 1], [], []>} : vector<8x128xf32>, vector<128x512xf32>, vector<8x512xf32> -> vector<8x512xf32>
    %52 = arith.addf %50, %51 : vector<8x512xf32>
    %53 = math.tanh %52 : vector<8x512xf32>
    %54 = arith.negf %52 : vector<8x512xf32>
    %55 = math.exp %54 : vector<8x512xf32>
    %cst_26 = arith.constant 1.000000e+00 : f32
    %56 = vector.broadcast %cst_26 : f32 to vector<8x512xf32>
    %57 = arith.addf %56, %55 : vector<8x512xf32>
    %58 = arith.divf %56, %57 : vector<8x512xf32>
    %59 = arith.select %8, %53, %58 : vector<8x512xi1>, vector<8x512xf32>
    %60 = vector.extract_strided_slice %59 {offsets = [0, 0], sizes = [8, 128], strides = [1, 1]} : vector<8x512xf32> to vector<8x128xf32>
    %61 = vector.extract_strided_slice %59 {offsets = [0, 128], sizes = [8, 128], strides = [1, 1]} : vector<8x512xf32> to vector<8x128xf32>
    %62 = vector.extract_strided_slice %59 {offsets = [0, 256], sizes = [8, 128], strides = [1, 1]} : vector<8x512xf32> to vector<8x128xf32>
    %63 = vector.extract_strided_slice %59 {offsets = [0, 384], sizes = [8, 128], strides = [1, 1]} : vector<8x512xf32> to vector<8x128xf32>
    %64 = arith.mulf %61, %42 : vector<8x128xf32>
    %65 = arith.mulf %60, %62 : vector<8x128xf32>
    %66 = arith.addf %64, %65 : vector<8x128xf32>
    %67 = math.tanh %66 : vector<8x128xf32>
    %68 = arith.mulf %63, %67 : vector<8x128xf32>
    %69 = arith.index_cast %48 : i32 to index
    %c0_27 = arith.constant 0 : index
    %70 = vector.load %arg10[%69, %c0_27] : memref<32x128xf32, #tpu.memory_space<vmem>>, vector<8x128xf32>
    tpu.vector_store %arg10[%69, %c0_27], %68 {strides = array<i32>} : memref<32x128xf32, #tpu.memory_space<vmem>>, vector<8x128xf32>,
    %c2_i32 = arith.constant 2 : i32
    %c8_i32_28 = arith.constant 8 : i32
    %71 = arith.muli %c2_i32, %c8_i32_28 : i32
    %72 = tpu.assume_multiple %71, 8 : i32
    %73 = arith.index_cast %72 : i32 to index
    %c0_29 = arith.constant 0 : index
    %74 = vector.load %arg9[%73, %c0_29] : memref<32x512xf32, #tpu.memory_space<vmem>>, vector<8x512xf32>
    %cst_30 = arith.constant dense<0.000000e+00> : vector<8x512xf32>
    %75 = tpu.matmul %68, %18, %cst_30 {dimension_numbers = #tpu.dot_dimension_numbers<[1], [0], [0], [1], [0, 0, 1, 1], [], []>} : vector<8x128xf32>, vector<128x512xf32>, vector<8x512xf32> -> vector<8x512xf32>
    %76 = arith.addf %74, %75 : vector<8x512xf32>
    %77 = math.tanh %76 : vector<8x512xf32>
    %78 = arith.negf %76 : vector<8x512xf32>
    %79 = math.exp %78 : vector<8x512xf32>
    %cst_31 = arith.constant 1.000000e+00 : f32
    %80 = vector.broadcast %cst_31 : f32 to vector<8x512xf32>
    %81 = arith.addf %80, %79 : vector<8x512xf32>
    %82 = arith.divf %80, %81 : vector<8x512xf32>
    %83 = arith.select %8, %77, %82 : vector<8x512xi1>, vector<8x512xf32>
    %84 = vector.extract_strided_slice %83 {offsets = [0, 0], sizes = [8, 128], strides = [1, 1]} : vector<8x512xf32> to vector<8x128xf32>
    %85 = vector.extract_strided_slice %83 {offsets = [0, 128], sizes = [8, 128], strides = [1, 1]} : vector<8x512xf32> to vector<8x128xf32>
    %86 = vector.extract_strided_slice %83 {offsets = [0, 256], sizes = [8, 128], strides = [1, 1]} : vector<8x512xf32> to vector<8x128xf32>
    %87 = vector.extract_strided_slice %83 {offsets = [0, 384], sizes = [8, 128], strides = [1, 1]} : vector<8x512xf32> to vector<8x128xf32>
    %88 = arith.mulf %85, %66 : vector<8x128xf32>
    %89 = arith.mulf %84, %86 : vector<8x128xf32>
    %90 = arith.addf %88, %89 : vector<8x128xf32>
    %91 = math.tanh %90 : vector<8x128xf32>
    %92 = arith.mulf %87, %91 : vector<8x128xf32>
    %93 = arith.index_cast %72 : i32 to index
    %c0_32 = arith.constant 0 : index
    %94 = vector.load %arg10[%93, %c0_32] : memref<32x128xf32, #tpu.memory_space<vmem>>, vector<8x128xf32>
    tpu.vector_store %arg10[%93, %c0_32], %92 {strides = array<i32>} : memref<32x128xf32, #tpu.memory_space<vmem>>, vector<8x128xf32>,
    %c3_i32 = arith.constant 3 : i32
    %c8_i32_33 = arith.constant 8 : i32
    %95 = arith.muli %c3_i32, %c8_i32_33 : i32
    %96 = tpu.assume_multiple %95, 8 : i32
    %97 = arith.index_cast %96 : i32 to index
    %c0_34 = arith.constant 0 : index
    %98 = vector.load %arg9[%97, %c0_34] : memref<32x512xf32, #tpu.memory_space<vmem>>, vector<8x512xf32>
    %cst_35 = arith.constant dense<0.000000e+00> : vector<8x512xf32>
    %99 = tpu.matmul %92, %18, %cst_35 {dimension_numbers = #tpu.dot_dimension_numbers<[1], [0], [0], [1], [0, 0, 1, 1], [], []>} : vector<8x128xf32>, vector<128x512xf32>, vector<8x512xf32> -> vector<8x512xf32>
    %100 = arith.addf %98, %99 : vector<8x512xf32>
    %101 = math.tanh %100 : vector<8x512xf32>
    %102 = arith.negf %100 : vector<8x512xf32>
    %103 = math.exp %102 : vector<8x512xf32>
    %cst_36 = arith.constant 1.000000e+00 : f32
    %104 = vector.broadcast %cst_36 : f32 to vector<8x512xf32>
    %105 = arith.addf %104, %103 : vector<8x512xf32>
    %106 = arith.divf %104, %105 : vector<8x512xf32>
    %107 = arith.select %8, %101, %106 : vector<8x512xi1>, vector<8x512xf32>
    %108 = vector.extract_strided_slice %107 {offsets = [0, 0], sizes = [8, 128], strides = [1, 1]} : vector<8x512xf32> to vector<8x128xf32>
    %109 = vector.extract_strided_slice %107 {offsets = [0, 128], sizes = [8, 128], strides = [1, 1]} : vector<8x512xf32> to vector<8x128xf32>
    %110 = vector.extract_strided_slice %107 {offsets = [0, 256], sizes = [8, 128], strides = [1, 1]} : vector<8x512xf32> to vector<8x128xf32>
    %111 = vector.extract_strided_slice %107 {offsets = [0, 384], sizes = [8, 128], strides = [1, 1]} : vector<8x512xf32> to vector<8x128xf32>
    %112 = arith.mulf %109, %90 : vector<8x128xf32>
    %113 = arith.mulf %108, %110 : vector<8x128xf32>
    %114 = arith.addf %112, %113 : vector<8x128xf32>
    %115 = math.tanh %114 : vector<8x128xf32>
    %116 = arith.mulf %111, %115 : vector<8x128xf32>
    %117 = arith.index_cast %96 : i32 to index
    %c0_37 = arith.constant 0 : index
    %118 = vector.load %arg10[%117, %c0_37] : memref<32x128xf32, #tpu.memory_space<vmem>>, vector<8x128xf32>
    tpu.vector_store %arg10[%117, %c0_37], %116 {strides = array<i32>} : memref<32x128xf32, #tpu.memory_space<vmem>>, vector<8x128xf32>,
    %c4_i32 = arith.constant 4 : i32
    %c0_38 = arith.constant 0 : index
    %c0_39 = arith.constant 0 : index
    %c0_40 = arith.constant 0 : index
    %119 = vector.load %arg11[%c0_38, %c0_39, %c0_40] : memref<2x8x128xf32, #tpu.memory_space<vmem>>, vector<1x8x128xf32>
    %120 = vector.shape_cast %119 : vector<1x8x128xf32> to vector<8x128xf32>
    %121 = vector.shape_cast %116 : vector<8x128xf32> to vector<1x8x128xf32>
    tpu.vector_store %arg11[%c0_38, %c0_39, %c0_40], %121 {strides = array<i32>} : memref<2x8x128xf32, #tpu.memory_space<vmem>>, vector<1x8x128xf32>,
    %c0_41 = arith.constant 0 : index
    %c0_42 = arith.constant 0 : index
    %c0_43 = arith.constant 0 : index
    %122 = vector.load %arg12[%c0_41, %c0_42, %c0_43] : memref<2x8x128xf32, #tpu.memory_space<vmem>>, vector<1x8x128xf32>
    %123 = vector.shape_cast %122 : vector<1x8x128xf32> to vector<8x128xf32>
    %124 = vector.shape_cast %114 : vector<8x128xf32> to vector<1x8x128xf32>
    tpu.vector_store %arg12[%c0_41, %c0_42, %c0_43], %124 {strides = array<i32>} : memref<2x8x128xf32, #tpu.memory_space<vmem>>, vector<1x8x128xf32>,
    %c0_44 = arith.constant 0 : index
    %c0_45 = arith.constant 0 : index
    %c0_46 = arith.constant 0 : index
    %125 = vector.load %arg3[%c0_44, %c0_45, %c0_46] : memref<1x128x512xf32, #tpu.memory_space<vmem>>, vector<1x128x512xf32>
    %126 = vector.shape_cast %125 : vector<1x128x512xf32> to vector<128x512xf32>
    %c0_47 = arith.constant 0 : index
    %c0_48 = arith.constant 0 : index
    %127 = vector.load %arg10[%c0_47, %c0_48] : memref<32x128xf32, #tpu.memory_space<vmem>>, vector<32x128xf32>
    %cst_49 = arith.constant dense<0.000000e+00> : vector<32x512xf32>
    %128 = tpu.matmul %127, %126, %cst_49 {dimension_numbers = #tpu.dot_dimension_numbers<[1], [0], [0], [1], [0, 0, 1, 1], [], []>} : vector<32x128xf32>, vector<128x512xf32>, vector<32x512xf32> -> vector<32x512xf32>
    %c1 = arith.constant 1 : index
    %c0_50 = arith.constant 0 : index
    %c0_51 = arith.constant 0 : index
    %129 = vector.load %arg5[%c1, %c0_50, %c0_51] : memref<2x1x512xf32, #tpu.memory_space<vmem>>, vector<1x1x512xf32>
    %130 = vector.shape_cast %129 : vector<1x1x512xf32> to vector<1x512xf32>
    %131 = vector.broadcast %130 : vector<1x512xf32> to vector<32x512xf32>
    %132 = arith.addf %128, %131 : vector<32x512xf32>
    %c0_52 = arith.constant 0 : index
    %c0_53 = arith.constant 0 : index
    %133 = vector.load %arg9[%c0_52, %c0_53] : memref<32x512xf32, #tpu.memory_space<vmem>>, vector<32x512xf32>
    tpu.vector_store %arg9[%c0_52, %c0_53], %132 {strides = array<i32>} : memref<32x512xf32, #tpu.memory_space<vmem>>, vector<32x512xf32>,
    %c1_54 = arith.constant 1 : index
    %c0_55 = arith.constant 0 : index
    %c0_56 = arith.constant 0 : index
    %134 = vector.load %arg4[%c1_54, %c0_55, %c0_56] : memref<2x128x512xf32, #tpu.memory_space<vmem>>, vector<1x128x512xf32>
    %135 = vector.shape_cast %134 : vector<1x128x512xf32> to vector<128x512xf32>
    %c1_57 = arith.constant 1 : index
    %c0_58 = arith.constant 0 : index
    %c0_59 = arith.constant 0 : index
    %136 = vector.load %arg11[%c1_57, %c0_58, %c0_59] : memref<2x8x128xf32, #tpu.memory_space<vmem>>, vector<1x8x128xf32>
    %137 = vector.shape_cast %136 : vector<1x8x128xf32> to vector<8x128xf32>
    %c1_60 = arith.constant 1 : index
    %c0_61 = arith.constant 0 : index
    %c0_62 = arith.constant 0 : index
    %138 = vector.load %arg12[%c1_60, %c0_61, %c0_62] : memref<2x8x128xf32, #tpu.memory_space<vmem>>, vector<1x8x128xf32>
    %139 = vector.shape_cast %138 : vector<1x8x128xf32> to vector<8x128xf32>
    %c0_i32_63 = arith.constant 0 : i32
    %c8_i32_64 = arith.constant 8 : i32
    %140 = arith.muli %c0_i32_63, %c8_i32_64 : i32
    %141 = tpu.assume_multiple %140, 8 : i32
    %142 = arith.index_cast %141 : i32 to index
    %c0_65 = arith.constant 0 : index
    %143 = vector.load %arg9[%142, %c0_65] : memref<32x512xf32, #tpu.memory_space<vmem>>, vector<8x512xf32>
    %cst_66 = arith.constant dense<0.000000e+00> : vector<8x512xf32>
    %144 = tpu.matmul %137, %135, %cst_66 {dimension_numbers = #tpu.dot_dimension_numbers<[1], [0], [0], [1], [0, 0, 1, 1], [], []>} : vector<8x128xf32>, vector<128x512xf32>, vector<8x512xf32> -> vector<8x512xf32>
    %145 = arith.addf %143, %144 : vector<8x512xf32>
    %146 = math.tanh %145 : vector<8x512xf32>
    %147 = arith.negf %145 : vector<8x512xf32>
    %148 = math.exp %147 : vector<8x512xf32>
    %cst_67 = arith.constant 1.000000e+00 : f32
    %149 = vector.broadcast %cst_67 : f32 to vector<8x512xf32>
    %150 = arith.addf %149, %148 : vector<8x512xf32>
    %151 = arith.divf %149, %150 : vector<8x512xf32>
    %152 = arith.select %8, %146, %151 : vector<8x512xi1>, vector<8x512xf32>
    %153 = vector.extract_strided_slice %152 {offsets = [0, 0], sizes = [8, 128], strides = [1, 1]} : vector<8x512xf32> to vector<8x128xf32>
    %154 = vector.extract_strided_slice %152 {offsets = [0, 128], sizes = [8, 128], strides = [1, 1]} : vector<8x512xf32> to vector<8x128xf32>
    %155 = vector.extract_strided_slice %152 {offsets = [0, 256], sizes = [8, 128], strides = [1, 1]} : vector<8x512xf32> to vector<8x128xf32>
    %156 = vector.extract_strided_slice %152 {offsets = [0, 384], sizes = [8, 128], strides = [1, 1]} : vector<8x512xf32> to vector<8x128xf32>
    %157 = arith.mulf %154, %139 : vector<8x128xf32>
    %158 = arith.mulf %153, %155 : vector<8x128xf32>
    %159 = arith.addf %157, %158 : vector<8x128xf32>
    %160 = math.tanh %159 : vector<8x128xf32>
    %161 = arith.mulf %156, %160 : vector<8x128xf32>
    %c1_i32_68 = arith.constant 1 : i32
    %c8_i32_69 = arith.constant 8 : i32
    %162 = arith.muli %c1_i32_68, %c8_i32_69 : i32
    %163 = tpu.assume_multiple %162, 8 : i32
    %164 = arith.index_cast %163 : i32 to index
    %c0_70 = arith.constant 0 : index
    %165 = vector.load %arg9[%164, %c0_70] : memref<32x512xf32, #tpu.memory_space<vmem>>, vector<8x512xf32>
    %cst_71 = arith.constant dense<0.000000e+00> : vector<8x512xf32>
    %166 = tpu.matmul %161, %135, %cst_71 {dimension_numbers = #tpu.dot_dimension_numbers<[1], [0], [0], [1], [0, 0, 1, 1], [], []>} : vector<8x128xf32>, vector<128x512xf32>, vector<8x512xf32> -> vector<8x512xf32>
    %167 = arith.addf %165, %166 : vector<8x512xf32>
    %168 = math.tanh %167 : vector<8x512xf32>
    %169 = arith.negf %167 : vector<8x512xf32>
    %170 = math.exp %169 : vector<8x512xf32>
    %cst_72 = arith.constant 1.000000e+00 : f32
    %171 = vector.broadcast %cst_72 : f32 to vector<8x512xf32>
    %172 = arith.addf %171, %170 : vector<8x512xf32>
    %173 = arith.divf %171, %172 : vector<8x512xf32>
    %174 = arith.select %8, %168, %173 : vector<8x512xi1>, vector<8x512xf32>
    %175 = vector.extract_strided_slice %174 {offsets = [0, 0], sizes = [8, 128], strides = [1, 1]} : vector<8x512xf32> to vector<8x128xf32>
    %176 = vector.extract_strided_slice %174 {offsets = [0, 128], sizes = [8, 128], strides = [1, 1]} : vector<8x512xf32> to vector<8x128xf32>
    %177 = vector.extract_strided_slice %174 {offsets = [0, 256], sizes = [8, 128], strides = [1, 1]} : vector<8x512xf32> to vector<8x128xf32>
    %178 = vector.extract_strided_slice %174 {offsets = [0, 384], sizes = [8, 128], strides = [1, 1]} : vector<8x512xf32> to vector<8x128xf32>
    %179 = arith.mulf %176, %159 : vector<8x128xf32>
    %180 = arith.mulf %175, %177 : vector<8x128xf32>
    %181 = arith.addf %179, %180 : vector<8x128xf32>
    %182 = math.tanh %181 : vector<8x128xf32>
    %183 = arith.mulf %178, %182 : vector<8x128xf32>
    %c2_i32_73 = arith.constant 2 : i32
    %c8_i32_74 = arith.constant 8 : i32
    %184 = arith.muli %c2_i32_73, %c8_i32_74 : i32
    %185 = tpu.assume_multiple %184, 8 : i32
    %186 = arith.index_cast %185 : i32 to index
    %c0_75 = arith.constant 0 : index
    %187 = vector.load %arg9[%186, %c0_75] : memref<32x512xf32, #tpu.memory_space<vmem>>, vector<8x512xf32>
    %cst_76 = arith.constant dense<0.000000e+00> : vector<8x512xf32>
    %188 = tpu.matmul %183, %135, %cst_76 {dimension_numbers = #tpu.dot_dimension_numbers<[1], [0], [0], [1], [0, 0, 1, 1], [], []>} : vector<8x128xf32>, vector<128x512xf32>, vector<8x512xf32> -> vector<8x512xf32>
    %189 = arith.addf %187, %188 : vector<8x512xf32>
    %190 = math.tanh %189 : vector<8x512xf32>
    %191 = arith.negf %189 : vector<8x512xf32>
    %192 = math.exp %191 : vector<8x512xf32>
    %cst_77 = arith.constant 1.000000e+00 : f32
    %193 = vector.broadcast %cst_77 : f32 to vector<8x512xf32>
    %194 = arith.addf %193, %192 : vector<8x512xf32>
    %195 = arith.divf %193, %194 : vector<8x512xf32>
    %196 = arith.select %8, %190, %195 : vector<8x512xi1>, vector<8x512xf32>
    %197 = vector.extract_strided_slice %196 {offsets = [0, 0], sizes = [8, 128], strides = [1, 1]} : vector<8x512xf32> to vector<8x128xf32>
    %198 = vector.extract_strided_slice %196 {offsets = [0, 128], sizes = [8, 128], strides = [1, 1]} : vector<8x512xf32> to vector<8x128xf32>
    %199 = vector.extract_strided_slice %196 {offsets = [0, 256], sizes = [8, 128], strides = [1, 1]} : vector<8x512xf32> to vector<8x128xf32>
    %200 = vector.extract_strided_slice %196 {offsets = [0, 384], sizes = [8, 128], strides = [1, 1]} : vector<8x512xf32> to vector<8x128xf32>
    %201 = arith.mulf %198, %181 : vector<8x128xf32>
    %202 = arith.mulf %197, %199 : vector<8x128xf32>
    %203 = arith.addf %201, %202 : vector<8x128xf32>
    %204 = math.tanh %203 : vector<8x128xf32>
    %205 = arith.mulf %200, %204 : vector<8x128xf32>
    %c3_i32_78 = arith.constant 3 : i32
    %c8_i32_79 = arith.constant 8 : i32
    %206 = arith.muli %c3_i32_78, %c8_i32_79 : i32
    %207 = tpu.assume_multiple %206, 8 : i32
    %208 = arith.index_cast %207 : i32 to index
    %c0_80 = arith.constant 0 : index
    %209 = vector.load %arg9[%208, %c0_80] : memref<32x512xf32, #tpu.memory_space<vmem>>, vector<8x512xf32>
    %cst_81 = arith.constant dense<0.000000e+00> : vector<8x512xf32>
    %210 = tpu.matmul %205, %135, %cst_81 {dimension_numbers = #tpu.dot_dimension_numbers<[1], [0], [0], [1], [0, 0, 1, 1], [], []>} : vector<8x128xf32>, vector<128x512xf32>, vector<8x512xf32> -> vector<8x512xf32>
    %211 = arith.addf %209, %210 : vector<8x512xf32>
    %212 = math.tanh %211 : vector<8x512xf32>
    %213 = arith.negf %211 : vector<8x512xf32>
    %214 = math.exp %213 : vector<8x512xf32>
    %cst_82 = arith.constant 1.000000e+00 : f32
    %215 = vector.broadcast %cst_82 : f32 to vector<8x512xf32>
    %216 = arith.addf %215, %214 : vector<8x512xf32>
    %217 = arith.divf %215, %216 : vector<8x512xf32>
    %218 = arith.select %8, %212, %217 : vector<8x512xi1>, vector<8x512xf32>
    %219 = vector.extract_strided_slice %218 {offsets = [0, 0], sizes = [8, 128], strides = [1, 1]} : vector<8x512xf32> to vector<8x128xf32>
    %220 = vector.extract_strided_slice %218 {offsets = [0, 128], sizes = [8, 128], strides = [1, 1]} : vector<8x512xf32> to vector<8x128xf32>
    %221 = vector.extract_strided_slice %218 {offsets = [0, 256], sizes = [8, 128], strides = [1, 1]} : vector<8x512xf32> to vector<8x128xf32>
    %222 = vector.extract_strided_slice %218 {offsets = [0, 384], sizes = [8, 128], strides = [1, 1]} : vector<8x512xf32> to vector<8x128xf32>
    %223 = arith.mulf %220, %203 : vector<8x128xf32>
    %224 = arith.mulf %219, %221 : vector<8x128xf32>
    %225 = arith.addf %223, %224 : vector<8x128xf32>
    %226 = math.tanh %225 : vector<8x128xf32>
    %227 = arith.mulf %222, %226 : vector<8x128xf32>
    %c4_i32_83 = arith.constant 4 : i32
    %c1_84 = arith.constant 1 : index
    %c0_85 = arith.constant 0 : index
    %c0_86 = arith.constant 0 : index
    %228 = vector.load %arg11[%c1_84, %c0_85, %c0_86] : memref<2x8x128xf32, #tpu.memory_space<vmem>>, vector<1x8x128xf32>
    %229 = vector.shape_cast %228 : vector<1x8x128xf32> to vector<8x128xf32>
    %230 = vector.shape_cast %227 : vector<8x128xf32> to vector<1x8x128xf32>
    tpu.vector_store %arg11[%c1_84, %c0_85, %c0_86], %230 {strides = array<i32>} : memref<2x8x128xf32, #tpu.memory_space<vmem>>, vector<1x8x128xf32>,
    %c1_87 = arith.constant 1 : index
    %c0_88 = arith.constant 0 : index
    %c0_89 = arith.constant 0 : index
    %231 = vector.load %arg12[%c1_87, %c0_88, %c0_89] : memref<2x8x128xf32, #tpu.memory_space<vmem>>, vector<1x8x128xf32>
    %232 = vector.shape_cast %231 : vector<1x8x128xf32> to vector<8x128xf32>
    %233 = vector.shape_cast %225 : vector<8x128xf32> to vector<1x8x128xf32>
    tpu.vector_store %arg12[%c1_87, %c0_88, %c0_89], %233 {strides = array<i32>} : memref<2x8x128xf32, #tpu.memory_space<vmem>>, vector<1x8x128xf32>,
    %c1_i32_90 = arith.constant 1 : i32
    %234 = arith.cmpi eq, %arg0, %c1_i32_90 : i32
    %235 = arith.extui %234 : i1 to i32
    %c0_i32_91 = arith.constant 0 : i32
    %236 = arith.cmpi ne, %235, %c0_i32_91 : i32
    scf.if %236 {
      %c0_92 = arith.constant 0 : index
      %c0_93 = arith.constant 0 : index
      %237 = vector.load %arg6[%c0_92, %c0_93] : memref<128x1xf32, #tpu.memory_space<vmem>>, vector<128x1xf32>
      %cst_94 = arith.constant dense<0.000000e+00> : vector<8x1xf32>
      %238 = tpu.matmul %227, %237, %cst_94 {dimension_numbers = #tpu.dot_dimension_numbers<[1], [0], [0], [1], [0, 0, 1, 1], [], []>} : vector<8x128xf32>, vector<128x1xf32>, vector<8x1xf32> -> vector<8x1xf32>
      %c0_95 = arith.constant 0 : index
      %c0_96 = arith.constant 0 : index
      %239 = vector.load %arg7[%c0_95, %c0_96] : memref<1x1xf32, #tpu.memory_space<vmem>>, vector<1x1xf32>
      %240 = vector.broadcast %239 : vector<1x1xf32> to vector<8x1xf32>
      %241 = arith.addf %238, %240 : vector<8x1xf32>
      %c0_97 = arith.constant 0 : index
      %c0_98 = arith.constant 0 : index
      %242 = vector.load %arg8[%c0_97, %c0_98] : memref<8x1xf32, #tpu.memory_space<vmem>>, vector<8x1xf32>
      tpu.vector_store %arg8[%c0_97, %c0_98], %241 {strides = array<i32>} : memref<8x1xf32, #tpu.memory_space<vmem>>, vector<8x1xf32>,
    } else {
    }
    return
  }
  func.func @transform_0(%arg0: i32) -> (i32, i32) {
    %c0_i32 = arith.constant 0 : i32
    %c0_i32_0 = arith.constant 0 : i32
    return %arg0, %c0_i32 : i32, i32
  }
  func.func @transform_1(%arg0: i32) -> (i32, i32) {
    %c0_i32 = arith.constant 0 : i32
    %c0_i32_0 = arith.constant 0 : i32
    %c0_i32_1 = arith.constant 0 : i32
    return %c0_i32, %c0_i32_0 : i32, i32
  }
  func.func @transform_2(%arg0: i32) -> (i32, i32, i32) {
    %c0_i32 = arith.constant 0 : i32
    %c0_i32_0 = arith.constant 0 : i32
    %c0_i32_1 = arith.constant 0 : i32
    %c0_i32_2 = arith.constant 0 : i32
    return %c0_i32, %c0_i32_0, %c0_i32_1 : i32, i32, i32
  }
  func.func @transform_3(%arg0: i32) -> (i32, i32, i32) {
    %c0_i32 = arith.constant 0 : i32
    %c0_i32_0 = arith.constant 0 : i32
    %c0_i32_1 = arith.constant 0 : i32
    %c0_i32_2 = arith.constant 0 : i32
    return %c0_i32, %c0_i32_0, %c0_i32_1 : i32, i32, i32
  }
  func.func @transform_4(%arg0: i32) -> (i32, i32, i32) {
    %c0_i32 = arith.constant 0 : i32
    %c0_i32_0 = arith.constant 0 : i32
    %c0_i32_1 = arith.constant 0 : i32
    %c0_i32_2 = arith.constant 0 : i32
    return %c0_i32, %c0_i32_0, %c0_i32_1 : i32, i32, i32
  }
  func.func @transform_5(%arg0: i32) -> (i32, i32) {
    %c0_i32 = arith.constant 0 : i32
    %c0_i32_0 = arith.constant 0 : i32
    %c0_i32_1 = arith.constant 0 : i32
    return %c0_i32, %c0_i32_0 : i32, i32
  }
  func.func @transform_6(%arg0: i32) -> (i32, i32) {
    %c0_i32 = arith.constant 0 : i32
    %c0_i32_0 = arith.constant 0 : i32
    %c0_i32_1 = arith.constant 0 : i32
    return %c0_i32, %c0_i32_0 : i32, i32
  }
  func.func @transform_7(%arg0: i32) -> (i32, i32) {
    %c0_i32 = arith.constant 0 : i32
    %c0_i32_0 = arith.constant 0 : i32
    %c0_i32_1 = arith.constant 0 : i32
    return %c0_i32, %c0_i32_0 : i32, i32
  }
}

</mosaic_0001>

<bundles_post_ra>
// kernel: lstm_model_forward.1
= control target key start
LH: loop header
LB: loop body
LE: loop exit
PB: predicated region body
PF: predicated region fallthrough
CT: control target
= control target key end

     0   :  { %s3864_s0 = inlined_call_operand.vmem [shape: f32[64,16], index: 0, kind: input, shape index: {}]   ;;  %s3865_s1 = inlined_call_operand.vmem [shape: f32[16,512], index: 1, kind: input, shape index: {}]   ;;  %s3866_s2 = inlined_call_operand.hbm [shape: f32[1,128,512], index: 2, kind: input, shape index: {}]   ;;  %s3867_s3 = inlined_call_operand.hbm [shape: f32[2,128,512], index: 3, kind: input, shape index: {}]   ;;  %s3868_s4 = inlined_call_operand.vmem [shape: f32[2,1,512], index: 4, kind: input, shape index: {}]   ;;  %s3869_s5 = inlined_call_operand.hbm [shape: f32[128,1], index: 5, kind: input, shape index: {}]   ;;  %s3870_s6 = inlined_call_operand.<no memory space> [shape: f32[1,1], index: 6, kind: input, shape index: {}]   ;;  %s3871_s7 = inlined_call_operand.vmem [shape: f32[8,1], index: 7, kind: output, shape index: {}]  }
   0x1   :  { %v12_v0 = vstv %s3870_s6 }
   0x2   :  { %13 = vst [vmem:[#allocation6] sm:$0x1] %v12_v0 }
   0x3   :  { %14 = vsyncpa [#allocation8], 0 }
   0x4   :  { %15 = vsyncpa [#allocation10], 0  ;;  %s2798_s26 = smov 0  }
   0x5 LB: > { %s2804_s27 = sadd.s32 4294967295, %s2745_s26   ;;  %p2404_p0 = scmp.ge.s32.totalorder %s2745_s26, 1  ;;  %s2745_s26 = sphi %s2798_s26, %s21_s26  }
   0x6   : > { %p199_p1 = scmp.lt.s32.totalorder %s2745_s26, 3  ;;  %p2405_p2 = scmp.ne.s32.totalorder %s2804_s27, 0 }
   0x7   : > { %p2490_p3 = scmp.eq.s32.totalorder %s2804_s27, 0  ;;  %s227_s29 = sshll.u32 %s3867_s3, 4  ;;  %s228_s29 = int_to_ptr.hbm [resolvable:$true] %s227_s29 }
   0x8   : > { %p2813_p4 = pnand %p2404_p0, %p199_p1  ;;  %s213_s10 = sshll.u32 %s3866_s2, 4  ;;  %s214_s10 = int_to_ptr.hbm [resolvable:$true] %s213_s10 }
   0x9   : > { %s2747_s11 = smov [#allocation9]   ;;  %s2748_s14 = smov [#allocation7]  }
   0xa   : > { %p2480_p5 = pneg %p2813_p4  ;;  %s229_s12 = sshll.u32 %s2747_s11, 4  ;;  %s230_s12 = int_to_ptr.vmem [resolvable:$true] %s229_s12 }
   0xb   : > { %s215_s15 = sshll.u32 %s2748_s14, 4  ;;  %s244_s18 = sshll.u32 %s3869_s5, 4  ;;  %s216_s15 = int_to_ptr.vmem [resolvable:$true] %s215_s15  ;;  %s245_s18 = int_to_ptr.hbm [resolvable:$true] %s244_s18 }
   0xc   : > { %p2824_p6 = pnand %p2490_p3, %p2480_p5  ;;  %s2749_s19 = smov 512  }
   0xd   : > { %s2750_s20 = smov 32   ;;  %s2751_s21 = smov [#allocation11]  }
   0xe   : > { %2486 = dma.hbm_to_vmem [thread:$0]  (!%p2824_p6), %s228_s29, 16384, %s230_s12, [#allocation10], %s2749_s19, %s2749_s19, %s2750_s20  }
   0xf   : > { %2483 = dma.hbm_to_vmem [thread:$0]  (!%p2824_p6), %s214_s10, 8192, %s216_s15, [#allocation8], %s2749_s19, %s2749_s19, %s2750_s20  }
  0x10   : > { %s246_s22 = sshll.u32 %s2751_s21, 4  ;;  %s2752_s23 = smov 128   ;;  %s247_s22 = int_to_ptr.vmem [resolvable:$true] %s246_s22 }
  0x11   : > { %s2753_s24 = smov 8   ;;  %274 = sbr.rel (%p2813_p4) target bundleno = 1611 (0x64b), region = 48 }
  0x12   : > { %2489 = dma.hbm_to_vmem [thread:$0]  (!%p2824_p6), %s245_s18, 2048, %s247_s22, [#allocation10], %s2752_s23, %s2752_s23, %s2753_s24  }
  0x16   : > { %2736 = dma.done.wait (%p2490_p3), [#allocation8], 8192  }
  0x17   : > { %2738 = vsyncadd (%p2490_p3), [#allocation8], 4294959104 }
  0x18   : > { %2740 = dma.done.wait (%p2490_p3), [#allocation10], 18432  }
  0x19   : > { %2742 = vsyncadd (%p2490_p3), [#allocation10], 4294948864  ;;  %s2413_s25 = sshll.u32 %s2804_s27, 2 }
  0x1a   : > { %p313_p7 = scmp.lt.s32.totalorder %s2413_s25, 7  ;;  %321 = sbr.rel (%p2405_p2) target bundleno = 36 (0x24), region = 64 }
  0x1c   : > { %s4163_s25 = smov (!%p313_p7, %s2413_s25), 7 }
  0x1d   : > { %s2414_s6 = sshll.u32 %s4163_s25, 3 }
  0x1e   : > { %s2851_s30 = scalar_lea.vmem %s3864_s0, %s2414_s6 }
  0x1f   : > { %v2754_v1 = vmov 0.0  }
  0x20   : > { %322 = vst [vmem:[#allocation4] sm:$0xff] %v2754_v1 }
  0x21   : > { %323 = vst [vmem:[#allocation4 + $0x8] sm:$0xff] %v2754_v1 }
  0x22   : > { %324 = vst [vmem:[#allocation5 + $0x8] sm:$0xff] %v2754_v1 }
  0x23   : > { %325 = vst [vmem:[#allocation5] sm:$0xff] %v2754_v1 }
  0x24 PF: > { %v351_v2 = vld [vmem:[%s3865_s1 + $0x20] sm:$0xff]  ;;  %v352_v3 = vld [vmem:[%s3865_s1 + $0x28] sm:$0xff]  ;;  %v353_v4 = vld [vmem:[%s3865_s1 + $0x30] sm:$0xff]  ;;  %vm365_vm0 = vcmask 130048   ;;  %p2465_p8 = scmp.ne.s32.totalorder %s2804_s27, 1 }
  0x25   : > { %392 = vmatpush.msra.mxu0 %v351_v2  ;;  %421 = vmatpush.msra.mxu1 %v352_v3  ;;  %v354_v5 = vld [vmem:[%s3865_s1 + $0x38] sm:$0xff]  ;;  %v347_v6 = vld [vmem:[%s3865_s1] sm:$0xff]  ;;  %v348_v7 = vld [vmem:[%s3865_s1 + $0x8] sm:$0xff] }
  0x26   : > { %450 = vmatpush.msra.mxu2 %v353_v4  ;;  %479 = vmatpush.msra.mxu3 %v354_v5  ;;  %v349_v8 = vld [vmem:[%s3865_s1 + $0x10] sm:$0xff]  ;;  %v350_v9 = vld [vmem:[%s3865_s1 + $0x18] sm:$0xff]  ;;  %v343_v10 = vld [vmem:[%s2851_s30] sm:$0xff] }
  0x27   : > { %393 = vmatpush.msra.mxu0 %v347_v6  ;;  %422 = vmatpush.msra.mxu1 %v348_v7  ;;  %v2880_v11 = vld [vmem:[#allocation9 + $0x1e0] sm:$0xff]  ;;  %v2882_v12 = vld [vmem:[#allocation9 + $0x1e8] sm:$0xff]  ;;  %v2886_v13 = vld [vmem:[#allocation9 + $0x1f0] sm:$0xff] }
  0x28   : > { %451 = vmatpush.msra.mxu2 %v349_v8  ;;  %480 = vmatpush.msra.mxu3 %v350_v9  ;;  %v2888_v14 = vld [vmem:[#allocation9 + $0x1f8] sm:$0xff]  ;;  %v2892_v15 = vld [vmem:[#allocation9 + $0x1c0] sm:$0xff]  ;;  %v2894_v16 = vld [vmem:[#allocation9 + $0x1c8] sm:$0xff] }
  0x29   : > { %2416 = vmatmul.msk.f32.vlgmr.msra.gmra.mxu0 %vm365_vm0, %v343_v10  ;;  %2420 = vmatmul.msk.f32.vlgmr.msra.gmra.mxu1 %vm365_vm0, %v343_v10  ;;  %v2898_v17 = vld [vmem:[#allocation9 + $0x1d0] sm:$0xff]  ;;  %v2900_v18 = vld [vmem:[#allocation9 + $0x1d8] sm:$0xff]  ;;  %v2904_v19 = vld [vmem:[#allocation9 + $0x1a0] sm:$0xff] }
  0x2a   : > { %2424 = vmatmul.msk.f32.vlgmr.msra.gmra.mxu2 %vm365_vm0, %v343_v10  ;;  %2428 = vmatmul.msk.f32.vlgmr.msra.gmra.mxu3 %vm365_vm0, %v343_v10  ;;  %v2906_v20 = vld [vmem:[#allocation9 + $0x1a8] sm:$0xff]  ;;  %v2910_v21 = vld [vmem:[#allocation9 + $0x1b0] sm:$0xff]  ;;  %v2912_v22 = vld [vmem:[#allocation9 + $0x1b8] sm:$0xff] }
  0x2b   : > { %583 = vmatpush.msrb.mxu0 %v2880_v11  ;;  %603 = vmatpush.msrb.mxu1 %v2882_v12  ;;  %v2916_v23 = vld [vmem:[#allocation9 + $0x180] sm:$0xff]  ;;  %v2918_v24 = vld [vmem:[#allocation9 + $0x188] sm:$0xff]  ;;  %v2922_v25 = vld [vmem:[#allocation9 + $0x190] sm:$0xff] }
  0x2c   : > { %623 = vmatpush.msrb.mxu2 %v2886_v13  ;;  %643 = vmatpush.msrb.mxu3 %v2888_v14  ;;  %v2924_v26 = vld [vmem:[#allocation9 + $0x198] sm:$0xff]  ;;  %v344_v27 = vld [vmem:[%s2851_s30 + $0x8] sm:$0xff]  ;;  %v2939_v30 = vld [vmem:[#allocation9 + $0x170] sm:$0xff] }
  0x2d   : > { %584 = vmatpush.msrb.mxu0 %v2892_v15  ;;  %604 = vmatpush.msrb.mxu1 %v2894_v16  ;;  %v2933_v28 = vld [vmem:[#allocation9 + $0x160] sm:$0xff]  ;;  %v2935_v29 = vld [vmem:[#allocation9 + $0x168] sm:$0xff]  ;;  %v2941_v31 = vld [vmem:[#allocation9 + $0x178] sm:$0xff] }
  0x2e   : > { %624 = vmatpush.msrb.mxu2 %v2898_v17  ;;  %644 = vmatpush.msrb.mxu3 %v2900_v18  ;;  %v2945_v32 = vld [vmem:[#allocation9 + $0x140] sm:$0xff]  ;;  %v2947_v33 = vld [vmem:[#allocation9 + $0x148] sm:$0xff]  ;;  %v2951_v34 = vld [vmem:[#allocation9 + $0x150] sm:$0xff] }
  0x2f   : > { %585 = vmatpush.msrb.mxu0 %v2904_v19  ;;  %605 = vmatpush.msrb.mxu1 %v2906_v20  ;;  %v2953_v35 = vld [vmem:[#allocation9 + $0x158] sm:$0xff]  ;;  %v2957_v36 = vld [vmem:[#allocation9 + $0x120] sm:$0xff]  ;;  %v2959_v37 = vld [vmem:[#allocation9 + $0x128] sm:$0xff] }
  0x30   : > { %625 = vmatpush.msrb.mxu2 %v2910_v21  ;;  %645 = vmatpush.msrb.mxu3 %v2912_v22  ;;  %v2963_v38 = vld [vmem:[#allocation9 + $0x130] sm:$0xff]  ;;  %v2965_v39 = vld [vmem:[#allocation9 + $0x138] sm:$0xff]  ;;  %v2969_v40 = vld [vmem:[#allocation9 + $0x100] sm:$0xff] }
  0x31   : > { %586 = vmatpush.msrb.mxu0 %v2916_v23  ;;  %606 = vmatpush.msrb.mxu1 %v2918_v24  ;;  %v2971_v41 = vld [vmem:[#allocation9 + $0x108] sm:$0xff]  ;;  %v2975_v42 = vld [vmem:[#allocation9 + $0x110] sm:$0xff]  ;;  %v2977_v43 = vld [vmem:[#allocation9 + $0x118] sm:$0xff] }
  0x32   : > { %626 = vmatpush.msrb.mxu2 %v2922_v25  ;;  %646 = vmatpush.msrb.mxu3 %v2924_v26  ;;  %v345_v44 = vld [vmem:[%s2851_s30 + $0x10] sm:$0xff]  ;;  %v2986_v45 = vld [vmem:[#allocation9 + $0xe0] sm:$0xff]  ;;  %v2994_v48 = vld [vmem:[#allocation9 + $0xf8] sm:$0xff] }
  0x33   : > { %2417 = vmatmul.msk.f32.gmra.mxu0 %vm365_vm0, %v344_v27  ;;  %2421 = vmatmul.msk.f32.gmra.mxu1 %vm365_vm0, %v344_v27  ;;  %v2988_v46 = vld [vmem:[#allocation9 + $0xe8] sm:$0xff]  ;;  %v2992_v47 = vld [vmem:[#allocation9 + $0xf0] sm:$0xff]  ;;  %v2998_v49 = vld [vmem:[#allocation9 + $0xc0] sm:$0xff] }
  0x34   : > { %2425 = vmatmul.msk.f32.gmra.mxu2 %vm365_vm0, %v344_v27  ;;  %2429 = vmatmul.msk.f32.gmra.mxu3 %vm365_vm0, %v344_v27  ;;  %v3000_v50 = vld [vmem:[#allocation9 + $0xc8] sm:$0xff]  ;;  %v3004_v51 = vld [vmem:[#allocation9 + $0xd0] sm:$0xff]  ;;  %v3006_v52 = vld [vmem:[#allocation9 + $0xd8] sm:$0xff] }
  0x35   : > { %587 = vmatpush.msrb.mxu0 %v2933_v28  ;;  %607 = vmatpush.msrb.mxu1 %v2935_v29  ;;  %3976 = vst [vmem:[#allocation14_spill] sm:$0xff] %v3004_v51  ;;  %v3010_v53 = vld [vmem:[#allocation9 + $0xa0] sm:$0xff]  ;;  %v3012_v54 = vld [vmem:[#allocation9 + $0xa8] sm:$0xff]  ;;  %v3016_v55 = vld [vmem:[#allocation9 + $0xb0] sm:$0xff] }
  0x36   : > { %627 = vmatpush.msrb.mxu2 %v2939_v30  ;;  %647 = vmatpush.msrb.mxu3 %v2941_v31  ;;  %3977 = vst [vmem:[#allocation15_spill] sm:$0xff] %v3006_v52  ;;  %v3018_v56 = vld [vmem:[#allocation9 + $0xb8] sm:$0xff]  ;;  %v3022_v57 = vld [vmem:[#allocation9 + $0x80] sm:$0xff]  ;;  %v3024_v58 = vld [vmem:[#allocation9 + $0x88] sm:$0xff] }
  0x37   : > { %588 = vmatpush.msrb.mxu0 %v2945_v32  ;;  %608 = vmatpush.msrb.mxu1 %v2947_v33  ;;  %3978 = vst [vmem:[#allocation16_spill] sm:$0xff] %v3010_v53  ;;  %v3028_v59 = vld [vmem:[#allocation9 + $0x90] sm:$0xff]  ;;  %v3030_v60 = vld [vmem:[#allocation9 + $0x98] sm:$0xff]  ;;  %v3039_v62 = vld [vmem:[#allocation9 + $0x60] sm:$0xff] }
  0x38   : > { %628 = vmatpush.msrb.mxu2 %v2951_v34  ;;  %648 = vmatpush.msrb.mxu3 %v2953_v35  ;;  %3979 = vst [vmem:[#allocation17_spill] sm:$0xff] %v3012_v54  ;;  %v346_v61 = vld [vmem:[%s2851_s30 + $0x18] sm:$0xff]  ;;  %v3041_v63 = vld [vmem:[#allocation9 + $0x68] sm:$0xff]  ;;  %v3051_v2 = vld [vmem:[#allocation9 + $0x40] sm:$0xff] }
  0x39   : > { %589 = vmatpush.msrb.mxu0 %v2957_v36  ;;  %609 = vmatpush.msrb.mxu1 %v2959_v37  ;;  %3980 = vst [vmem:[#allocation18_spill] sm:$0xff] %v3016_v55  ;;  %v3045_v0 = vld [vmem:[#allocation9 + $0x70] sm:$0xff]  ;;  %v3047_v1 = vld [vmem:[#allocation9 + $0x78] sm:$0xff]  ;;  %v3053_v3 = vld [vmem:[#allocation9 + $0x48] sm:$0xff] }
  0x3a   : > { %629 = vmatpush.msrb.mxu2 %v2963_v38  ;;  %649 = vmatpush.msrb.mxu3 %v2965_v39  ;;  %3981 = vst [vmem:[#allocation19_spill] sm:$0xff] %v3018_v56  ;;  %v3057_v4 = vld [vmem:[#allocation9 + $0x50] sm:$0xff]  ;;  %v3059_v5 = vld [vmem:[#allocation9 + $0x58] sm:$0xff]  ;;  %v3063_v6 = vld [vmem:[#allocation9 + $0x20] sm:$0xff] }
  0x3b   : > { %590 = vmatpush.msrb.mxu0 %v2969_v40  ;;  %610 = vmatpush.msrb.mxu1 %v2971_v41  ;;  %3982 = vst [vmem:[#allocation20_spill] sm:$0xff] %v3022_v57  ;;  %v3065_v7 = vld [vmem:[#allocation9 + $0x28] sm:$0xff]  ;;  %v3069_v8 = vld [vmem:[#allocation9 + $0x30] sm:$0xff]  ;;  %v3071_v9 = vld [vmem:[#allocation9 + $0x38] sm:$0xff] }
  0x3c   : > { %630 = vmatpush.msrb.mxu2 %v2975_v42  ;;  %650 = vmatpush.msrb.mxu3 %v2977_v43  ;;  %3983 = vst [vmem:[#allocation21_spill] sm:$0xff] %v3024_v58  ;;  %v3075_v10 = vld [vmem:[#allocation9] sm:$0xff]  ;;  %v3077_v27 = vld [vmem:[#allocation9 + $0x8] sm:$0xff] }
  0x3d   : > { %2418 = vmatmul.msk.f32.gmra.mxu0 %vm365_vm0, %v345_v44  ;;  %2422 = vmatmul.msk.f32.gmra.mxu1 %vm365_vm0, %v345_v44  ;;  %3984 = vst [vmem:[#allocation22_spill] sm:$0xff] %v3028_v59 }
  0x3e   : > { %2426 = vmatmul.msk.f32.gmra.mxu2 %vm365_vm0, %v345_v44  ;;  %2430 = vmatmul.msk.f32.gmra.mxu3 %vm365_vm0, %v345_v44  ;;  %3985 = vst [vmem:[#allocation23_spill] sm:$0xff] %v3030_v60  ;;  %v3081_v44 = vld [vmem:[#allocation9 + $0x10] sm:$0xff] }
  0x3f   : > { %591 = vmatpush.msrb.mxu0 %v2986_v45  ;;  %611 = vmatpush.msrb.mxu1 %v2988_v46  ;;  %3986 = vst [vmem:[#allocation24_spill] sm:$0xff] %v3039_v62 }
  0x40   : > { %631 = vmatpush.msrb.mxu2 %v2992_v47  ;;  %651 = vmatpush.msrb.mxu3 %v2994_v48  ;;  %3987 = vst [vmem:[#allocation25_spill] sm:$0xff] %v3041_v63 }
  0x41   : > { %592 = vmatpush.msrb.mxu0 %v2998_v49  ;;  %612 = vmatpush.msrb.mxu1 %v3000_v50  ;;  %3988 = vst [vmem:[#allocation26_spill] sm:$0xff] %v3045_v0 }
  0x42   : > { %632 = vmatpush.msrb.mxu2 %v3004_v51  ;;  %652 = vmatpush.msrb.mxu3 %v3006_v52  ;;  %3989 = vst [vmem:[#allocation27_spill] sm:$0xff] %v3047_v1 }
  0x43   : > { %593 = vmatpush.msrb.mxu0 %v3010_v53  ;;  %613 = vmatpush.msrb.mxu1 %v3012_v54  ;;  %3990 = vst [vmem:[#allocation28_spill] sm:$0xff] %v3051_v2 }
  0x44   : > { %633 = vmatpush.msrb.mxu2 %v3016_v55  ;;  %653 = vmatpush.msrb.mxu3 %v3018_v56  ;;  %3991 = vst [vmem:[#allocation29_spill] sm:$0xff] %v3053_v3 }
  0x45   : > { %594 = vmatpush.msrb.mxu0 %v3022_v57  ;;  %614 = vmatpush.msrb.mxu1 %v3024_v58  ;;  %3992 = vst [vmem:[#allocation30_spill] sm:$0xff] %v3057_v4 }
  0x46   : > { %634 = vmatpush.msrb.mxu2 %v3028_v59  ;;  %654 = vmatpush.msrb.mxu3 %v3030_v60  ;;  %3993 = vst [vmem:[#allocation31_spill] sm:$0xff] %v3059_v5 }
  0x47   : > { %2419 = vmatmul.msk.f32.gmra.mxu0 %vm365_vm0, %v346_v61  ;;  %2423 = vmatmul.msk.f32.gmra.mxu1 %vm365_vm0, %v346_v61  ;;  %3994 = vst [vmem:[#allocation32_spill] sm:$0xff] %v3063_v6 }
  0x48   : > { %2427 = vmatmul.msk.f32.gmra.mxu2 %vm365_vm0, %v346_v61  ;;  %2431 = vmatmul.msk.f32.gmra.mxu3 %vm365_vm0, %v346_v61  ;;  %3995 = vst [vmem:[#allocation33_spill] sm:$0xff] %v3065_v7  ;;  %v3083_v61 = vld [vmem:[#allocation9 + $0x18] sm:$0xff] }
  0x49   : > { %595 = vmatpush.msrb.mxu0 %v3039_v62  ;;  %615 = vmatpush.msrb.mxu1 %v3041_v63  ;;  %3996 = vst [vmem:[#allocation34_spill] sm:$0xff] %v3069_v8 }
  0x4a   : > { %635 = vmatpush.msrb.mxu2 %v3045_v0  ;;  %655 = vmatpush.msrb.mxu3 %v3047_v1  ;;  %3997 = vst [vmem:[#allocation35_spill] sm:$0xff] %v3071_v9 }
  0x4b   : > { %596 = vmatpush.msrb.mxu0 %v3051_v2  ;;  %616 = vmatpush.msrb.mxu1 %v3053_v3  ;;  %3998 = vst [vmem:[#allocation36_spill] sm:$0xff] %v3075_v10  ;;  %v574_v3 = vld [vmem:[#allocation4] sm:$0xff] }
  0x4c   : > { %636 = vmatpush.msrb.mxu2 %v3057_v4  ;;  %656 = vmatpush.msrb.mxu3 %v3059_v5  ;;  %3999 = vst [vmem:[#allocation37_spill] sm:$0xff] %v3077_v27 }
  0x4d   : > { %597 = vmatpush.msrb.mxu0 %v3063_v6  ;;  %617 = vmatpush.msrb.mxu1 %v3065_v7  ;;  %4000 = vst [vmem:[#allocation38_spill] sm:$0xff] %v3081_v44 }
  0x4e   : > { %4001 = vst [vmem:[#allocation39_spill] sm:$0xff] %v3083_v61  ;;  %637 = vmatpush.msrb.mxu2 %v3069_v8  ;;  %657 = vmatpush.msrb.mxu3 %v3071_v9 }
  0x4f   : > { %598 = vmatpush.msrb.mxu0 %v3075_v10  ;;  %618 = vmatpush.msrb.mxu1 %v3077_v27 }
  0x50   : > { %638 = vmatpush.msrb.mxu2 %v3081_v44  ;;  %658 = vmatpush.msrb.mxu3 %v3083_v61 }
  0x51   : > { %599 = vmatmul.f32.vlgmr.msrb.gmra.mxu0 %v574_v3  ;;  %619 = vmatmul.f32.vlgmr.msrb.gmra.mxu1 %v574_v3 }
  0x52   : > { %639 = vmatmul.f32.vlgmr.msrb.gmra.mxu2 %v574_v3  ;;  %659 = vmatmul.f32.vlgmr.msrb.gmra.mxu3 %v574_v3  ;;  %v4002_v3 = vld [vmem:[#allocation29_spill] sm:$0xff] }
  0x53   : > { %764 = vmatpush.msra.mxu0 %v2880_v11  ;;  %784 = vmatpush.msra.mxu1 %v2882_v12 }
  0x54   : > { %804 = vmatpush.msra.mxu2 %v2886_v13  ;;  %824 = vmatpush.msra.mxu3 %v2888_v14 }
  0x55   : > { %765 = vmatpush.msra.mxu0 %v2892_v15  ;;  %785 = vmatpush.msra.mxu1 %v2894_v16 }
  0x56   : > { %805 = vmatpush.msra.mxu2 %v2898_v17  ;;  %825 = vmatpush.msra.mxu3 %v2900_v18 }
  0x57   : > { %766 = vmatpush.msra.mxu0 %v2904_v19  ;;  %786 = vmatpush.msra.mxu1 %v2906_v20 }
  0x58   : > { %806 = vmatpush.msra.mxu2 %v2910_v21  ;;  %826 = vmatpush.msra.mxu3 %v2912_v22 }
  0x59   : > { %767 = vmatpush.msra.mxu0 %v2916_v23  ;;  %787 = vmatpush.msra.mxu1 %v2918_v24 }
  0x5a   : > { %807 = vmatpush.msra.mxu2 %v2922_v25  ;;  %827 = vmatpush.msra.mxu3 %v2924_v26 }
  0x5b   : > { %768 = vmatpush.msra.mxu0 %v2933_v28  ;;  %788 = vmatpush.msra.mxu1 %v2935_v29 }
  0x5c   : > { %808 = vmatpush.msra.mxu2 %v2939_v30  ;;  %828 = vmatpush.msra.mxu3 %v2941_v31 }
  0x5d   : > { %769 = vmatpush.msra.mxu0 %v2945_v32  ;;  %789 = vmatpush.msra.mxu1 %v2947_v33 }
  0x5e   : > { %809 = vmatpush.msra.mxu2 %v2951_v34  ;;  %829 = vmatpush.msra.mxu3 %v2953_v35 }
  0x5f   : > { %770 = vmatpush.msra.mxu0 %v2957_v36  ;;  %790 = vmatpush.msra.mxu1 %v2959_v37 }
  0x60   : > { %810 = vmatpush.msra.mxu2 %v2963_v38  ;;  %830 = vmatpush.msra.mxu3 %v2965_v39 }
  0x61   : > { %771 = vmatpush.msra.mxu0 %v2969_v40  ;;  %791 = vmatpush.msra.mxu1 %v2971_v41 }
  0x62   : > { %811 = vmatpush.msra.mxu2 %v2975_v42  ;;  %831 = vmatpush.msra.mxu3 %v2977_v43 }
  0x63   : > { %772 = vmatpush.msra.mxu0 %v2986_v45  ;;  %792 = vmatpush.msra.mxu1 %v2988_v46 }
  0x64   : > { %812 = vmatpush.msra.mxu2 %v2992_v47  ;;  %832 = vmatpush.msra.mxu3 %v2994_v48 }
  0x65   : > { %773 = vmatpush.msra.mxu0 %v2998_v49  ;;  %793 = vmatpush.msra.mxu1 %v3000_v50 }
  0x66   : > { %813 = vmatpush.msra.mxu2 %v3004_v51  ;;  %833 = vmatpush.msra.mxu3 %v3006_v52 }
  0x67   : > { %774 = vmatpush.msra.mxu0 %v3010_v53  ;;  %794 = vmatpush.msra.mxu1 %v3012_v54 }
  0x68   : > { %814 = vmatpush.msra.mxu2 %v3016_v55  ;;  %834 = vmatpush.msra.mxu3 %v3018_v56 }
  0x69   : > { %775 = vmatpush.msra.mxu0 %v3022_v57  ;;  %795 = vmatpush.msra.mxu1 %v3024_v58 }
  0x6a   : > { %815 = vmatpush.msra.mxu2 %v3028_v59  ;;  %835 = vmatpush.msra.mxu3 %v3030_v60 }
  0x6b   : > { %776 = vmatpush.msra.mxu0 %v3039_v62  ;;  %796 = vmatpush.msra.mxu1 %v3041_v63 }
  0x6c   : > { %816 = vmatpush.msra.mxu2 %v3045_v0  ;;  %836 = vmatpush.msra.mxu3 %v3047_v1 }
  0x6d   : > { %777 = vmatpush.msra.mxu0 %v3051_v2  ;;  %797 = vmatpush.msra.mxu1 %v4002_v3 }
  0x6e   : > { %817 = vmatpush.msra.mxu2 %v3057_v4  ;;  %837 = vmatpush.msra.mxu3 %v3059_v5 }
  0x6f   : > { %778 = vmatpush.msra.mxu0 %v3063_v6  ;;  %798 = vmatpush.msra.mxu1 %v3065_v7 }
  0x70   : > { %818 = vmatpush.msra.mxu2 %v3069_v8  ;;  %838 = vmatpush.msra.mxu3 %v3071_v9 }
  0x71   : > { %779 = vmatpush.msra.mxu0 %v3075_v10  ;;  %799 = vmatpush.msra.mxu1 %v3077_v27 }
  0x72   : > { %819 = vmatpush.msra.mxu2 %v3081_v44  ;;  %839 = vmatpush.msra.mxu3 %v3083_v61 }
  0x73   : > { %946 = vmatpush.msrb.mxu0 %v2880_v11  ;;  %966 = vmatpush.msrb.mxu1 %v2882_v12 }
  0x74   : > { %986 = vmatpush.msrb.mxu2 %v2886_v13  ;;  %1006 = vmatpush.msrb.mxu3 %v2888_v14 }
  0x75   : > { %947 = vmatpush.msrb.mxu0 %v2892_v15  ;;  %967 = vmatpush.msrb.mxu1 %v2894_v16 }
  0x76   : > { %987 = vmatpush.msrb.mxu2 %v2898_v17  ;;  %1007 = vmatpush.msrb.mxu3 %v2900_v18 }
  0x77   : > { %948 = vmatpush.msrb.mxu0 %v2904_v19  ;;  %968 = vmatpush.msrb.mxu1 %v2906_v20 }
  0x78   : > { %988 = vmatpush.msrb.mxu2 %v2910_v21  ;;  %1008 = vmatpush.msrb.mxu3 %v2912_v22 }
  0x79   : > { %949 = vmatpush.msrb.mxu0 %v2916_v23  ;;  %969 = vmatpush.msrb.mxu1 %v2918_v24 }
  0x7a   : > { %989 = vmatpush.msrb.mxu2 %v2922_v25  ;;  %1009 = vmatpush.msrb.mxu3 %v2924_v26 }
  0x7b   : > { %950 = vmatpush.msrb.mxu0 %v2933_v28  ;;  %970 = vmatpush.msrb.mxu1 %v2935_v29 }
  0x7c   : > { %990 = vmatpush.msrb.mxu2 %v2939_v30  ;;  %1010 = vmatpush.msrb.mxu3 %v2941_v31 }
  0x7d   : > { %951 = vmatpush.msrb.mxu0 %v2945_v32  ;;  %971 = vmatpush.msrb.mxu1 %v2947_v33 }
  0x7e   : > { %991 = vmatpush.msrb.mxu2 %v2951_v34  ;;  %1011 = vmatpush.msrb.mxu3 %v2953_v35 }
  0x7f   : > { %952 = vmatpush.msrb.mxu0 %v2957_v36  ;;  %972 = vmatpush.msrb.mxu1 %v2959_v37 }
  0x80   : > { %992 = vmatpush.msrb.mxu2 %v2963_v38  ;;  %1012 = vmatpush.msrb.mxu3 %v2965_v39 }
  0x81   : > { %953 = vmatpush.msrb.mxu0 %v2969_v40  ;;  %973 = vmatpush.msrb.mxu1 %v2971_v41 }
  0x82   : > { %993 = vmatpush.msrb.mxu2 %v2975_v42  ;;  %1013 = vmatpush.msrb.mxu3 %v2977_v43 }
  0x83   : > { %954 = vmatpush.msrb.mxu0 %v2986_v45  ;;  %974 = vmatpush.msrb.mxu1 %v2988_v46 }
  0x84   : > { %994 = vmatpush.msrb.mxu2 %v2992_v47  ;;  %1014 = vmatpush.msrb.mxu3 %v2994_v48 }
  0x85   : > { %955 = vmatpush.msrb.mxu0 %v2998_v49  ;;  %975 = vmatpush.msrb.mxu1 %v3000_v50 }
  0x86   : > { %995 = vmatpush.msrb.mxu2 %v3004_v51  ;;  %1015 = vmatpush.msrb.mxu3 %v3006_v52 }
  0x87   : > { %956 = vmatpush.msrb.mxu0 %v3010_v53  ;;  %976 = vmatpush.msrb.mxu1 %v3012_v54 }
  0x88   : > { %996 = vmatpush.msrb.mxu2 %v3016_v55  ;;  %1016 = vmatpush.msrb.mxu3 %v3018_v56 }
  0x89   : > { %957 = vmatpush.msrb.mxu0 %v3022_v57  ;;  %977 = vmatpush.msrb.mxu1 %v3024_v58 }
  0x8a   : > { %997 = vmatpush.msrb.mxu2 %v3028_v59  ;;  %1017 = vmatpush.msrb.mxu3 %v3030_v60 }
  0x8b   : > { %958 = vmatpush.msrb.mxu0 %v3039_v62  ;;  %978 = vmatpush.msrb.mxu1 %v3041_v63 }
  0x8c   : > { %998 = vmatpush.msrb.mxu2 %v3045_v0  ;;  %1018 = vmatpush.msrb.mxu3 %v3047_v1 }
  0x8d   : > { %959 = vmatpush.msrb.mxu0 %v3051_v2  ;;  %979 = vmatpush.msrb.mxu1 %v4002_v3 }
  0x8e   : > { %999 = vmatpush.msrb.mxu2 %v3057_v4  ;;  %1019 = vmatpush.msrb.mxu3 %v3059_v5 }
  0x8f   : > { %960 = vmatpush.msrb.mxu0 %v3063_v6  ;;  %980 = vmatpush.msrb.mxu1 %v3065_v7  ;;  %v355_v6 = vld [vmem:[%s3868_s4] sm:$0xf] }
  0x90   : > { %1000 = vmatpush.msrb.mxu2 %v3069_v8  ;;  %1020 = vmatpush.msrb.mxu3 %v3071_v9  ;;  %v357_v2 = vperm.slane %v355_v6, 0  ;;  %v358_v8 = vperm.slane %v355_v6, 1 }
  0x91   : > { %961 = vmatpush.msrb.mxu0 %v3075_v10  ;;  %981 = vmatpush.msrb.mxu1 %v3077_v27  ;;  %v359_v27 = vperm.slane %v355_v6, 2 }
  0x92   : > { %1001 = vmatpush.msrb.mxu2 %v3081_v44  ;;  %1021 = vmatpush.msrb.mxu3 %v3083_v61  ;;  %v360_v44 = vperm.slane %v355_v6, 3 }
  0xa6   : > { %v395_v3 = vpop.f32.mrf.mxu0  ;;  %v424_v4 = vpop.f32.mrf.mxu1 }
  0xad   : > { %v453_v5 = vpop.f32.mrf.mxu2  ;;  %v482_v7 = vpop.f32.mrf.mxu3 }
  0xae   : > { %v483_v52 = vadd.f32 %v482_v7, %v360_v44 }
  0xb0   : > { %v398_v1 = vpop.f32.mrf.mxu0  ;;  %v427_v9 = vpop.f32.mrf.mxu1 }
  0xb1   : > { %v3222_v0 = vadd.f32 %v398_v1, %v357_v2  ;;  %v3224_v10 = vadd.f32 %v427_v9, %v358_v8 }
  0xb3   : > { %4003 = vst [vmem:[#allocation40_spill] sm:$0xff] %v3222_v0 }
  0xb4   : > { %4004 = vst [vmem:[#allocation41_spill] sm:$0xff] %v3224_v10 }
  0xb7   : > { %v456_v63 = vpop.f32.mrf.mxu2  ;;  %v485_v61 = vpop.f32.mrf.mxu3 }
  0xb8   : > { %v3226_v62 = vadd.f32 %v456_v63, %v359_v27  ;;  %v3228_v60 = vadd.f32 %v485_v61, %v360_v44 }
  0xba   : > { %4005 = vst [vmem:[#allocation42_spill] sm:$0xff] %v3226_v62  ;;  %v401_v59 = vpop.f32.mrf.mxu0  ;;  %v430_v58 = vpop.f32.mrf.mxu1 }
  0xbb   : > { %4006 = vst [vmem:[#allocation43_spill] sm:$0xff] %v3228_v60  ;;  %v3230_v57 = vadd.f32 %v401_v59, %v357_v2  ;;  %v3232_v56 = vadd.f32 %v430_v58, %v358_v8  ;;  %v396_v58 = vadd.f32 %v395_v3, %v357_v2 }
  0xbd   : > { %4007 = vst [vmem:[#allocation44_spill] sm:$0xff] %v3230_v57 }
  0xbe   : > { %4008 = vst [vmem:[#allocation45_spill] sm:$0xff] %v3232_v56  ;;  %v425_v56 = vadd.f32 %v424_v4, %v358_v8 }
  0xc1   : > { %v459_v55 = vpop.f32.mrf.mxu2  ;;  %v488_v54 = vpop.f32.mrf.mxu3 }
  0xc2   : > { %v3234_v1 = vadd.f32 %v459_v55, %v359_v27  ;;  %v3236_v9 = vadd.f32 %v488_v54, %v360_v44 }
  0xc4   : > { %4009 = vst [vmem:[#allocation46_spill] sm:$0xff] %v3234_v1  ;;  %v404_v10 = vpop.f32.mrf.mxu0  ;;  %v433_v6 = vpop.f32.mrf.mxu1 }
  0xc5   : > { %4010 = vst [vmem:[#allocation47_spill] sm:$0xff] %v3236_v9  ;;  %v3238_v0 = vadd.f32 %v404_v10, %v357_v2  ;;  %v3240_v63 = vadd.f32 %v433_v6, %v358_v8  ;;  %v454_v8 = vadd.f32 %v453_v5, %v359_v27 }
  0xc7   : > { %4011 = vst [vmem:[#allocation48_spill] sm:$0xff] %v3238_v0 }
  0xc8   : > { %4012 = vst [vmem:[#allocation49_spill] sm:$0xff] %v3240_v63 }
  0xcb   : > { %v462_v61 = vpop.f32.mrf.mxu2  ;;  %v491_v62 = vpop.f32.mrf.mxu3 }
  0xcc   : > { %v3242_v60 = vadd.f32 %v462_v61, %v359_v27  ;;  %v3244_v59 = vadd.f32 %v491_v62, %v360_v44 }
  0xce   : > { %4013 = vst [vmem:[#allocation50_spill] sm:$0xff] %v3242_v60  ;;  %v600_v57 = vpop.f32.mrf.mxu0  ;;  %v620_v53 = vpop.f32.mrf.mxu1 }
  0xcf   : > { %4014 = vst [vmem:[#allocation51_spill] sm:$0xff] %v3244_v59  ;;  %v663_v55 = vadd.f32 %v600_v57, %v396_v58  ;;  %v664_v1 = vadd.f32 %v620_v53, %v425_v56 }
  0xd1   : > { %v2432_v54 = vmul.f32 -1.442695, %v663_v55  ;;  %v2433_v9 = vmul.f32 -1.442695, %v664_v1 }
  0xd3   : > { %2512 = vpow2.f32 %v2432_v54 }
  0xd4   : > { %2514 = vpow2.f32 %v2433_v9 }
  0xd5   : > { %v660_v10 = vpop.f32.mrf.mxu3  ;;  %v640_v2 = vpop.f32.mrf.mxu2 }
  0xd6   : > { %v666_v6 = vadd.f32 %v660_v10, %v483_v52  ;;  %v665_v56 = vadd.f32 %v640_v2, %v454_v8 }
  0xd8   : > { %v2435_v63 = vmul.f32 -1.442695, %v666_v6 }
  0xd9   : > { %v2513_v0 = vpop.eup %2512 }
  0xda   : > { %v2515_v51 = vpop.eup %2514  ;;  %v683_v61 = vadd.f32 1.0, %v2513_v0  ;;  %2516 = vpow2.f32 %v2435_v63 }
  0xdb   : > { %v684_v62 = vadd.f32 1.0, %v2515_v51 }
  0xdc   : > { %2518 = vrcp.f32 %v683_v61  ;;  %v698_v9 = vand.u32 2147483648, %v683_v61  ;;  %v696_v51 = vand.u32 2147483647, %v683_v61  ;;  %vm692_vm3 = vweird.f32 %v683_v61 }
  0xdd   : > { %2520 = vrcp.f32 %v684_v62  ;;  %v713_v58 = vand.u32 2147483648, %v684_v62  ;;  %v711_v55 = vand.u32 2147483647, %v684_v62  ;;  %vm707_vm4 = vweird.f32 %v684_v62 }
  0xde   : > { %v699_v27 = vor.u32 1.1754944e-38, %v698_v9  ;;  %vm697_vm7 = vcmp.eq.f32.partialorder %v696_v51, 8.507059e+37 }
  0xdf   : > { %v714_v2 = vor.u32 1.1754944e-38, %v713_v58  ;;  %vm712_vm8 = vcmp.eq.f32.partialorder %v711_v55, 8.507059e+37 }
  0xe0   : > { %v2517_v4 = vpop.eup %2516 }
  0xe1   : > { %v686_v57 = vadd.f32 1.0, %v2517_v4  ;;  %v575_v4 = vld [vmem:[#allocation5 + $0x8] sm:$0xff] }
  0xe2   : > { %v2519_v53 = vpop.eup %2518 }
  0xe3   : > { %v2521_v3 = vpop.eup %2520  ;;  %v688_v1 = vmul.f32 %v2519_v53, %v683_v61  ;;  %2522 = vrcp.f32 %v686_v57  ;;  %vm693_vm1 = vweird.f32 %v2519_v53  ;;  %v743_v9 = vand.u32 2147483648, %v686_v57 }
  0xe4   : > { %v703_v7 = vmul.f32 %v2521_v3, %v684_v62  ;;  %2524 = vtanh.f32 %v665_v56  ;;  %vm708_vm2 = vweird.f32 %v2521_v3  ;;  %vm694_vm5 = vmor %vm692_vm3, %vm693_vm1  ;;  %vm737_vm10 = vweird.f32 %v686_v57 }
  0xe5   : > { %v689_v44 = vsub.f32 1.0, %v688_v1  ;;  %vm709_vm6 = vmor %vm707_vm4, %vm708_vm2  ;;  %v741_v58 = vand.u32 2147483647, %v686_v57  ;;  %v744_v51 = vor.u32 1.1754944e-38, %v743_v9 }
  0xe6   : > { %v704_v52 = vsub.f32 1.0, %v703_v7 }
  0xe7   : > { %v690_v0 = vmul.f32 %v2519_v53, %v689_v44  ;;  %vm742_vm12 = vcmp.eq.f32.partialorder %v741_v58, 8.507059e+37 }
  0xe8   : > { %v705_v63 = vmul.f32 %v2521_v3, %v704_v52 }
  0xe9   : > { %v2523_v54 = vpop.eup %2522  ;;  %v691_v5 = vadd.f32 %v2519_v53, %v690_v0 }
  0xea   : > { %v706_v10 = vadd.f32 %v2521_v3, %v705_v63  ;;  %v733_v6 = vmul.f32 %v2523_v54, %v686_v57  ;;  %v2525_v56 = vpop.eup %2524  ;;  %vm738_vm9 = vweird.f32 %v2523_v54 }
  0xeb   : > { %v695_v8 = vsel %vm694_vm5, %v2519_v53, %v691_v5  ;;  %vm739_vm11 = vmor %vm737_vm10, %vm738_vm9 }
  0xec   : > { %v700_v1 = vsel %vm697_vm7, %v699_v27, %v695_v8  ;;  %v710_v7 = vsel %vm709_vm6, %v2521_v3, %v706_v10  ;;  %v734_v44 = vsub.f32 1.0, %v733_v6 }
  0xed   : > { %v715_v52 = vsel %vm712_vm8, %v714_v2, %v710_v7  ;;  %v752_v60 = vmul.f32 %v2525_v56, %v700_v1  ;;  %v4044_v2 = vld [vmem:[#allocation42_spill] sm:$0xff] }
  0xee   : > { %v751_v59 = vmul.f32 %v715_v52, %v575_v4  ;;  %v735_v0 = vmul.f32 %v2523_v54, %v734_v44 }
  0xf0   : > { %v3246_v61 = vadd.f32 %v752_v60, %v751_v59  ;;  %v736_v62 = vadd.f32 %v2523_v54, %v735_v0 }
  0xf2   : > { %2526 = vtanh.f32 %v3246_v61  ;;  %v740_v53 = vsel %vm739_vm11, %v2523_v54, %v736_v62 }
  0xf3   : > { %v745_v63 = vsel %vm742_vm12, %v744_v51, %v740_v53 }
  0xf8   : > { %v2527_v3 = vpop.eup %2526 }
  0xf9   : > { %v3249_v55 = vmul.f32 %v2527_v3, %v745_v63 }
  0xfb   : > { %780 = vmatmul.f32.vlgmr.msra.gmra.mxu0 %v3249_v55  ;;  %800 = vmatmul.f32.vlgmr.msra.gmra.mxu1 %v3249_v55 }
  0xfc   : > { %820 = vmatmul.f32.vlgmr.msra.gmra.mxu2 %v3249_v55  ;;  %840 = vmatmul.f32.vlgmr.msra.gmra.mxu3 %v3249_v55 }
  0xfd   : > { %1128 = vmatpush.msra.mxu0 %v2880_v11  ;;  %1148 = vmatpush.msra.mxu1 %v2882_v12  ;;  %v4015_v11 = vld [vmem:[#allocation14_spill] sm:$0xff]  ;;  %v4016_v12 = vld [vmem:[#allocation15_spill] sm:$0xff] }
  0xfe   : > { %1168 = vmatpush.msra.mxu2 %v2886_v13  ;;  %1188 = vmatpush.msra.mxu3 %v2888_v14  ;;  %v4017_v13 = vld [vmem:[#allocation16_spill] sm:$0xff]  ;;  %v4018_v14 = vld [vmem:[#allocation17_spill] sm:$0xff] }
  0xff   : > { %1129 = vmatpush.msra.mxu0 %v2892_v15  ;;  %1149 = vmatpush.msra.mxu1 %v2894_v16  ;;  %v4019_v15 = vld [vmem:[#allocation18_spill] sm:$0xff]  ;;  %v4020_v16 = vld [vmem:[#allocation19_spill] sm:$0xff] }
 0x100   : > { %1169 = vmatpush.msra.mxu2 %v2898_v17  ;;  %1189 = vmatpush.msra.mxu3 %v2900_v18  ;;  %v4021_v17 = vld [vmem:[#allocation20_spill] sm:$0xff]  ;;  %v4022_v18 = vld [vmem:[#allocation21_spill] sm:$0xff] }
 0x101   : > { %1130 = vmatpush.msra.mxu0 %v2904_v19  ;;  %1150 = vmatpush.msra.mxu1 %v2906_v20  ;;  %v4023_v19 = vld [vmem:[#allocation22_spill] sm:$0xff]  ;;  %v4024_v20 = vld [vmem:[#allocation23_spill] sm:$0xff] }
 0x102   : > { %1170 = vmatpush.msra.mxu2 %v2910_v21  ;;  %1190 = vmatpush.msra.mxu3 %v2912_v22  ;;  %v4025_v21 = vld [vmem:[#allocation24_spill] sm:$0xff]  ;;  %v4026_v22 = vld [vmem:[#allocation25_spill] sm:$0xff] }
 0x103   : > { %1131 = vmatpush.msra.mxu0 %v2916_v23  ;;  %1151 = vmatpush.msra.mxu1 %v2918_v24  ;;  %v4027_v23 = vld [vmem:[#allocation26_spill] sm:$0xff]  ;;  %v4028_v24 = vld [vmem:[#allocation27_spill] sm:$0xff] }
 0x104   : > { %1171 = vmatpush.msra.mxu2 %v2922_v25  ;;  %1191 = vmatpush.msra.mxu3 %v2924_v26  ;;  %v4029_v25 = vld [vmem:[#allocation28_spill] sm:$0xff]  ;;  %v4030_v26 = vld [vmem:[#allocation29_spill] sm:$0xff] }
 0x105   : > { %1132 = vmatpush.msra.mxu0 %v2933_v28  ;;  %1152 = vmatpush.msra.mxu1 %v2935_v29  ;;  %v4031_v28 = vld [vmem:[#allocation30_spill] sm:$0xff]  ;;  %v4032_v29 = vld [vmem:[#allocation31_spill] sm:$0xff] }
 0x106   : > { %1172 = vmatpush.msra.mxu2 %v2939_v30  ;;  %1192 = vmatpush.msra.mxu3 %v2941_v31  ;;  %v4033_v30 = vld [vmem:[#allocation32_spill] sm:$0xff]  ;;  %v4034_v31 = vld [vmem:[#allocation33_spill] sm:$0xff] }
 0x107   : > { %1133 = vmatpush.msra.mxu0 %v2945_v32  ;;  %1153 = vmatpush.msra.mxu1 %v2947_v33  ;;  %v4035_v32 = vld [vmem:[#allocation34_spill] sm:$0xff]  ;;  %v4036_v33 = vld [vmem:[#allocation35_spill] sm:$0xff] }
 0x108   : > { %1173 = vmatpush.msra.mxu2 %v2951_v34  ;;  %1193 = vmatpush.msra.mxu3 %v2953_v35  ;;  %v4037_v34 = vld [vmem:[#allocation36_spill] sm:$0xff]  ;;  %v4038_v35 = vld [vmem:[#allocation37_spill] sm:$0xff] }
 0x109   : > { %1134 = vmatpush.msra.mxu0 %v2957_v36  ;;  %1154 = vmatpush.msra.mxu1 %v2959_v37  ;;  %v4039_v36 = vld [vmem:[#allocation38_spill] sm:$0xff]  ;;  %v4040_v37 = vld [vmem:[#allocation39_spill] sm:$0xff] }
 0x10a   : > { %1174 = vmatpush.msra.mxu2 %v2963_v38  ;;  %1194 = vmatpush.msra.mxu3 %v2965_v39 }
 0x10b   : > { %1135 = vmatpush.msra.mxu0 %v2969_v40  ;;  %1155 = vmatpush.msra.mxu1 %v2971_v41  ;;  %v4041_v40 = vld [vmem:[#allocation40_spill] sm:$0xff] }
 0x10c   : > { %1175 = vmatpush.msra.mxu2 %v2975_v42  ;;  %1195 = vmatpush.msra.mxu3 %v2977_v43  ;;  %v4042_v42 = vld [vmem:[#allocation41_spill] sm:$0xff] }
 0x10d   : > { %1136 = vmatpush.msra.mxu0 %v2986_v45  ;;  %1156 = vmatpush.msra.mxu1 %v2988_v46 }
 0x10e   : > { %1176 = vmatpush.msra.mxu2 %v2992_v47  ;;  %1196 = vmatpush.msra.mxu3 %v2994_v48  ;;  %v4043_v48 = vld [vmem:[#allocation43_spill] sm:$0xff] }
 0x10f   : > { %1137 = vmatpush.msra.mxu0 %v2998_v49  ;;  %1157 = vmatpush.msra.mxu1 %v3000_v50 }
 0x110   : > { %1177 = vmatpush.msra.mxu2 %v4015_v11  ;;  %1197 = vmatpush.msra.mxu3 %v4016_v12 }
 0x111   : > { %1138 = vmatpush.msra.mxu0 %v4017_v13  ;;  %1158 = vmatpush.msra.mxu1 %v4018_v14 }
 0x112   : > { %1178 = vmatpush.msra.mxu2 %v4019_v15  ;;  %1198 = vmatpush.msra.mxu3 %v4020_v16 }
 0x113   : > { %1139 = vmatpush.msra.mxu0 %v4021_v17  ;;  %1159 = vmatpush.msra.mxu1 %v4022_v18 }
 0x114   : > { %1179 = vmatpush.msra.mxu2 %v4023_v19  ;;  %1199 = vmatpush.msra.mxu3 %v4024_v20 }
 0x115   : > { %1140 = vmatpush.msra.mxu0 %v4025_v21  ;;  %1160 = vmatpush.msra.mxu1 %v4026_v22 }
 0x116   : > { %1180 = vmatpush.msra.mxu2 %v4027_v23  ;;  %1200 = vmatpush.msra.mxu3 %v4028_v24 }
 0x117   : > { %1141 = vmatpush.msra.mxu0 %v4029_v25  ;;  %1161 = vmatpush.msra.mxu1 %v4030_v26 }
 0x118   : > { %1181 = vmatpush.msra.mxu2 %v4031_v28  ;;  %1201 = vmatpush.msra.mxu3 %v4032_v29 }
 0x119   : > { %1142 = vmatpush.msra.mxu0 %v4033_v30  ;;  %1162 = vmatpush.msra.mxu1 %v4034_v31 }
 0x11a   : > { %1182 = vmatpush.msra.mxu2 %v4035_v32  ;;  %1202 = vmatpush.msra.mxu3 %v4036_v33  ;;  %v1366_v33 = vld [vmem:[#allocation7 + $0x1e8] sm:$0xff] }
 0x11b   : > { %1143 = vmatpush.msra.mxu0 %v4037_v34  ;;  %1163 = vmatpush.msra.mxu1 %v4038_v35  ;;  %v1367_v34 = vld [vmem:[#allocation7 + $0x1f0] sm:$0xff]  ;;  %v1368_v35 = vld [vmem:[#allocation7 + $0x1f8] sm:$0xff] }
 0x11c   : > { %1183 = vmatpush.msra.mxu2 %v4039_v36  ;;  %1203 = vmatpush.msra.mxu3 %v4040_v37  ;;  %v1361_v36 = vld [vmem:[#allocation7 + $0x1c0] sm:$0xff]  ;;  %v1362_v37 = vld [vmem:[#allocation7 + $0x1c8] sm:$0xff] }
 0x178   : > { %v781_v38 = vpop.f32.mrf.mxu0  ;;  %v801_v39 = vpop.f32.mrf.mxu1 }
 0x179   : > { %v844_v41 = vadd.f32 %v781_v38, %v4041_v40  ;;  %v845_v43 = vadd.f32 %v801_v39, %v4042_v42  ;;  %v1363_v38 = vld [vmem:[#allocation7 + $0x1d0] sm:$0xff]  ;;  %v1364_v39 = vld [vmem:[#allocation7 + $0x1d8] sm:$0xff]  ;;  %v1357_v40 = vld [vmem:[#allocation7 + $0x1a0] sm:$0xff] }
 0x17a   : > { %v1359_v42 = vld [vmem:[#allocation7 + $0x1b0] sm:$0xff] }
 0x17b   : > { %v2436_v45 = vmul.f32 -1.442695, %v844_v41  ;;  %v2437_v46 = vmul.f32 -1.442695, %v845_v43  ;;  %v1358_v41 = vld [vmem:[#allocation7 + $0x1a8] sm:$0xff]  ;;  %v1360_v43 = vld [vmem:[#allocation7 + $0x1b8] sm:$0xff] }
 0x17d   : > { %2528 = vpow2.f32 %v2436_v45  ;;  %v1353_v45 = vld [vmem:[#allocation7 + $0x180] sm:$0xff] }
 0x17e   : > { %2530 = vpow2.f32 %v2437_v46  ;;  %v1354_v46 = vld [vmem:[#allocation7 + $0x188] sm:$0xff] }
 0x17f   : > { %v841_v47 = vpop.f32.mrf.mxu3  ;;  %v821_v5 = vpop.f32.mrf.mxu2 }
 0x180   : > { %v847_v49 = vadd.f32 %v841_v47, %v4043_v48  ;;  %v846_v4 = vadd.f32 %v821_v5, %v4044_v2  ;;  %v1355_v47 = vld [vmem:[#allocation7 + $0x190] sm:$0xff]  ;;  %v1356_v48 = vld [vmem:[#allocation7 + $0x198] sm:$0xff]  ;;  %v1345_v5 = vld [vmem:[#allocation7 + $0x140] sm:$0xff] }
 0x182   : > { %v2439_v50 = vmul.f32 -1.442695, %v847_v49  ;;  %v1349_v49 = vld [vmem:[#allocation7 + $0x160] sm:$0xff] }
 0x183   : > { %v2529_v60 = vpop.eup %2528 }
 0x184   : > { %v2531_v59 = vpop.eup %2530  ;;  %v864_v57 = vadd.f32 1.0, %v2529_v60  ;;  %2532 = vpow2.f32 %v2439_v50  ;;  %v1350_v50 = vld [vmem:[#allocation7 + $0x168] sm:$0xff]  ;;  %v1351_v60 = vld [vmem:[#allocation7 + $0x170] sm:$0xff] }
 0x185   : > { %v865_v54 = vadd.f32 1.0, %v2531_v59  ;;  %v1352_v59 = vld [vmem:[#allocation7 + $0x178] sm:$0xff] }
 0x186   : > { %2534 = vrcp.f32 %v864_v57  ;;  %v879_v52 = vand.u32 2147483648, %v864_v57  ;;  %v877_v9 = vand.u32 2147483647, %v864_v57  ;;  %vm873_vm15 = vweird.f32 %v864_v57 }
 0x187   : > { %2536 = vrcp.f32 %v865_v54  ;;  %v894_v0 = vand.u32 2147483648, %v865_v54  ;;  %v892_v53 = vand.u32 2147483647, %v865_v54  ;;  %vm888_vm0 = vweird.f32 %v865_v54 }
 0x188   : > { %v880_v63 = vor.u32 1.1754944e-38, %v879_v52  ;;  %vm878_vm3 = vcmp.eq.f32.partialorder %v877_v9, 8.507059e+37  ;;  %v1337_v9 = vld [vmem:[#allocation7 + $0x100] sm:$0xff] }
 0x189   : > { %v895_v13 = vor.u32 1.1754944e-38, %v894_v0  ;;  %vm893_vm4 = vcmp.eq.f32.partialorder %v892_v53, 8.507059e+37  ;;  %v1339_v53 = vld [vmem:[#allocation7 + $0x110] sm:$0xff] }
 0x18a   : > { %v2533_v27 = vpop.eup %2532 }
 0x18b   : > { %v867_v10 = vadd.f32 1.0, %v2533_v27  ;;  %v1346_v27 = vld [vmem:[#allocation7 + $0x148] sm:$0xff] }
 0x18c   : > { %v2535_v6 = vpop.eup %2534 }
 0x18d   : > { %v2537_v8 = vpop.eup %2536  ;;  %v869_v56 = vmul.f32 %v2535_v6, %v864_v57  ;;  %2538 = vrcp.f32 %v867_v10  ;;  %vm874_vm13 = vweird.f32 %v2535_v6  ;;  %v924_v25 = vand.u32 2147483648, %v867_v10 }
 0x18e   : > { %v884_v1 = vmul.f32 %v2537_v8, %v865_v54  ;;  %2540 = vtanh.f32 %v846_v4  ;;  %vm889_vm14 = vweird.f32 %v2537_v8  ;;  %vm875_vm1 = vmor %vm873_vm15, %vm874_vm13  ;;  %vm918_vm6 = vweird.f32 %v867_v10  ;;  %v4046_v4 = vld [vmem:[#allocation45_spill] sm:$0xff] }
 0x18f   : > { %v870_v7 = vsub.f32 1.0, %v869_v56  ;;  %vm890_vm2 = vmor %vm888_vm0, %vm889_vm14  ;;  %v922_v26 = vand.u32 2147483647, %v867_v10  ;;  %v925_v29 = vor.u32 1.1754944e-38, %v924_v25  ;;  %v1348_v56 = vld [vmem:[#allocation7 + $0x158] sm:$0xff] }
 0x190   : > { %v885_v44 = vsub.f32 1.0, %v884_v1  ;;  %v1341_v1 = vld [vmem:[#allocation7 + $0x120] sm:$0xff] }
 0x191   : > { %v871_v62 = vmul.f32 %v2535_v6, %v870_v7  ;;  %vm923_vm8 = vcmp.eq.f32.partialorder %v922_v26, 8.507059e+37  ;;  %v1342_v7 = vld [vmem:[#allocation7 + $0x128] sm:$0xff]  ;;  %v1328_v26 = vld [vmem:[#allocation7 + $0xb8] sm:$0xff] }
 0x192   : > { %v886_v58 = vmul.f32 %v2537_v8, %v885_v44  ;;  %v1343_v44 = vld [vmem:[#allocation7 + $0x130] sm:$0xff] }
 0x193   : > { %v2539_v51 = vpop.eup %2538  ;;  %v872_v3 = vadd.f32 %v2535_v6, %v871_v62  ;;  %v1344_v62 = vld [vmem:[#allocation7 + $0x138] sm:$0xff] }
 0x194   : > { %v887_v11 = vadd.f32 %v2537_v8, %v886_v58  ;;  %v914_v12 = vmul.f32 %v2539_v51, %v867_v10  ;;  %v2541_v15 = vpop.eup %2540  ;;  %vm919_vm5 = vweird.f32 %v2539_v51  ;;  %v1347_v10 = vld [vmem:[#allocation7 + $0x150] sm:$0xff]  ;;  %v1338_v58 = vld [vmem:[#allocation7 + $0x108] sm:$0xff] }
 0x195   : > { %v876_v14 = vsel %vm875_vm1, %v2535_v6, %v872_v3  ;;  %vm920_vm7 = vmor %vm918_vm6, %vm919_vm5  ;;  %v4045_v6 = vld [vmem:[#allocation44_spill] sm:$0xff]  ;;  %v1333_v3 = vld [vmem:[#allocation7 + $0xe0] sm:$0xff] }
 0x196   : > { %v881_v16 = vsel %vm878_vm3, %v880_v63, %v876_v14  ;;  %v891_v17 = vsel %vm890_vm2, %v2537_v8, %v887_v11  ;;  %v915_v18 = vsub.f32 1.0, %v914_v12  ;;  %v1334_v63 = vld [vmem:[#allocation7 + $0xe8] sm:$0xff]  ;;  %v1335_v11 = vld [vmem:[#allocation7 + $0xf0] sm:$0xff] }
 0x197   : > { %v896_v19 = vsel %vm893_vm4, %v895_v13, %v891_v17  ;;  %v933_v20 = vmul.f32 %v2541_v15, %v881_v16  ;;  %v1336_v13 = vld [vmem:[#allocation7 + $0xf8] sm:$0xff]  ;;  %v4047_v14 = vld [vmem:[#allocation47_spill] sm:$0xff]  ;;  %v1329_v16 = vld [vmem:[#allocation7 + $0xc0] sm:$0xff] }
 0x198   : > { %v932_v21 = vmul.f32 %v896_v19, %v3246_v61  ;;  %v916_v22 = vmul.f32 %v2539_v51, %v915_v18  ;;  %v1365_v61 = vld [vmem:[#allocation7 + $0x1e0] sm:$0xff]  ;;  %v1330_v17 = vld [vmem:[#allocation7 + $0xc8] sm:$0xff]  ;;  %v1331_v18 = vld [vmem:[#allocation7 + $0xd0] sm:$0xff] }
 0x199   : > { %v1332_v19 = vld [vmem:[#allocation7 + $0xd8] sm:$0xff] }
 0x19a   : > { %v3324_v23 = vadd.f32 %v933_v20, %v932_v21  ;;  %v917_v24 = vadd.f32 %v2539_v51, %v916_v22  ;;  %v1325_v21 = vld [vmem:[#allocation7 + $0xa0] sm:$0xff]  ;;  %v1326_v22 = vld [vmem:[#allocation7 + $0xa8] sm:$0xff] }
 0x19c   : > { %2542 = vtanh.f32 %v3324_v23  ;;  %v921_v28 = vsel %vm920_vm7, %v2539_v51, %v917_v24  ;;  %v1340_v51 = vld [vmem:[#allocation7 + $0x118] sm:$0xff]  ;;  %v1327_v24 = vld [vmem:[#allocation7 + $0xb0] sm:$0xff] }
 0x19d   : > { %v926_v31 = vsel %vm923_vm8, %v925_v29, %v921_v28  ;;  %v1321_v28 = vld [vmem:[#allocation7 + $0x80] sm:$0xff]  ;;  %v1322_v29 = vld [vmem:[#allocation7 + $0x88] sm:$0xff] }
 0x1a2   : > { %v2543_v30 = vpop.eup %2542 }
 0x1a3   : > { %v3327_v32 = vmul.f32 %v2543_v30, %v926_v31 }
 0x1a5   : > { %962 = vmatmul.f32.vlgmr.msrb.gmra.mxu0 %v3327_v32  ;;  %982 = vmatmul.f32.vlgmr.msrb.gmra.mxu1 %v3327_v32 }
 0x1a6   : > { %1002 = vmatmul.f32.vlgmr.msrb.gmra.mxu2 %v3327_v32  ;;  %1022 = vmatmul.f32.vlgmr.msrb.gmra.mxu3 %v3327_v32 }
 0x1a7   : > { %1384 = vmatpush.msrb.mxu0 %v1365_v61  ;;  %1413 = vmatpush.msrb.mxu1 %v1366_v33  ;;  %v1323_v61 = vld [vmem:[#allocation7 + $0x90] sm:$0xff]  ;;  %v1324_v33 = vld [vmem:[#allocation7 + $0x98] sm:$0xff] }
 0x1a8   : > { %1442 = vmatpush.msrb.mxu2 %v1367_v34  ;;  %1471 = vmatpush.msrb.mxu3 %v1368_v35  ;;  %v1317_v35 = vld [vmem:[#allocation7 + $0x60] sm:$0xff] }
 0x1a9   : > { %1385 = vmatpush.msrb.mxu0 %v1361_v36  ;;  %1414 = vmatpush.msrb.mxu1 %v1362_v37  ;;  %v1318_v36 = vld [vmem:[#allocation7 + $0x68] sm:$0xff]  ;;  %v1319_v37 = vld [vmem:[#allocation7 + $0x70] sm:$0xff] }
 0x1aa   : > { %1443 = vmatpush.msrb.mxu2 %v1363_v38  ;;  %1472 = vmatpush.msrb.mxu3 %v1364_v39  ;;  %v1320_v38 = vld [vmem:[#allocation7 + $0x78] sm:$0xff]  ;;  %v1313_v39 = vld [vmem:[#allocation7 + $0x40] sm:$0xff] }
 0x1ab   : > { %1386 = vmatpush.msrb.mxu0 %v1357_v40  ;;  %1415 = vmatpush.msrb.mxu1 %v1358_v41  ;;  %v1314_v40 = vld [vmem:[#allocation7 + $0x48] sm:$0xff]  ;;  %v1315_v41 = vld [vmem:[#allocation7 + $0x50] sm:$0xff] }
 0x1ac   : > { %1444 = vmatpush.msrb.mxu2 %v1359_v42  ;;  %1473 = vmatpush.msrb.mxu3 %v1360_v43  ;;  %v1316_v42 = vld [vmem:[#allocation7 + $0x58] sm:$0xff]  ;;  %v1309_v43 = vld [vmem:[#allocation7 + $0x20] sm:$0xff] }
 0x1ad   : > { %1387 = vmatpush.msrb.mxu0 %v1353_v45  ;;  %1416 = vmatpush.msrb.mxu1 %v1354_v46  ;;  %v1310_v46 = vld [vmem:[#allocation7 + $0x28] sm:$0xff] }
 0x1ae   : > { %1445 = vmatpush.msrb.mxu2 %v1355_v47  ;;  %1474 = vmatpush.msrb.mxu3 %v1356_v48  ;;  %v1311_v47 = vld [vmem:[#allocation7 + $0x30] sm:$0xff]  ;;  %v1312_v48 = vld [vmem:[#allocation7 + $0x38] sm:$0xff] }
 0x1af   : > { %1388 = vmatpush.msrb.mxu0 %v1349_v49  ;;  %1417 = vmatpush.msrb.mxu1 %v1350_v50  ;;  %v1305_v50 = vld [vmem:[#allocation7] sm:$0xff] }
 0x1b0   : > { %1446 = vmatpush.msrb.mxu2 %v1351_v60  ;;  %1475 = vmatpush.msrb.mxu3 %v1352_v59  ;;  %v1306_v60 = vld [vmem:[#allocation7 + $0x8] sm:$0xff] }
 0x1b1   : > { %1389 = vmatpush.msrb.mxu0 %v1345_v5  ;;  %1418 = vmatpush.msrb.mxu1 %v1346_v27  ;;  %v4048_v27 = vld [vmem:[#allocation46_spill] sm:$0xff] }
 0x1b2   : > { %1447 = vmatpush.msrb.mxu2 %v1347_v10  ;;  %1476 = vmatpush.msrb.mxu3 %v1348_v56 }
 0x1b3   : > { %1390 = vmatpush.msrb.mxu0 %v1341_v1  ;;  %1419 = vmatpush.msrb.mxu1 %v1342_v7 }
 0x1b4   : > { %1448 = vmatpush.msrb.mxu2 %v1343_v44  ;;  %1477 = vmatpush.msrb.mxu3 %v1344_v62 }
 0x1b5   : > { %1391 = vmatpush.msrb.mxu0 %v1337_v9  ;;  %1420 = vmatpush.msrb.mxu1 %v1338_v58 }
 0x1b6   : > { %1449 = vmatpush.msrb.mxu2 %v1339_v53  ;;  %1478 = vmatpush.msrb.mxu3 %v1340_v51 }
 0x1b7   : > { %1392 = vmatpush.msrb.mxu0 %v1333_v3  ;;  %1421 = vmatpush.msrb.mxu1 %v1334_v63 }
 0x1b8   : > { %1450 = vmatpush.msrb.mxu2 %v1335_v11  ;;  %1479 = vmatpush.msrb.mxu3 %v1336_v13 }
 0x1b9   : > { %1393 = vmatpush.msrb.mxu0 %v1329_v16  ;;  %1422 = vmatpush.msrb.mxu1 %v1330_v17 }
 0x1ba   : > { %1451 = vmatpush.msrb.mxu2 %v1331_v18  ;;  %1480 = vmatpush.msrb.mxu3 %v1332_v19 }
 0x1bb   : > { %1394 = vmatpush.msrb.mxu0 %v1325_v21  ;;  %1423 = vmatpush.msrb.mxu1 %v1326_v22 }
 0x1bc   : > { %1452 = vmatpush.msrb.mxu2 %v1327_v24  ;;  %1481 = vmatpush.msrb.mxu3 %v1328_v26 }
 0x1bd   : > { %1395 = vmatpush.msrb.mxu0 %v1321_v28  ;;  %1424 = vmatpush.msrb.mxu1 %v1322_v29 }
 0x1be   : > { %1453 = vmatpush.msrb.mxu2 %v1323_v61  ;;  %1482 = vmatpush.msrb.mxu3 %v1324_v33  ;;  %v3367_v61 = vld [vmem:[#allocation9 + $0x3f0] sm:$0xff]  ;;  %v3377_v33 = vld [vmem:[#allocation9 + $0x3c8] sm:$0xff] }
 0x1bf   : > { %1396 = vmatpush.msrb.mxu0 %v1317_v35  ;;  %1425 = vmatpush.msrb.mxu1 %v1318_v36  ;;  %v3383_v35 = vld [vmem:[#allocation9 + $0x3d8] sm:$0xff]  ;;  %v3387_v36 = vld [vmem:[#allocation9 + $0x3a0] sm:$0xff] }
 0x1c0   : > { %1454 = vmatpush.msrb.mxu2 %v1319_v37  ;;  %1483 = vmatpush.msrb.mxu3 %v1320_v38  ;;  %v3389_v37 = vld [vmem:[#allocation9 + $0x3a8] sm:$0xff]  ;;  %v3391_v38 = vld [vmem:[#allocation9 + $0x3b0] sm:$0xff] }
 0x1c1   : > { %1397 = vmatpush.msrb.mxu0 %v1313_v39  ;;  %1426 = vmatpush.msrb.mxu1 %v1314_v40  ;;  %4051 = vst [vmem:[#allocation16_spill] sm:$0xff] %v3389_v37  ;;  %v3395_v39 = vld [vmem:[#allocation9 + $0x3b8] sm:$0xff]  ;;  %v3399_v40 = vld [vmem:[#allocation9 + $0x380] sm:$0xff] }
 0x1c2   : > { %1455 = vmatpush.msrb.mxu2 %v1315_v41  ;;  %1484 = vmatpush.msrb.mxu3 %v1316_v42  ;;  %4052 = vst [vmem:[#allocation17_spill] sm:$0xff] %v3391_v38  ;;  %v3401_v41 = vld [vmem:[#allocation9 + $0x388] sm:$0xff]  ;;  %v3403_v42 = vld [vmem:[#allocation9 + $0x390] sm:$0xff] }
 0x1c3   : > { %1398 = vmatpush.msrb.mxu0 %v1309_v43  ;;  %1427 = vmatpush.msrb.mxu1 %v1310_v46  ;;  %4053 = vst [vmem:[#allocation18_spill] sm:$0xff] %v3395_v39  ;;  %v3407_v43 = vld [vmem:[#allocation9 + $0x398] sm:$0xff]  ;;  %v3413_v46 = vld [vmem:[#allocation9 + $0x368] sm:$0xff] }
 0x1c4   : > { %1456 = vmatpush.msrb.mxu2 %v1311_v47  ;;  %1485 = vmatpush.msrb.mxu3 %v1312_v48  ;;  %v3415_v47 = vld [vmem:[#allocation9 + $0x370] sm:$0xff]  ;;  %v3419_v48 = vld [vmem:[#allocation9 + $0x378] sm:$0xff] }
 0x1c5   : > { %1399 = vmatpush.msrb.mxu0 %v1305_v50  ;;  %1428 = vmatpush.msrb.mxu1 %v1306_v60  ;;  %v3423_v60 = vld [vmem:[#allocation9 + $0x340] sm:$0xff] }
 0x222   : > { %v963_v57 = vpop.f32.mrf.mxu0  ;;  %v983_v54 = vpop.f32.mrf.mxu1 }
 0x223   : > { %v1026_v2 = vadd.f32 %v963_v57, %v4045_v6  ;;  %v1027_v8 = vadd.f32 %v983_v54, %v4046_v4  ;;  %v1307_v57 = vld [vmem:[#allocation7 + $0x10] sm:$0xff]  ;;  %v1308_v54 = vld [vmem:[#allocation7 + $0x18] sm:$0xff] }
 0x224   : > { %1457 = vmatpush.msrb.mxu2 %v1307_v57  ;;  %1486 = vmatpush.msrb.mxu3 %v1308_v54  ;;  %v3427_v57 = vld [vmem:[#allocation9 + $0x350] sm:$0xff] }
 0x225   : > { %v2440_v52 = vmul.f32 -1.442695, %v1026_v2  ;;  %v2441_v0 = vmul.f32 -1.442695, %v1027_v8  ;;  %v4054_v54 = vld [vmem:[#allocation48_spill] sm:$0xff] }
 0x227   : > { %2544 = vpow2.f32 %v2440_v52 }
 0x228   : > { %2546 = vpow2.f32 %v2441_v0 }
 0x229   : > { %v1023_v12 = vpop.f32.mrf.mxu3  ;;  %v1003_v45 = vpop.f32.mrf.mxu2 }
 0x22a   : > { %v1029_v15 = vadd.f32 %v1023_v12, %v4047_v14  ;;  %v1028_v10 = vadd.f32 %v1003_v45, %v4048_v27  ;;  %v3411_v45 = vld [vmem:[#allocation9 + $0x360] sm:$0xff]  ;;  %v4055_v27 = vld [vmem:[#allocation49_spill] sm:$0xff] }
 0x22c   : > { %v2443_v20 = vmul.f32 -1.442695, %v1029_v15 }
 0x22d   : > { %v2545_v25 = vpop.eup %2544 }
 0x22e   : > { %v2547_v30 = vpop.eup %2546  ;;  %v3336_v31 = vadd.f32 1.0, %v2545_v25  ;;  %2548 = vpow2.f32 %v2443_v20 }
 0x22f   : > { %v3338_v34 = vadd.f32 1.0, %v2547_v30 }
 0x230   : > { %2550 = vrcp.f32 %v3336_v31  ;;  %v1061_v1 = vand.u32 2147483648, %v3336_v31  ;;  %v1059_v52 = vand.u32 2147483647, %v3336_v31  ;;  %vm1055_vm11 = vweird.f32 %v3336_v31 }
 0x231   : > { %2552 = vrcp.f32 %v3338_v34  ;;  %v1076_v7 = vand.u32 2147483648, %v3338_v34  ;;  %v1074_v62 = vand.u32 2147483647, %v3338_v34  ;;  %vm1070_vm12 = vweird.f32 %v3338_v34 }
 0x232   : > { %v1062_v53 = vor.u32 1.1754944e-38, %v1061_v1  ;;  %vm1060_vm15 = vcmp.eq.f32.partialorder %v1059_v52, 8.507059e+37  ;;  %v3451_v52 = vld [vmem:[#allocation9 + $0x308] sm:$0xff] }
 0x233   : > { %v1077_v63 = vor.u32 1.1754944e-38, %v1076_v7  ;;  %vm1075_vm0 = vcmp.eq.f32.partialorder %v1074_v62, 8.507059e+37  ;;  %v3445_v7 = vld [vmem:[#allocation9 + $0x338] sm:$0xff] }
 0x234   : > { %v2549_v49 = vpop.eup %2548  ;;  %v3457_v62 = vld [vmem:[#allocation9 + $0x318] sm:$0xff] }
 0x235   : > { %v1049_v59 = vadd.f32 1.0, %v2549_v49 }
 0x236   : > { %v2551_v5 = vpop.eup %2550 }
 0x237   : > { %v2553_v6 = vpop.eup %2552  ;;  %v1051_v2 = vmul.f32 %v2551_v5, %v3336_v31  ;;  %2554 = vrcp.f32 %v1049_v59  ;;  %vm1056_vm9 = vweird.f32 %v2551_v5  ;;  %v1106_v22 = vand.u32 2147483648, %v1049_v59  ;;  %v3365_v31 = vld [vmem:[#allocation9 + $0x3e8] sm:$0xff] }
 0x238   : > { %v1066_v4 = vmul.f32 %v2553_v6, %v3338_v34  ;;  %2556 = vtanh.f32 %v1028_v10  ;;  %vm1071_vm10 = vweird.f32 %v2553_v6  ;;  %vm1057_vm13 = vmor %vm1055_vm11, %vm1056_vm9  ;;  %vm1100_vm2 = vweird.f32 %v1049_v59  ;;  %v3379_v34 = vld [vmem:[#allocation9 + $0x3d0] sm:$0xff] }
 0x239   : > { %v1052_v8 = vsub.f32 1.0, %v1051_v2  ;;  %vm1072_vm14 = vmor %vm1070_vm12, %vm1071_vm10  ;;  %v1104_v24 = vand.u32 2147483647, %v1049_v59  ;;  %v1107_v26 = vor.u32 1.1754944e-38, %v1106_v22  ;;  %4050 = vst [vmem:[#allocation15_spill] sm:$0xff] %v3379_v34  ;;  %v3437_v2 = vld [vmem:[#allocation9 + $0x320] sm:$0xff] }
 0x23a   : > { %v1067_v56 = vsub.f32 1.0, %v1066_v4  ;;  %v3439_v4 = vld [vmem:[#allocation9 + $0x328] sm:$0xff]  ;;  %v3494_v22 = vld [vmem:[#allocation9 + $0x280] sm:$0xff] }
 0x23b   : > { %v1053_v44 = vmul.f32 %v2551_v5, %v1052_v8  ;;  %vm1105_vm4 = vcmp.eq.f32.partialorder %v1104_v24, 8.507059e+37  ;;  %v3441_v8 = vld [vmem:[#allocation9 + $0x330] sm:$0xff]  ;;  %4063 = vst [vmem:[#allocation25_spill] sm:$0xff] %v3494_v22  ;;  %v3496_v24 = vld [vmem:[#allocation9 + $0x288] sm:$0xff] }
 0x23c   : > { %v1068_v0 = vmul.f32 %v2553_v6, %v1067_v56  ;;  %4064 = vst [vmem:[#allocation26_spill] sm:$0xff] %v3496_v24 }
 0x23d   : > { %v2555_v9 = vpop.eup %2554  ;;  %v1054_v58 = vadd.f32 %v2551_v5, %v1053_v44  ;;  %v3449_v44 = vld [vmem:[#allocation9 + $0x300] sm:$0xff] }
 0x23e   : > { %v1069_v51 = vadd.f32 %v2553_v6, %v1068_v0  ;;  %v1096_v3 = vmul.f32 %v2555_v9, %v1049_v59  ;;  %v2557_v12 = vpop.eup %2556  ;;  %vm1101_vm1 = vweird.f32 %v2555_v9  ;;  %v3425_v59 = vld [vmem:[#allocation9 + $0x348] sm:$0xff]  ;;  %v3453_v0 = vld [vmem:[#allocation9 + $0x310] sm:$0xff] }
 0x23f   : > { %v1058_v11 = vsel %vm1057_vm13, %v2551_v5, %v1054_v58  ;;  %vm1102_vm3 = vmor %vm1100_vm2, %vm1101_vm1  ;;  %v3461_v58 = vld [vmem:[#allocation9 + $0x2e8] sm:$0xff] }
 0x240   : > { %v1063_v13 = vsel %vm1060_vm15, %v1062_v53, %v1058_v11  ;;  %v1073_v14 = vsel %vm1072_vm14, %v2553_v6, %v1069_v51  ;;  %v1097_v15 = vsub.f32 1.0, %v1096_v3  ;;  %v3433_v6 = vld [vmem:[#allocation9 + $0x358] sm:$0xff]  ;;  %v3465_v53 = vld [vmem:[#allocation9 + $0x2f0] sm:$0xff]  ;;  %v3469_v3 = vld [vmem:[#allocation9 + $0x2c0] sm:$0xff] }
 0x241   : > { %v1078_v16 = vsel %vm1075_vm0, %v1077_v63, %v1073_v14  ;;  %v1115_v17 = vmul.f32 %v2557_v12, %v1063_v13  ;;  %v3467_v51 = vld [vmem:[#allocation9 + $0x2f8] sm:$0xff]  ;;  %v3473_v11 = vld [vmem:[#allocation9 + $0x2c8] sm:$0xff]  ;;  %v3475_v12 = vld [vmem:[#allocation9 + $0x2d0] sm:$0xff] }
 0x242   : > { %v1114_v18 = vmul.f32 %v1078_v16, %v3324_v23  ;;  %v1098_v19 = vmul.f32 %v2555_v9, %v1097_v15  ;;  %v3363_v23 = vld [vmem:[#allocation9 + $0x3e0] sm:$0xff]  ;;  %4056 = vst [vmem:[#allocation19_spill] sm:$0xff] %v3475_v12  ;;  %v3477_v13 = vld [vmem:[#allocation9 + $0x2d8] sm:$0xff]  ;;  %v4058_v14 = vld [vmem:[#allocation51_spill] sm:$0xff] }
 0x243   : > { %4057 = vst [vmem:[#allocation20_spill] sm:$0xff] %v3477_v13  ;;  %v3482_v16 = vld [vmem:[#allocation9 + $0x2a0] sm:$0xff] }
 0x244   : > { %v3352_v20 = vadd.f32 %v1115_v17, %v1114_v18  ;;  %v1099_v21 = vadd.f32 %v2555_v9, %v1098_v19  ;;  %4059 = vst [vmem:[#allocation21_spill] sm:$0xff] %v3482_v16  ;;  %v3484_v17 = vld [vmem:[#allocation9 + $0x2a8] sm:$0xff]  ;;  %v3488_v18 = vld [vmem:[#allocation9 + $0x2b0] sm:$0xff]  ;;  %v3490_v19 = vld [vmem:[#allocation9 + $0x2b8] sm:$0xff] }
 0x245   : > { %4060 = vst [vmem:[#allocation22_spill] sm:$0xff] %v3484_v17 }
 0x246   : > { %2558 = vtanh.f32 %v3352_v20  ;;  %v1103_v25 = vsel %vm1102_vm3, %v2555_v9, %v1099_v21  ;;  %v3459_v9 = vld [vmem:[#allocation9 + $0x2e0] sm:$0xff]  ;;  %4061 = vst [vmem:[#allocation23_spill] sm:$0xff] %v3488_v18 }
 0x247   : > { %v1108_v29 = vsel %vm1105_vm4, %v1107_v26, %v1103_v25  ;;  %4062 = vst [vmem:[#allocation24_spill] sm:$0xff] %v3490_v19  ;;  %v3500_v26 = vld [vmem:[#allocation9 + $0x290] sm:$0xff] }
 0x248   : > { %4065 = vst [vmem:[#allocation27_spill] sm:$0xff] %v3500_v26 }
 0x24c   : > { %v2559_v28 = vpop.eup %2558 }
 0x24d   : > { %v1118_v30 = vmul.f32 %v2559_v28, %v1108_v29  ;;  %v3502_v28 = vld [vmem:[#allocation9 + $0x298] sm:$0xff] }
 0x24e   : > { %4066 = vst [vmem:[#allocation28_spill] sm:$0xff] %v3502_v28 }
 0x24f   : > { %1144 = vmatmul.f32.vlgmr.msra.gmra.mxu0 %v1118_v30  ;;  %1164 = vmatmul.f32.vlgmr.msra.gmra.mxu1 %v1118_v30 }
 0x250   : > { %1184 = vmatmul.f32.vlgmr.msra.gmra.mxu2 %v1118_v30  ;;  %1204 = vmatmul.f32.vlgmr.msra.gmra.mxu3 %v1118_v30 }
 0x251   : > { %1589 = vmatpush.msra.mxu0 %v3363_v23  ;;  %1609 = vmatpush.msra.mxu1 %v3365_v31 }
 0x252   : > { %1629 = vmatpush.msra.mxu2 %v3367_v61 }
 0x253   : > { %1610 = vmatpush.msra.mxu1 %v3377_v33 }
 0x254   : > { %1630 = vmatpush.msra.mxu2 %v3379_v34 }
 0x255   : > { %1611 = vmatpush.msra.mxu1 %v3389_v37 }
 0x256   : > { %1631 = vmatpush.msra.mxu2 %v3391_v38 }
 0x257   : > { %1400 = vmatmul.f32.vlgmr.msrb.gmra.mxu0 %v3249_v55  ;;  %1429 = vmatmul.f32.vlgmr.msrb.gmra.mxu1 %v3249_v55 }
 0x258   : > { %1458 = vmatmul.f32.vlgmr.msrb.gmra.mxu2 %v3249_v55  ;;  %1487 = vmatmul.f32.vlgmr.msrb.gmra.mxu3 %v3249_v55  ;;  %v3371_v55 = vld [vmem:[#allocation9 + $0x3f8] sm:$0xff] }
 0x259   : > { %4049 = vst [vmem:[#allocation14_spill] sm:$0xff] %v3371_v55  ;;  %1649 = vmatpush.msra.mxu3 %v3371_v55  ;;  %1612 = vmatpush.msra.mxu1 %v3401_v41 }
 0x25a   : > { %1632 = vmatpush.msra.mxu2 %v3403_v42 }
 0x25b   : > { %1650 = vmatpush.msra.mxu3 %v3383_v35  ;;  %1613 = vmatpush.msra.mxu1 %v3413_v46 }
 0x25c   : > { %1633 = vmatpush.msra.mxu2 %v3415_v47 }
 0x25d   : > { %1651 = vmatpush.msra.mxu3 %v3395_v39  ;;  %1614 = vmatpush.msra.mxu1 %v3425_v59 }
 0x25e   : > { %1634 = vmatpush.msra.mxu2 %v3427_v57 }
 0x25f   : > { %1403 = vmatmul.f32.gmra.mxu0 %v3327_v32  ;;  %1432 = vmatmul.f32.gmra.mxu1 %v3327_v32 }
 0x260   : > { %1461 = vmatmul.f32.gmra.mxu2 %v3327_v32  ;;  %1490 = vmatmul.f32.gmra.mxu3 %v3327_v32  ;;  %v3375_v32 = vld [vmem:[#allocation9 + $0x3c0] sm:$0xff] }
 0x261   : > { %1590 = vmatpush.msra.mxu0 %v3375_v32  ;;  %1652 = vmatpush.msra.mxu3 %v3407_v43 }
 0x262   : > { %1615 = vmatpush.msra.mxu1 %v3439_v4  ;;  %1635 = vmatpush.msra.mxu2 %v3441_v8 }
 0x263   : > { %1591 = vmatpush.msra.mxu0 %v3387_v36  ;;  %1653 = vmatpush.msra.mxu3 %v3419_v48 }
 0x264   : > { %1616 = vmatpush.msra.mxu1 %v3451_v52  ;;  %1636 = vmatpush.msra.mxu2 %v3453_v0 }
 0x265   : > { %1592 = vmatpush.msra.mxu0 %v3399_v40  ;;  %1654 = vmatpush.msra.mxu3 %v3433_v6 }
 0x266   : > { %1617 = vmatpush.msra.mxu1 %v3461_v58  ;;  %1637 = vmatpush.msra.mxu2 %v3465_v53 }
 0x267   : > { %1406 = vmatmul.f32.gmra.mxu0 %v1118_v30  ;;  %1435 = vmatmul.f32.gmra.mxu1 %v1118_v30 }
 0x268   : > { %1464 = vmatmul.f32.gmra.mxu2 %v1118_v30  ;;  %1493 = vmatmul.f32.gmra.mxu3 %v1118_v30 }
 0x269   : > { %1593 = vmatpush.msra.mxu0 %v3411_v45  ;;  %1655 = vmatpush.msra.mxu3 %v3445_v7 }
 0x26a   : > { %1618 = vmatpush.msra.mxu1 %v3473_v11  ;;  %1638 = vmatpush.msra.mxu2 %v3475_v12 }
 0x26b   : > { %1594 = vmatpush.msra.mxu0 %v3423_v60  ;;  %1656 = vmatpush.msra.mxu3 %v3457_v62 }
 0x26c   : > { %1619 = vmatpush.msra.mxu1 %v3484_v17  ;;  %1639 = vmatpush.msra.mxu2 %v3488_v18 }
 0x26d   : > { %1595 = vmatpush.msra.mxu0 %v3437_v2  ;;  %1657 = vmatpush.msra.mxu3 %v3467_v51 }
 0x26e   : > { %1620 = vmatpush.msra.mxu1 %v3496_v24  ;;  %1640 = vmatpush.msra.mxu2 %v3500_v26  ;;  %v4083_v26 = vld [vmem:[#allocation50_spill] sm:$0xff] }
 0x26f   : > { %1596 = vmatpush.msra.mxu0 %v3449_v44  ;;  %1658 = vmatpush.msra.mxu3 %v3477_v13 }
 0x271   : > { %1597 = vmatpush.msra.mxu0 %v3459_v9  ;;  %1659 = vmatpush.msra.mxu3 %v3490_v19 }
 0x273   : > { %1598 = vmatpush.msra.mxu0 %v3469_v3  ;;  %1660 = vmatpush.msra.mxu3 %v3502_v28 }
 0x275   : > { %1599 = vmatpush.msra.mxu0 %v3482_v16 }
 0x277   : > { %1600 = vmatpush.msra.mxu0 %v3494_v22 }
 0x2cc   : > { %v1145_v49 = vpop.f32.mrf.mxu0  ;;  %v1165_v50 = vpop.f32.mrf.mxu1 }
 0x2cd   : > { %v1208_v5 = vadd.f32 %v1145_v49, %v4054_v54  ;;  %v1209_v10 = vadd.f32 %v1165_v50, %v4055_v27  ;;  %v3515_v50 = vld [vmem:[#allocation9 + $0x260] sm:$0xff]  ;;  %v3517_v54 = vld [vmem:[#allocation9 + $0x268] sm:$0xff]  ;;  %v3524_v27 = vld [vmem:[#allocation9 + $0x278] sm:$0xff] }
 0x2ce   : > { %4067 = vst [vmem:[#allocation29_spill] sm:$0xff] %v3515_v50  ;;  %1601 = vmatpush.msra.mxu0 %v3515_v50  ;;  %1621 = vmatpush.msra.mxu1 %v3517_v54 }
 0x2cf   : > { %v2444_v56 = vmul.f32 -1.442695, %v1208_v5  ;;  %v2445_v1 = vmul.f32 -1.442695, %v1209_v10  ;;  %4068 = vst [vmem:[#allocation30_spill] sm:$0xff] %v3517_v54  ;;  %v3519_v5 = vld [vmem:[#allocation9 + $0x270] sm:$0xff]  ;;  %1661 = vmatpush.msra.mxu3 %v3524_v27 }
 0x2d0   : > { %4069 = vst [vmem:[#allocation31_spill] sm:$0xff] %v3519_v5  ;;  %v3526_v10 = vld [vmem:[#allocation9 + $0x240] sm:$0xff]  ;;  %1641 = vmatpush.msra.mxu2 %v3519_v5  ;;  %v3550_v54 = vld [vmem:[#allocation9 + $0x208] sm:$0xff] }
 0x2d1   : > { %2560 = vpow2.f32 %v2444_v56  ;;  %4070 = vst [vmem:[#allocation32_spill] sm:$0xff] %v3524_v27  ;;  %v3528_v56 = vld [vmem:[#allocation9 + $0x248] sm:$0xff]  ;;  %1602 = vmatpush.msra.mxu0 %v3526_v10  ;;  %v3548_v27 = vld [vmem:[#allocation9 + $0x200] sm:$0xff] }
 0x2d2   : > { %2562 = vpow2.f32 %v2445_v1  ;;  %4071 = vst [vmem:[#allocation33_spill] sm:$0xff] %v3526_v10  ;;  %v3532_v1 = vld [vmem:[#allocation9 + $0x250] sm:$0xff]  ;;  %1622 = vmatpush.msra.mxu1 %v3528_v56  ;;  %v3558_v10 = vld [vmem:[#allocation9 + $0x218] sm:$0xff] }
 0x2d3   : > { %v1205_v63 = vpop.f32.mrf.mxu3  ;;  %4072 = vst [vmem:[#allocation34_spill] sm:$0xff] %v3528_v56  ;;  %1642 = vmatpush.msra.mxu2 %v3532_v1  ;;  %v3556_v56 = vld [vmem:[#allocation9 + $0x210] sm:$0xff] }
 0x2d4   : > { %v1211_v15 = vadd.f32 %v1205_v63, %v4058_v14  ;;  %4073 = vst [vmem:[#allocation35_spill] sm:$0xff] %v3532_v1  ;;  %v3534_v63 = vld [vmem:[#allocation9 + $0x258] sm:$0xff]  ;;  %v3536_v14 = vld [vmem:[#allocation9 + $0x220] sm:$0xff] }
 0x2d5   : > { %4074 = vst [vmem:[#allocation36_spill] sm:$0xff] %v3534_v63  ;;  %1662 = vmatpush.msra.mxu3 %v3534_v63  ;;  %1603 = vmatpush.msra.mxu0 %v3536_v14 }
 0x2d6   : > { %v2447_v21 = vmul.f32 -1.442695, %v1211_v15  ;;  %4075 = vst [vmem:[#allocation37_spill] sm:$0xff] %v3536_v14  ;;  %v1185_v15 = vpop.f32.mrf.mxu2 }
 0x2d7   : > { %v2561_v25 = vpop.eup %2560  ;;  %4079 = vst [vmem:[#allocation41_spill] sm:$0xff] %v3548_v27  ;;  %v1210_v24 = vadd.f32 %v1185_v15, %v4083_v26  ;;  %1604 = vmatpush.msra.mxu0 %v3548_v27 }
 0x2d8   : > { %v2563_v29 = vpop.eup %2562  ;;  %v3504_v30 = vadd.f32 1.0, %v2561_v25  ;;  %2564 = vpow2.f32 %v2447_v21  ;;  %v3540_v21 = vld [vmem:[#allocation9 + $0x228] sm:$0xff]  ;;  %v3542_v25 = vld [vmem:[#allocation9 + $0x230] sm:$0xff]  ;;  %4080 = vst [vmem:[#allocation43_spill] sm:$0xff] %v3550_v54 }
 0x2d9   : > { %v3508_v49 = vadd.f32 1.0, %v2563_v29  ;;  %4076 = vst [vmem:[#allocation38_spill] sm:$0xff] %v3540_v21  ;;  %v3544_v29 = vld [vmem:[#allocation9 + $0x238] sm:$0xff]  ;;  %1623 = vmatpush.msra.mxu1 %v3540_v21  ;;  %1643 = vmatpush.msra.mxu2 %v3542_v25 }
 0x2da   : > { %2566 = vrcp.f32 %v3504_v30  ;;  %4077 = vst [vmem:[#allocation39_spill] sm:$0xff] %v3542_v25  ;;  %1663 = vmatpush.msra.mxu3 %v3544_v29  ;;  %1766 = vmatpush.msrb.mxu0 %v3363_v23  ;;  %vm1237_vm7 = vweird.f32 %v3504_v30 }
 0x2db   : > { %2568 = vrcp.f32 %v3508_v49  ;;  %4078 = vst [vmem:[#allocation40_spill] sm:$0xff] %v3544_v29  ;;  %1624 = vmatpush.msra.mxu1 %v3550_v54  ;;  %1644 = vmatpush.msra.mxu2 %v3556_v56  ;;  %v1243_v29 = vand.u32 2147483648, %v3504_v30  ;;  %v1258_v54 = vand.u32 2147483648, %v3508_v49  ;;  %vm1252_vm8 = vweird.f32 %v3508_v49 }
 0x2dc   : > { %4081 = vst [vmem:[#allocation42_spill] sm:$0xff] %v3556_v56  ;;  %1664 = vmatpush.msra.mxu3 %v3558_v10  ;;  %v1241_v56 = vand.u32 2147483647, %v3504_v30  ;;  %1767 = vmatpush.msrb.mxu0 %v3375_v32 }
 0x2dd   : > { %4082 = vst [vmem:[#allocation44_spill] sm:$0xff] %v3558_v10  ;;  %1786 = vmatpush.msrb.mxu1 %v3365_v31  ;;  %1806 = vmatpush.msrb.mxu2 %v3367_v61 }
 0x2de   : > { %v2565_v5 = vpop.eup %2564  ;;  %1826 = vmatpush.msrb.mxu3 %v3371_v55  ;;  %1768 = vmatpush.msrb.mxu0 %v3387_v36  ;;  %vm1242_vm11 = vcmp.eq.f32.partialorder %v1241_v56, 8.507059e+37 }
 0x2df   : > { %v3552_v50 = vadd.f32 1.0, %v2565_v5  ;;  %1787 = vmatpush.msrb.mxu1 %v3377_v33  ;;  %1807 = vmatpush.msrb.mxu2 %v3379_v34 }
 0x2e0   : > { %v2567_v28 = vpop.eup %2566  ;;  %1827 = vmatpush.msrb.mxu3 %v3383_v35  ;;  %1769 = vmatpush.msrb.mxu0 %v3399_v40 }
 0x2e1   : > { %v2569_v63 = vpop.eup %2568  ;;  %v1233_v1 = vmul.f32 %v2567_v28, %v3504_v30  ;;  %2570 = vrcp.f32 %v3552_v50  ;;  %vm1238_vm5 = vweird.f32 %v2567_v28  ;;  %1788 = vmatpush.msrb.mxu1 %v3389_v37  ;;  %1808 = vmatpush.msrb.mxu2 %v3391_v38  ;;  %v1259_v30 = vor.u32 1.1754944e-38, %v1258_v54 }
 0x2e2   : > { %v1248_v5 = vmul.f32 %v2569_v63, %v3508_v49  ;;  %2572 = vtanh.f32 %v1210_v24  ;;  %vm1253_vm6 = vweird.f32 %v2569_v63  ;;  %v1256_v24 = vand.u32 2147483647, %v3508_v49  ;;  %vm1239_vm9 = vmor %vm1237_vm7, %vm1238_vm5  ;;  %1828 = vmatpush.msrb.mxu3 %v3395_v39  ;;  %1770 = vmatpush.msrb.mxu0 %v3411_v45 }
 0x2e3   : > { %v1234_v26 = vsub.f32 1.0, %v1233_v1  ;;  %vm1254_vm10 = vmor %vm1252_vm8, %vm1253_vm6  ;;  %1789 = vmatpush.msrb.mxu1 %v3401_v41  ;;  %1809 = vmatpush.msrb.mxu2 %v3403_v42  ;;  %vm1282_vm14 = vweird.f32 %v3552_v50 }
 0x2e4   : > { %v1249_v15 = vsub.f32 1.0, %v1248_v5  ;;  %vm1257_vm12 = vcmp.eq.f32.partialorder %v1256_v24, 8.507059e+37  ;;  %1829 = vmatpush.msrb.mxu3 %v3407_v43  ;;  %1771 = vmatpush.msrb.mxu0 %v3423_v60  ;;  %v4084_v24 = vld [vmem:[#allocation26_spill] sm:$0xff] }
 0x2e5   : > { %v1235_v27 = vmul.f32 %v2567_v28, %v1234_v26  ;;  %v1244_v26 = vor.u32 1.1754944e-38, %v1243_v29  ;;  %1790 = vmatpush.msrb.mxu1 %v3413_v46  ;;  %1810 = vmatpush.msrb.mxu2 %v3415_v47 }
 0x2e6   : > { %v1250_v1 = vmul.f32 %v2569_v63, %v1249_v15  ;;  %1830 = vmatpush.msrb.mxu3 %v3419_v48  ;;  %1772 = vmatpush.msrb.mxu0 %v3437_v2 }
 0x2e7   : > { %v3582_v5 = vpop.eup %2570  ;;  %v1236_v55 = vadd.f32 %v2567_v28, %v1235_v27  ;;  %1791 = vmatpush.msrb.mxu1 %v3425_v59  ;;  %1811 = vmatpush.msrb.mxu2 %v3427_v57 }
 0x2e8   : > { %v1251_v15 = vadd.f32 %v2569_v63, %v1250_v1  ;;  %v1278_v34 = vmul.f32 %v3582_v5, %v3552_v50  ;;  %v2573_v49 = vpop.eup %2572  ;;  %vm1283_vm13 = vweird.f32 %v3582_v5  ;;  %1831 = vmatpush.msrb.mxu3 %v3433_v6  ;;  %1773 = vmatpush.msrb.mxu0 %v3449_v44 }
 0x2e9   : > { %v1240_v27 = vsel %vm1239_vm9, %v2567_v28, %v1236_v55  ;;  %1792 = vmatpush.msrb.mxu1 %v3439_v4  ;;  %1812 = vmatpush.msrb.mxu2 %v3441_v8  ;;  %vm1284_vm15 = vmor %vm1282_vm14, %vm1283_vm13 }
 0x2ea   : > { %v1245_v37 = vsel %vm1242_vm11, %v1244_v26, %v1240_v27  ;;  %v1255_v29 = vsel %vm1254_vm10, %v2569_v63, %v1251_v15  ;;  %v1279_v1 = vsub.f32 1.0, %v1278_v34  ;;  %1832 = vmatpush.msrb.mxu3 %v3445_v7  ;;  %1774 = vmatpush.msrb.mxu0 %v3459_v9  ;;  %v4086_v26 = vld [vmem:[#allocation28_spill] sm:$0xff]  ;;  %v4087_v15 = vld [vmem:[#allocation29_spill] sm:$0xff]  ;;  %v4088_v27 = vld [vmem:[#allocation30_spill] sm:$0xff] }
 0x2eb   : > { %v1260_v38 = vsel %vm1257_vm12, %v1259_v30, %v1255_v29  ;;  %v1297_v39 = vmul.f32 %v2573_v49, %v1245_v37  ;;  %1793 = vmatpush.msrb.mxu1 %v3451_v52  ;;  %1813 = vmatpush.msrb.mxu2 %v3453_v0  ;;  %v1582_v30 = vld [vmem:[#allocation4 + $0x8] sm:$0xff]  ;;  %v4090_v29 = vld [vmem:[#allocation32_spill] sm:$0xff] }
 0x2ec   : > { %v1296_v55 = vmul.f32 %v1260_v38, %v3352_v20  ;;  %v1280_v28 = vmul.f32 %v3582_v5, %v1279_v1  ;;  %v1288_v20 = vand.u32 2147483648, %v3552_v50  ;;  %v1286_v38 = vand.u32 2147483647, %v3552_v50  ;;  %1833 = vmatpush.msrb.mxu3 %v3457_v62  ;;  %1775 = vmatpush.msrb.mxu0 %v3469_v3  ;;  %v4089_v49 = vld [vmem:[#allocation31_spill] sm:$0xff]  ;;  %v4091_v1 = vld [vmem:[#allocation33_spill] sm:$0xff] }
 0x2ed   : > { %1794 = vmatpush.msrb.mxu1 %v3461_v58  ;;  %1814 = vmatpush.msrb.mxu2 %v3465_v53 }
 0x2ee   : > { %v1298_v34 = vadd.f32 %v1297_v39, %v1296_v55  ;;  %v1281_v37 = vadd.f32 %v3582_v5, %v1280_v28  ;;  %v1289_v54 = vor.u32 1.1754944e-38, %v1288_v20  ;;  %vm1287_vm0 = vcmp.eq.f32.partialorder %v1286_v38, 8.507059e+37  ;;  %1834 = vmatpush.msrb.mxu3 %v3467_v51  ;;  %1776 = vmatpush.msrb.mxu0 %v3482_v16  ;;  %v4092_v55 = vld [vmem:[#allocation34_spill] sm:$0xff]  ;;  %v4093_v28 = vld [vmem:[#allocation35_spill] sm:$0xff]  ;;  %v4096_v20 = vld [vmem:[#allocation41_spill] sm:$0xff] }
 0x2ef   : > { %1795 = vmatpush.msrb.mxu1 %v3473_v11  ;;  %1815 = vmatpush.msrb.mxu2 %v3475_v12  ;;  %v4097_v38 = vld [vmem:[#allocation43_spill] sm:$0xff] }
 0x2f0   : > { %2574 = vtanh.f32 %v1298_v34  ;;  %1304 = vst [vmem:[#allocation5 + $0x8] sm:$0xff] %v1298_v34  ;;  %v1285_v39 = vsel %vm1284_vm15, %v3582_v5, %v1281_v37  ;;  %1835 = vmatpush.msrb.mxu3 %v3477_v13  ;;  %1777 = vmatpush.msrb.mxu0 %v3494_v22  ;;  %v4085_v5 = vld [vmem:[#allocation27_spill] sm:$0xff]  ;;  %v4094_v34 = vld [vmem:[#allocation36_spill] sm:$0xff] }
 0x2f1   : > { %v1290_v56 = vsel %vm1287_vm0, %v1289_v54, %v1285_v39  ;;  %1796 = vmatpush.msrb.mxu1 %v3484_v17  ;;  %1816 = vmatpush.msrb.mxu2 %v3488_v18  ;;  %v4095_v37 = vld [vmem:[#allocation40_spill] sm:$0xff]  ;;  %v4098_v39 = vld [vmem:[#allocation42_spill] sm:$0xff] }
 0x2f2   : > { %1836 = vmatpush.msrb.mxu3 %v3490_v19  ;;  %1778 = vmatpush.msrb.mxu0 %v4087_v15  ;;  %v4099_v54 = vld [vmem:[#allocation14_spill] sm:$0xff] }
 0x2f3   : > { %1797 = vmatpush.msrb.mxu1 %v4084_v24  ;;  %1817 = vmatpush.msrb.mxu2 %v4085_v5 }
 0x2f4   : > { %1837 = vmatpush.msrb.mxu3 %v4086_v26  ;;  %1779 = vmatpush.msrb.mxu0 %v4091_v1 }
 0x2f5   : > { %1798 = vmatpush.msrb.mxu1 %v4088_v27  ;;  %1818 = vmatpush.msrb.mxu2 %v4089_v49 }
 0x2f6   : > { %v2575_v50 = vpop.eup %2574  ;;  %1838 = vmatpush.msrb.mxu3 %v4090_v29  ;;  %1780 = vmatpush.msrb.mxu0 %v3536_v14 }
 0x2f7   : > { %v1300_v63 = vmul.f32 %v2575_v50, %v1290_v56  ;;  %1799 = vmatpush.msrb.mxu1 %v4092_v55  ;;  %1819 = vmatpush.msrb.mxu2 %v4093_v28  ;;  %v4100_v50 = vld [vmem:[#allocation15_spill] sm:$0xff]  ;;  %v4101_v56 = vld [vmem:[#allocation16_spill] sm:$0xff] }
 0x2f8   : > { %1839 = vmatpush.msrb.mxu3 %v4094_v34  ;;  %1781 = vmatpush.msrb.mxu0 %v4096_v20 }
 0x2f9   : > { %1303 = vst [vmem:[#allocation4] sm:$0xff] %v1300_v63  ;;  %1409 = vmatmul.f32.gmra.mxu0 %v1300_v63  ;;  %1438 = vmatmul.f32.gmra.mxu1 %v1300_v63 }
 0x2fa   : > { %1467 = vmatmul.f32.gmra.mxu2 %v1300_v63  ;;  %1496 = vmatmul.f32.gmra.mxu3 %v1300_v63  ;;  %v4102_v63 = vld [vmem:[#allocation17_spill] sm:$0xff] }
 0x2fb   : > { %1800 = vmatpush.msrb.mxu1 %v3540_v21  ;;  %1820 = vmatpush.msrb.mxu2 %v3542_v25 }
 0x2fc   : > { %1840 = vmatpush.msrb.mxu3 %v4095_v37 }
 0x2fd   : > { %1801 = vmatpush.msrb.mxu1 %v4097_v38  ;;  %1821 = vmatpush.msrb.mxu2 %v4098_v39 }
 0x2fe   : > { %1841 = vmatpush.msrb.mxu3 %v3558_v10 }
 0x301   : > { %1605 = vmatmul.f32.vlgmr.msra.gmra.mxu0 %v1582_v30  ;;  %1625 = vmatmul.f32.vlgmr.msra.gmra.mxu1 %v1582_v30 }
 0x302   : > { %1645 = vmatmul.f32.vlgmr.msra.gmra.mxu2 %v1582_v30  ;;  %1665 = vmatmul.f32.vlgmr.msra.gmra.mxu3 %v1582_v30  ;;  %v4103_v30 = vld [vmem:[#allocation18_spill] sm:$0xff] }
 0x303   : > { %1943 = vmatpush.msra.mxu0 %v3363_v23  ;;  %1963 = vmatpush.msra.mxu1 %v3365_v31 }
 0x304   : > { %1983 = vmatpush.msra.mxu2 %v3367_v61  ;;  %2003 = vmatpush.msra.mxu3 %v4099_v54 }
 0x305   : > { %1944 = vmatpush.msra.mxu0 %v3375_v32  ;;  %1964 = vmatpush.msra.mxu1 %v3377_v33 }
 0x306   : > { %1984 = vmatpush.msra.mxu2 %v4100_v50  ;;  %2004 = vmatpush.msra.mxu3 %v3383_v35 }
 0x307   : > { %1945 = vmatpush.msra.mxu0 %v3387_v36  ;;  %1965 = vmatpush.msra.mxu1 %v4101_v56 }
 0x308   : > { %1985 = vmatpush.msra.mxu2 %v4102_v63  ;;  %2005 = vmatpush.msra.mxu3 %v4103_v30 }
 0x309   : > { %1946 = vmatpush.msra.mxu0 %v3399_v40  ;;  %1966 = vmatpush.msra.mxu1 %v3401_v41 }
 0x30a   : > { %1986 = vmatpush.msra.mxu2 %v3403_v42  ;;  %2006 = vmatpush.msra.mxu3 %v3407_v43 }
 0x30b   : > { %1947 = vmatpush.msra.mxu0 %v3411_v45  ;;  %1967 = vmatpush.msra.mxu1 %v3413_v46 }
 0x30c   : > { %1987 = vmatpush.msra.mxu2 %v3415_v47  ;;  %2007 = vmatpush.msra.mxu3 %v3419_v48 }
 0x30d   : > { %1948 = vmatpush.msra.mxu0 %v3423_v60  ;;  %1968 = vmatpush.msra.mxu1 %v3425_v59 }
 0x30e   : > { %1988 = vmatpush.msra.mxu2 %v3427_v57  ;;  %2008 = vmatpush.msra.mxu3 %v3433_v6 }
 0x30f   : > { %1949 = vmatpush.msra.mxu0 %v3437_v2  ;;  %1969 = vmatpush.msra.mxu1 %v3439_v4 }
 0x310   : > { %1989 = vmatpush.msra.mxu2 %v3441_v8  ;;  %2009 = vmatpush.msra.mxu3 %v3445_v7 }
 0x311   : > { %1950 = vmatpush.msra.mxu0 %v3449_v44  ;;  %1970 = vmatpush.msra.mxu1 %v3451_v52 }
 0x312   : > { %1990 = vmatpush.msra.mxu2 %v3453_v0  ;;  %2010 = vmatpush.msra.mxu3 %v3457_v62 }
 0x313   : > { %1951 = vmatpush.msra.mxu0 %v3459_v9  ;;  %1971 = vmatpush.msra.mxu1 %v3461_v58 }
 0x314   : > { %1991 = vmatpush.msra.mxu2 %v3465_v53  ;;  %2011 = vmatpush.msra.mxu3 %v3467_v51 }
 0x315   : > { %1952 = vmatpush.msra.mxu0 %v3469_v3  ;;  %1972 = vmatpush.msra.mxu1 %v3473_v11 }
 0x316   : > { %1992 = vmatpush.msra.mxu2 %v3475_v12  ;;  %2012 = vmatpush.msra.mxu3 %v3477_v13 }
 0x317   : > { %1953 = vmatpush.msra.mxu0 %v3482_v16  ;;  %1973 = vmatpush.msra.mxu1 %v3484_v17 }
 0x318   : > { %1993 = vmatpush.msra.mxu2 %v3488_v18  ;;  %2013 = vmatpush.msra.mxu3 %v3490_v19 }
 0x319   : > { %1954 = vmatpush.msra.mxu0 %v3494_v22  ;;  %1974 = vmatpush.msra.mxu1 %v4084_v24 }
 0x31a   : > { %1994 = vmatpush.msra.mxu2 %v4085_v5  ;;  %2014 = vmatpush.msra.mxu3 %v4086_v26 }
 0x31b   : > { %1955 = vmatpush.msra.mxu0 %v4087_v15  ;;  %1975 = vmatpush.msra.mxu1 %v4088_v27 }
 0x31c   : > { %1995 = vmatpush.msra.mxu2 %v4089_v49  ;;  %2015 = vmatpush.msra.mxu3 %v4090_v29 }
 0x31d   : > { %1956 = vmatpush.msra.mxu0 %v4091_v1  ;;  %1976 = vmatpush.msra.mxu1 %v4092_v55  ;;  %v1401_v55 = vpop.f32.mrf.mxu0  ;;  %v1488_v1 = vpop.f32.mrf.mxu3 }
 0x31e   : > { %1996 = vmatpush.msra.mxu2 %v4093_v28  ;;  %2016 = vmatpush.msra.mxu3 %v4094_v34  ;;  %v1430_v28 = vpop.f32.mrf.mxu1 }
 0x31f   : > { %1957 = vmatpush.msra.mxu0 %v3536_v14  ;;  %1977 = vmatpush.msra.mxu1 %v3540_v21  ;;  %v1459_v21 = vpop.f32.mrf.mxu2 }
 0x320   : > { %1997 = vmatpush.msra.mxu2 %v3542_v25  ;;  %2017 = vmatpush.msra.mxu3 %v4095_v37 }
 0x321   : > { %1958 = vmatpush.msra.mxu0 %v4096_v20  ;;  %1978 = vmatpush.msra.mxu1 %v4097_v38 }
 0x322   : > { %1998 = vmatpush.msra.mxu2 %v4098_v39  ;;  %2018 = vmatpush.msra.mxu3 %v3558_v10  ;;  %v2448_v10 = vld [vmem:[%s3868_s4 + $0x4] sm:$0xf] }
 0x323   : > { %v3741_v49 = vperm.slane %v2448_v10, 1  ;;  %v3749_v5 = vperm.slane %v2448_v10, 3 }
 0x325   : > { %v3718_v34 = vpop.f32.mrf.mxu0  ;;  %v3722_v29 = vpop.f32.mrf.mxu3  ;;  %4114 = vst [vmem:[#allocation17_spill] sm:$0xff] %v3741_v49  ;;  %v1489_v24 = vadd.f32 %v1488_v1, %v3749_v5 }
 0x326   : > { %4104 = vst [vmem:[#allocation45_spill] sm:$0xff] %v3718_v34  ;;  %v3720_v14 = vpop.f32.mrf.mxu1 }
 0x327   : > { %4105 = vst [vmem:[#allocation47_spill] sm:$0xff] %v3720_v14  ;;  %v3728_v20 = vpop.f32.mrf.mxu2  ;;  %v3739_v14 = vperm.slane %v2448_v10, 0 }
 0x328   : > { %4106 = vst [vmem:[#allocation46_spill] sm:$0xff] %v3722_v29 }
 0x329   : > { %4109 = vst [vmem:[#allocation51_spill] sm:$0xff] %v3728_v20 }
 0x32a   : > { %4113 = vst [vmem:[#allocation16_spill] sm:$0xff] %v3739_v14 }
 0x32b   : > { %4117 = vst [vmem:[#allocation53_spill] sm:$0xff] %v3749_v5 }
 0x32d   : > { %v3724_v25 = vpop.f32.mrf.mxu0  ;;  %v3730_v38 = vpop.f32.mrf.mxu3 }
 0x32e   : > { %4107 = vst [vmem:[#allocation48_spill] sm:$0xff] %v3724_v25  ;;  %v3726_v37 = vpop.f32.mrf.mxu1  ;;  %v1402_v25 = vadd.f32 %v1401_v55, %v3739_v14 }
 0x32f   : > { %4108 = vst [vmem:[#allocation49_spill] sm:$0xff] %v3726_v37  ;;  %v1431_v37 = vadd.f32 %v1430_v28, %v3741_v49  ;;  %v3745_v29 = vpop.f32.mrf.mxu2 }
 0x330   : > { %4110 = vst [vmem:[#allocation50_spill] sm:$0xff] %v3730_v38 }
 0x331   : > { %4115 = vst [vmem:[#allocation18_spill] sm:$0xff] %v3745_v29 }
 0x376   : > { %v3735_v39 = vpop.f32.mrf.mxu0  ;;  %v3737_v34 = vpop.f32.mrf.mxu1 }
 0x377   : > { %4111 = vst [vmem:[#allocation14_spill] sm:$0xff] %v3735_v39 }
 0x378   : > { %4112 = vst [vmem:[#allocation15_spill] sm:$0xff] %v3737_v34 }
 0x37d   : > { %v3747_v20 = vpop.f32.mrf.mxu3  ;;  %v3752_v22 = vpop.f32.mrf.mxu2 }
 0x37e   : > { %4116 = vst [vmem:[#allocation52_spill] sm:$0xff] %v3747_v20  ;;  %v1606_v38 = vpop.f32.mrf.mxu0  ;;  %v1626_v27 = vpop.f32.mrf.mxu1 }
 0x37f   : > { %v1669_v15 = vadd.f32 %v1606_v38, %v1402_v25  ;;  %v1670_v26 = vadd.f32 %v1626_v27, %v1431_v37  ;;  %4118 = vst [vmem:[#allocation54_spill] sm:$0xff] %v3752_v22  ;;  %v3754_v25 = vperm.slane %v2448_v10, 2 }
 0x381   : > { %v2449_v39 = vmul.f32 -1.442695, %v1669_v15  ;;  %v2450_v34 = vmul.f32 -1.442695, %v1670_v26  ;;  %4119 = vst [vmem:[#allocation55_spill] sm:$0xff] %v3754_v25  ;;  %v1460_v27 = vadd.f32 %v1459_v21, %v3754_v25 }
 0x383   : > { %2576 = vpow2.f32 %v2449_v39 }
 0x384   : > { %2578 = vpow2.f32 %v2450_v34 }
 0x385   : > { %v1666_v55 = vpop.f32.mrf.mxu3  ;;  %v1646_v15 = vpop.f32.mrf.mxu2 }
 0x386   : > { %v1672_v28 = vadd.f32 %v1666_v55, %v1489_v24  ;;  %v1671_v37 = vadd.f32 %v1646_v15, %v1460_v27 }
 0x388   : > { %v2452_v49 = vmul.f32 -1.442695, %v1672_v28 }
 0x389   : > { %v2577_v29 = vpop.eup %2576 }
 0x38a   : > { %v2579_v14 = vpop.eup %2578  ;;  %v1689_v20 = vadd.f32 1.0, %v2577_v29  ;;  %2580 = vpow2.f32 %v2452_v49 }
 0x38b   : > { %v1690_v19 = vadd.f32 1.0, %v2579_v14 }
 0x38c   : > { %2582 = vrcp.f32 %v1689_v20  ;;  %v1704_v49 = vand.u32 2147483648, %v1689_v20  ;;  %v1702_v29 = vand.u32 2147483647, %v1689_v20  ;;  %vm1698_vm3 = vweird.f32 %v1689_v20 }
 0x38d   : > { %2584 = vrcp.f32 %v1690_v19  ;;  %v1719_v14 = vand.u32 2147483648, %v1690_v19  ;;  %v1717_v5 = vand.u32 2147483647, %v1690_v19  ;;  %vm1713_vm4 = vweird.f32 %v1690_v19 }
 0x38e   : > { %v1705_v15 = vor.u32 1.1754944e-38, %v1704_v49  ;;  %vm1703_vm7 = vcmp.eq.f32.partialorder %v1702_v29, 8.507059e+37 }
 0x38f   : > { %vm1718_vm8 = vcmp.eq.f32.partialorder %v1717_v5, 8.507059e+37 }
 0x390   : > { %v2581_v26 = vpop.eup %2580 }
 0x391   : > { %v1692_v1 = vadd.f32 1.0, %v2581_v26 }
 0x392   : > { %v2583_v34 = vpop.eup %2582 }
 0x393   : > { %v2585_v38 = vpop.eup %2584  ;;  %v1694_v39 = vmul.f32 %v2583_v34, %v1689_v20  ;;  %2586 = vrcp.f32 %v1692_v1  ;;  %vm1699_vm1 = vweird.f32 %v2583_v34  ;;  %vm1743_vm10 = vweird.f32 %v1692_v1 }
 0x394   : > { %v1709_v24 = vmul.f32 %v2585_v38, %v1690_v19  ;;  %2588 = vtanh.f32 %v1671_v37  ;;  %vm1714_vm2 = vweird.f32 %v2585_v38  ;;  %vm1700_vm5 = vmor %vm1698_vm3, %vm1699_vm1  ;;  %v1747_v49 = vand.u32 2147483647, %v1692_v1 }
 0x395   : > { %v1695_v55 = vsub.f32 1.0, %v1694_v39  ;;  %vm1715_vm6 = vmor %vm1713_vm4, %vm1714_vm2  ;;  %v1720_v39 = vor.u32 1.1754944e-38, %v1719_v14 }
 0x396   : > { %v1710_v28 = vsub.f32 1.0, %v1709_v24  ;;  %v1584_v24 = vld [vmem:[#allocation5] sm:$0xff]  ;;  %vm1748_vm12 = vcmp.eq.f32.partialorder %v1747_v49, 8.507059e+37 }
 0x397   : > { %v1696_v10 = vmul.f32 %v2583_v34, %v1695_v55 }
 0x398   : > { %v1711_v22 = vmul.f32 %v2585_v38, %v1710_v28 }
 0x399   : > { %v2587_v18 = vpop.eup %2586  ;;  %v1697_v21 = vadd.f32 %v2583_v34, %v1696_v10 }
 0x39a   : > { %v1712_v26 = vadd.f32 %v2585_v38, %v1711_v22  ;;  %v1739_v27 = vmul.f32 %v2587_v18, %v1692_v1  ;;  %v2589_v25 = vpop.eup %2588  ;;  %vm1744_vm9 = vweird.f32 %v2587_v18  ;;  %v1749_v22 = vand.u32 2147483648, %v1692_v1 }
 0x39b   : > { %v1701_v37 = vsel %vm1700_vm5, %v2583_v34, %v1697_v21  ;;  %vm1745_vm11 = vmor %vm1743_vm10, %vm1744_vm9 }
 0x39c   : > { %v1706_v55 = vsel %vm1703_vm7, %v1705_v15, %v1701_v37  ;;  %v1716_v17 = vsel %vm1715_vm6, %v2585_v38, %v1712_v26  ;;  %v1740_v28 = vsub.f32 1.0, %v1739_v27  ;;  %v1750_v14 = vor.u32 1.1754944e-38, %v1749_v22  ;;  %v4153_v37 = vld [vmem:[#allocation51_spill] sm:$0xff] }
 0x39d   : > { %v1721_v16 = vsel %vm1718_vm8, %v1720_v39, %v1716_v17  ;;  %v1758_v13 = vmul.f32 %v2589_v25, %v1706_v55 }
 0x39e   : > { %v1757_v12 = vmul.f32 %v1721_v16, %v1584_v24  ;;  %v1741_v10 = vmul.f32 %v2587_v18, %v1740_v28  ;;  %v4152_v24 = vld [vmem:[#allocation55_spill] sm:$0xff] }
 0x39f   : > { %v1463_v55 = vadd.f32 %v4153_v37, %v4152_v24 }
 0x3a0   : > { %v3757_v20 = vadd.f32 %v1758_v13, %v1757_v12  ;;  %v1742_v19 = vadd.f32 %v2587_v18, %v1741_v10 }
 0x3a2   : > { %2590 = vtanh.f32 %v3757_v20  ;;  %v1746_v34 = vsel %vm1745_vm11, %v2587_v18, %v1742_v19 }
 0x3a3   : > { %v1751_v5 = vsel %vm1748_vm12, %v1750_v14, %v1746_v34 }
 0x3a8   : > { %v2591_v38 = vpop.eup %2590 }
 0x3a9   : > { %v1761_v29 = vmul.f32 %v2591_v38, %v1751_v5 }
 0x3ab   : > { %1782 = vmatmul.f32.vlgmr.msrb.gmra.mxu0 %v1761_v29  ;;  %1802 = vmatmul.f32.vlgmr.msrb.gmra.mxu1 %v1761_v29 }
 0x3ac   : > { %1822 = vmatmul.f32.vlgmr.msrb.gmra.mxu2 %v1761_v29  ;;  %1842 = vmatmul.f32.vlgmr.msrb.gmra.mxu3 %v1761_v29 }
 0x3ad   : > { %2120 = vmatpush.msrb.mxu0 %v3363_v23  ;;  %2140 = vmatpush.msrb.mxu1 %v3365_v31  ;;  %v4120_v23 = vld [vmem:[#allocation19_spill] sm:$0xff]  ;;  %v4121_v31 = vld [vmem:[#allocation20_spill] sm:$0xff] }
 0x3ae   : > { %2160 = vmatpush.msrb.mxu2 %v3367_v61  ;;  %2180 = vmatpush.msrb.mxu3 %v4099_v54  ;;  %v4122_v61 = vld [vmem:[#allocation21_spill] sm:$0xff] }
 0x3af   : > { %2121 = vmatpush.msrb.mxu0 %v3375_v32  ;;  %2141 = vmatpush.msrb.mxu1 %v3377_v33  ;;  %v4123_v32 = vld [vmem:[#allocation22_spill] sm:$0xff]  ;;  %v4124_v33 = vld [vmem:[#allocation23_spill] sm:$0xff]  ;;  %v4150_v54 = vld [vmem:[#allocation53_spill] sm:$0xff] }
 0x3b0   : > { %2161 = vmatpush.msrb.mxu2 %v4100_v50  ;;  %2181 = vmatpush.msrb.mxu3 %v3383_v35  ;;  %v4125_v35 = vld [vmem:[#allocation24_spill] sm:$0xff]  ;;  %v4151_v50 = vld [vmem:[#allocation46_spill] sm:$0xff] }
 0x3b1   : > { %2122 = vmatpush.msrb.mxu0 %v3387_v36  ;;  %2142 = vmatpush.msrb.mxu1 %v4101_v56  ;;  %v4126_v36 = vld [vmem:[#allocation25_spill] sm:$0xff]  ;;  %v1492_v56 = vadd.f32 %v4151_v50, %v4150_v54 }
 0x3b2   : > { %2162 = vmatpush.msrb.mxu2 %v4102_v63  ;;  %2182 = vmatpush.msrb.mxu3 %v4103_v30 }
 0x3b3   : > { %2123 = vmatpush.msrb.mxu0 %v3399_v40  ;;  %2143 = vmatpush.msrb.mxu1 %v3401_v41  ;;  %v4127_v40 = vld [vmem:[#allocation26_spill] sm:$0xff]  ;;  %v4128_v41 = vld [vmem:[#allocation27_spill] sm:$0xff] }
 0x3b4   : > { %2163 = vmatpush.msrb.mxu2 %v3403_v42  ;;  %2183 = vmatpush.msrb.mxu3 %v3407_v43  ;;  %v4129_v42 = vld [vmem:[#allocation28_spill] sm:$0xff]  ;;  %v4130_v43 = vld [vmem:[#allocation29_spill] sm:$0xff] }
 0x3b5   : > { %2124 = vmatpush.msrb.mxu0 %v3411_v45  ;;  %2144 = vmatpush.msrb.mxu1 %v3413_v46  ;;  %v4131_v45 = vld [vmem:[#allocation30_spill] sm:$0xff]  ;;  %v4132_v46 = vld [vmem:[#allocation31_spill] sm:$0xff] }
 0x3b6   : > { %2164 = vmatpush.msrb.mxu2 %v3415_v47  ;;  %2184 = vmatpush.msrb.mxu3 %v3419_v48  ;;  %v4133_v47 = vld [vmem:[#allocation32_spill] sm:$0xff]  ;;  %v4134_v48 = vld [vmem:[#allocation33_spill] sm:$0xff] }
 0x3b7   : > { %2125 = vmatpush.msrb.mxu0 %v3423_v60  ;;  %2145 = vmatpush.msrb.mxu1 %v3425_v59  ;;  %v4135_v60 = vld [vmem:[#allocation34_spill] sm:$0xff]  ;;  %v4136_v59 = vld [vmem:[#allocation35_spill] sm:$0xff] }
 0x3b8   : > { %2165 = vmatpush.msrb.mxu2 %v3427_v57  ;;  %2185 = vmatpush.msrb.mxu3 %v3433_v6  ;;  %v4137_v57 = vld [vmem:[#allocation36_spill] sm:$0xff]  ;;  %v4138_v6 = vld [vmem:[#allocation37_spill] sm:$0xff] }
 0x3b9   : > { %2126 = vmatpush.msrb.mxu0 %v3437_v2  ;;  %2146 = vmatpush.msrb.mxu1 %v3439_v4  ;;  %v4139_v2 = vld [vmem:[#allocation38_spill] sm:$0xff]  ;;  %v4140_v4 = vld [vmem:[#allocation39_spill] sm:$0xff] }
 0x3ba   : > { %2166 = vmatpush.msrb.mxu2 %v3441_v8  ;;  %2186 = vmatpush.msrb.mxu3 %v3445_v7  ;;  %v4141_v8 = vld [vmem:[#allocation40_spill] sm:$0xff]  ;;  %v4142_v7 = vld [vmem:[#allocation41_spill] sm:$0xff] }
 0x3bb   : > { %2127 = vmatpush.msrb.mxu0 %v3449_v44  ;;  %2147 = vmatpush.msrb.mxu1 %v3451_v52  ;;  %v4143_v44 = vld [vmem:[#allocation43_spill] sm:$0xff]  ;;  %v4144_v52 = vld [vmem:[#allocation42_spill] sm:$0xff] }
 0x3bc   : > { %2167 = vmatpush.msrb.mxu2 %v3453_v0  ;;  %2187 = vmatpush.msrb.mxu3 %v3457_v62  ;;  %v4145_v0 = vld [vmem:[#allocation44_spill] sm:$0xff] }
 0x3bd   : > { %2128 = vmatpush.msrb.mxu0 %v3459_v9  ;;  %2148 = vmatpush.msrb.mxu1 %v3461_v58  ;;  %v4146_v62 = vld [vmem:[#allocation16_spill] sm:$0xff]  ;;  %v4147_v9 = vld [vmem:[#allocation45_spill] sm:$0xff] }
 0x3be   : > { %2168 = vmatpush.msrb.mxu2 %v3465_v53  ;;  %2188 = vmatpush.msrb.mxu3 %v3467_v51  ;;  %v1405_v58 = vadd.f32 %v4147_v9, %v4146_v62  ;;  %v4148_v53 = vld [vmem:[#allocation17_spill] sm:$0xff]  ;;  %v4149_v51 = vld [vmem:[#allocation47_spill] sm:$0xff] }
 0x3bf   : > { %2129 = vmatpush.msrb.mxu0 %v3469_v3  ;;  %2149 = vmatpush.msrb.mxu1 %v3473_v11  ;;  %v1434_v3 = vadd.f32 %v4149_v51, %v4148_v53 }
 0x3c0   : > { %2169 = vmatpush.msrb.mxu2 %v4120_v23  ;;  %2189 = vmatpush.msrb.mxu3 %v4121_v31 }
 0x3c1   : > { %2130 = vmatpush.msrb.mxu0 %v4122_v61  ;;  %2150 = vmatpush.msrb.mxu1 %v4123_v32 }
 0x3c2   : > { %2170 = vmatpush.msrb.mxu2 %v4124_v33  ;;  %2190 = vmatpush.msrb.mxu3 %v4125_v35 }
 0x3c3   : > { %2131 = vmatpush.msrb.mxu0 %v4126_v36  ;;  %2151 = vmatpush.msrb.mxu1 %v4127_v40 }
 0x3c4   : > { %2171 = vmatpush.msrb.mxu2 %v4128_v41  ;;  %2191 = vmatpush.msrb.mxu3 %v4129_v42 }
 0x3c5   : > { %2132 = vmatpush.msrb.mxu0 %v4130_v43  ;;  %2152 = vmatpush.msrb.mxu1 %v4131_v45 }
 0x3c6   : > { %2172 = vmatpush.msrb.mxu2 %v4132_v46  ;;  %2192 = vmatpush.msrb.mxu3 %v4133_v47 }
 0x3c7   : > { %2133 = vmatpush.msrb.mxu0 %v4134_v48  ;;  %2153 = vmatpush.msrb.mxu1 %v4135_v60 }
 0x3c8   : > { %2173 = vmatpush.msrb.mxu2 %v4136_v59  ;;  %2193 = vmatpush.msrb.mxu3 %v4137_v57 }
 0x3c9   : > { %2134 = vmatpush.msrb.mxu0 %v4138_v6  ;;  %2154 = vmatpush.msrb.mxu1 %v4139_v2 }
 0x3ca   : > { %2174 = vmatpush.msrb.mxu2 %v4140_v4  ;;  %2194 = vmatpush.msrb.mxu3 %v4141_v8 }
 0x3cb   : > { %2135 = vmatpush.msrb.mxu0 %v4142_v7  ;;  %2155 = vmatpush.msrb.mxu1 %v4143_v44 }
 0x3cc   : > { %2175 = vmatpush.msrb.mxu2 %v4144_v52  ;;  %2195 = vmatpush.msrb.mxu3 %v4145_v0 }
 0x428   : > { %v1783_v11 = vpop.f32.mrf.mxu0  ;;  %v1803_v12 = vpop.f32.mrf.mxu1 }
 0x429   : > { %v1846_v13 = vadd.f32 %v1783_v11, %v1405_v58  ;;  %v1847_v16 = vadd.f32 %v1803_v12, %v1434_v3  ;;  %v4155_v3 = vld [vmem:[#allocation49_spill] sm:$0xff] }
 0x42a   : > { %v1437_v11 = vadd.f32 %v4155_v3, %v4148_v53 }
 0x42b   : > { %v2453_v17 = vmul.f32 -1.442695, %v1846_v13  ;;  %v2454_v18 = vmul.f32 -1.442695, %v1847_v16 }
 0x42d   : > { %2592 = vpow2.f32 %v2453_v17 }
 0x42e   : > { %2594 = vpow2.f32 %v2454_v18 }
 0x42f   : > { %v1843_v63 = vpop.f32.mrf.mxu3  ;;  %v1823_v27 = vpop.f32.mrf.mxu2 }
 0x430   : > { %v1849_v30 = vadd.f32 %v1843_v63, %v1492_v56  ;;  %v1848_v19 = vadd.f32 %v1823_v27, %v1463_v55  ;;  %v4156_v56 = vld [vmem:[#allocation50_spill] sm:$0xff] }
 0x431   : > { %v1495_v63 = vadd.f32 %v4156_v56, %v4150_v54  ;;  %v4157_v55 = vld [vmem:[#allocation18_spill] sm:$0xff] }
 0x432   : > { %v2456_v25 = vmul.f32 -1.442695, %v1849_v30 }
 0x433   : > { %v2593_v1 = vpop.eup %2592 }
 0x434   : > { %v2595_v21 = vpop.eup %2594  ;;  %v1866_v15 = vadd.f32 1.0, %v2593_v1  ;;  %2596 = vpow2.f32 %v2456_v25 }
 0x435   : > { %v1867_v26 = vadd.f32 1.0, %v2595_v21 }
 0x436   : > { %2598 = vrcp.f32 %v1866_v15  ;;  %v1881_v5 = vand.u32 2147483648, %v1866_v15  ;;  %v1879_v31 = vand.u32 2147483647, %v1866_v15  ;;  %vm1875_vm15 = vweird.f32 %v1866_v15 }
 0x437   : > { %2600 = vrcp.f32 %v1867_v26  ;;  %v1896_v29 = vand.u32 2147483648, %v1867_v26  ;;  %v1894_v32 = vand.u32 2147483647, %v1867_v26  ;;  %vm1890_vm0 = vweird.f32 %v1867_v26 }
 0x438   : > { %v1882_v36 = vor.u32 1.1754944e-38, %v1881_v5  ;;  %vm1880_vm3 = vcmp.eq.f32.partialorder %v1879_v31, 8.507059e+37 }
 0x439   : > { %v1897_v42 = vor.u32 1.1754944e-38, %v1896_v29  ;;  %vm1895_vm4 = vcmp.eq.f32.partialorder %v1894_v32, 8.507059e+37 }
 0x43a   : > { %v2597_v39 = vpop.eup %2596 }
 0x43b   : > { %v1869_v28 = vadd.f32 1.0, %v2597_v39 }
 0x43c   : > { %v2599_v10 = vpop.eup %2598 }
 0x43d   : > { %v2601_v22 = vpop.eup %2600  ;;  %v1871_v49 = vmul.f32 %v2599_v10, %v1866_v15  ;;  %2602 = vrcp.f32 %v1869_v28  ;;  %vm1876_vm13 = vweird.f32 %v2599_v10  ;;  %v1926_v8 = vand.u32 2147483648, %v1869_v28 }
 0x43e   : > { %v1886_v34 = vmul.f32 %v2601_v22, %v1867_v26  ;;  %2604 = vtanh.f32 %v1848_v19  ;;  %vm1891_vm14 = vweird.f32 %v2601_v22  ;;  %vm1877_vm1 = vmor %vm1875_vm15, %vm1876_vm13  ;;  %vm1920_vm6 = vweird.f32 %v1869_v28 }
 0x43f   : > { %v1872_v14 = vsub.f32 1.0, %v1871_v49  ;;  %vm1892_vm2 = vmor %vm1890_vm0, %vm1891_vm14  ;;  %v1924_v7 = vand.u32 2147483647, %v1869_v28  ;;  %v1927_v52 = vor.u32 1.1754944e-38, %v1926_v8 }
 0x440   : > { %v1887_v38 = vsub.f32 1.0, %v1886_v34 }
 0x441   : > { %v1873_v23 = vmul.f32 %v2599_v10, %v1872_v14  ;;  %vm1925_vm8 = vcmp.eq.f32.partialorder %v1924_v7, 8.507059e+37 }
 0x442   : > { %v1888_v61 = vmul.f32 %v2601_v22, %v1887_v38 }
 0x443   : > { %v2603_v33 = vpop.eup %2602  ;;  %v1874_v35 = vadd.f32 %v2599_v10, %v1873_v23 }
 0x444   : > { %v1889_v40 = vadd.f32 %v2601_v22, %v1888_v61  ;;  %v1916_v41 = vmul.f32 %v2603_v33, %v1869_v28  ;;  %v2605_v45 = vpop.eup %2604  ;;  %vm1921_vm5 = vweird.f32 %v2603_v33  ;;  %v1466_v28 = vadd.f32 %v4157_v55, %v4152_v24 }
 0x445   : > { %v1878_v43 = vsel %vm1877_vm1, %v2599_v10, %v1874_v35  ;;  %vm1922_vm7 = vmor %vm1920_vm6, %vm1921_vm5 }
 0x446   : > { %v1883_v46 = vsel %vm1880_vm3, %v1882_v36, %v1878_v43  ;;  %v1893_v47 = vsel %vm1892_vm2, %v2601_v22, %v1889_v40  ;;  %v1917_v48 = vsub.f32 1.0, %v1916_v41 }
 0x447   : > { %v1898_v60 = vsel %vm1895_vm4, %v1897_v42, %v1893_v47  ;;  %v1935_v59 = vmul.f32 %v2605_v45, %v1883_v46 }
 0x448   : > { %v1934_v57 = vmul.f32 %v1898_v60, %v3757_v20  ;;  %v1918_v6 = vmul.f32 %v2603_v33, %v1917_v48  ;;  %v4154_v20 = vld [vmem:[#allocation48_spill] sm:$0xff] }
 0x449   : > { %v1408_v51 = vadd.f32 %v4154_v20, %v4146_v62 }
 0x44a   : > { %v3833_v2 = vadd.f32 %v1935_v59, %v1934_v57  ;;  %v1919_v4 = vadd.f32 %v2603_v33, %v1918_v6 }
 0x44c   : > { %2606 = vtanh.f32 %v3833_v2  ;;  %v1923_v44 = vsel %vm1922_vm7, %v2603_v33, %v1919_v4 }
 0x44d   : > { %v1928_v9 = vsel %vm1925_vm8, %v1927_v52, %v1923_v44 }
 0x452   : > { %v2607_v0 = vpop.eup %2606 }
 0x453   : > { %v1938_v58 = vmul.f32 %v2607_v0, %v1928_v9 }
 0x455   : > { %1959 = vmatmul.f32.vlgmr.msra.gmra.mxu0 %v1938_v58  ;;  %1979 = vmatmul.f32.vlgmr.msra.gmra.mxu1 %v1938_v58 }
 0x456   : > { %1999 = vmatmul.f32.vlgmr.msra.gmra.mxu2 %v1938_v58  ;;  %2019 = vmatmul.f32.vlgmr.msra.gmra.mxu3 %v1938_v58 }
 0x4d2   : > { %v1960_v12 = vpop.f32.mrf.mxu0  ;;  %v1980_v13 = vpop.f32.mrf.mxu1 }
 0x4d3   : > { %v2023_v16 = vadd.f32 %v1960_v12, %v1408_v51  ;;  %v2024_v17 = vadd.f32 %v1980_v13, %v1437_v11  ;;  %v4159_v11 = vld [vmem:[#allocation15_spill] sm:$0xff] }
 0x4d4   : > { %v1440_v12 = vadd.f32 %v4159_v11, %v4148_v53 }
 0x4d5   : > { %v2457_v18 = vmul.f32 -1.442695, %v2023_v16  ;;  %v2458_v50 = vmul.f32 -1.442695, %v2024_v17 }
 0x4d7   : > { %2608 = vpow2.f32 %v2457_v18 }
 0x4d8   : > { %2610 = vpow2.f32 %v2458_v50 }
 0x4d9   : > { %v2020_v30 = vpop.f32.mrf.mxu3  ;;  %v2000_v39 = vpop.f32.mrf.mxu2 }
 0x4da   : > { %v2026_v25 = vadd.f32 %v2020_v30, %v1495_v63  ;;  %v2025_v22 = vadd.f32 %v2000_v39, %v1466_v28  ;;  %v4160_v63 = vld [vmem:[#allocation52_spill] sm:$0xff] }
 0x4db   : > { %v1498_v30 = vadd.f32 %v4160_v63, %v4150_v54 }
 0x4dc   : > { %v2460_v1 = vmul.f32 -1.442695, %v2026_v25 }
 0x4dd   : > { %v2609_v21 = vpop.eup %2608 }
 0x4de   : > { %v2611_v15 = vpop.eup %2610  ;;  %v2043_v26 = vadd.f32 1.0, %v2609_v21  ;;  %2612 = vpow2.f32 %v2460_v1 }
 0x4df   : > { %v2044_v27 = vadd.f32 1.0, %v2611_v15 }
 0x4e0   : > { %2614 = vrcp.f32 %v2043_v26  ;;  %v2058_v29 = vand.u32 2147483648, %v2043_v26  ;;  %v2056_v61 = vand.u32 2147483647, %v2043_v26  ;;  %vm2052_vm11 = vweird.f32 %v2043_v26 }
 0x4e1   : > { %2616 = vrcp.f32 %v2044_v27  ;;  %v2073_v23 = vand.u32 2147483648, %v2044_v27  ;;  %v2071_v33 = vand.u32 2147483647, %v2044_v27  ;;  %vm2067_vm12 = vweird.f32 %v2044_v27 }
 0x4e2   : > { %v2059_v40 = vor.u32 1.1754944e-38, %v2058_v29  ;;  %vm2057_vm15 = vcmp.eq.f32.partialorder %v2056_v61, 8.507059e+37 }
 0x4e3   : > { %v2074_v43 = vor.u32 1.1754944e-38, %v2073_v23  ;;  %vm2072_vm0 = vcmp.eq.f32.partialorder %v2071_v33, 8.507059e+37 }
 0x4e4   : > { %v2613_v37 = vpop.eup %2612 }
 0x4e5   : > { %v2046_v10 = vadd.f32 1.0, %v2613_v37  ;;  %v4161_v37 = vld [vmem:[#allocation54_spill] sm:$0xff] }
 0x4e6   : > { %v2615_v19 = vpop.eup %2614  ;;  %v1469_v55 = vadd.f32 %v4161_v37, %v4152_v24 }
 0x4e7   : > { %v2617_v49 = vpop.eup %2616  ;;  %v2048_v34 = vmul.f32 %v2615_v19, %v2043_v26  ;;  %2618 = vrcp.f32 %v2046_v10  ;;  %vm2053_vm9 = vweird.f32 %v2615_v19  ;;  %v2103_v44 = vand.u32 2147483648, %v2046_v10 }
 0x4e8   : > { %v2063_v14 = vmul.f32 %v2617_v49, %v2044_v27  ;;  %2620 = vtanh.f32 %v2025_v22  ;;  %vm2068_vm10 = vweird.f32 %v2617_v49  ;;  %vm2054_vm13 = vmor %vm2052_vm11, %vm2053_vm9  ;;  %vm2097_vm2 = vweird.f32 %v2046_v10 }
 0x4e9   : > { %v2049_v38 = vsub.f32 1.0, %v2048_v34  ;;  %vm2069_vm14 = vmor %vm2067_vm12, %vm2068_vm10  ;;  %v2101_v52 = vand.u32 2147483647, %v2046_v10  ;;  %v2104_v9 = vor.u32 1.1754944e-38, %v2103_v44 }
 0x4ea   : > { %v2064_v5 = vsub.f32 1.0, %v2063_v14 }
 0x4eb   : > { %v2050_v31 = vmul.f32 %v2615_v19, %v2049_v38  ;;  %vm2102_vm4 = vcmp.eq.f32.partialorder %v2101_v52, 8.507059e+37 }
 0x4ec   : > { %v2065_v32 = vmul.f32 %v2617_v49, %v2064_v5 }
 0x4ed   : > { %v2619_v35 = vpop.eup %2618  ;;  %v2051_v36 = vadd.f32 %v2615_v19, %v2050_v31 }
 0x4ee   : > { %v2066_v41 = vadd.f32 %v2617_v49, %v2065_v32  ;;  %v2093_v42 = vmul.f32 %v2619_v35, %v2046_v10  ;;  %v2621_v46 = vpop.eup %2620  ;;  %vm2098_vm1 = vweird.f32 %v2619_v35 }
 0x4ef   : > { %v2055_v45 = vsel %vm2054_vm13, %v2615_v19, %v2051_v36  ;;  %vm2099_vm3 = vmor %vm2097_vm2, %vm2098_vm1 }
 0x4f0   : > { %v2060_v47 = vsel %vm2057_vm15, %v2059_v40, %v2055_v45  ;;  %v2070_v48 = vsel %vm2069_vm14, %v2617_v49, %v2066_v41  ;;  %v2094_v60 = vsub.f32 1.0, %v2093_v42 }
 0x4f1   : > { %v2075_v59 = vsel %vm2072_vm0, %v2074_v43, %v2070_v48  ;;  %v2112_v57 = vmul.f32 %v2621_v46, %v2060_v47 }
 0x4f2   : > { %v2111_v6 = vmul.f32 %v2075_v59, %v3833_v2  ;;  %v2095_v4 = vmul.f32 %v2619_v35, %v2094_v60  ;;  %v4158_v2 = vld [vmem:[#allocation14_spill] sm:$0xff] }
 0x4f3   : > { %v1411_v3 = vadd.f32 %v4158_v2, %v4146_v62 }
 0x4f4   : > { %v3845_v8 = vadd.f32 %v2112_v57, %v2111_v6  ;;  %v2096_v7 = vadd.f32 %v2619_v35, %v2095_v4 }
 0x4f6   : > { %2622 = vtanh.f32 %v3845_v8  ;;  %v2100_v0 = vsel %vm2099_vm3, %v2619_v35, %v2096_v7 }
 0x4f7   : > { %v2105_v20 = vsel %vm2102_vm4, %v2104_v9, %v2100_v0 }
 0x4fc   : > { %v2623_v58 = vpop.eup %2622 }
 0x4fd   : > { %v2115_v51 = vmul.f32 %v2623_v58, %v2105_v20 }
 0x4ff   : > { %2136 = vmatmul.f32.vlgmr.msrb.gmra.mxu0 %v2115_v51  ;;  %2156 = vmatmul.f32.vlgmr.msrb.gmra.mxu1 %v2115_v51 }
 0x500   : > { %2176 = vmatmul.f32.vlgmr.msrb.gmra.mxu2 %v2115_v51  ;;  %2196 = vmatmul.f32.vlgmr.msrb.gmra.mxu3 %v2115_v51 }
 0x57c   : > { %v2137_v13 = vpop.f32.mrf.mxu0  ;;  %v2157_v16 = vpop.f32.mrf.mxu1 }
 0x57d   : > { %v2200_v17 = vadd.f32 %v2137_v13, %v1411_v3  ;;  %v2201_v18 = vadd.f32 %v2157_v16, %v1440_v12 }
 0x57f   : > { %v2461_v50 = vmul.f32 -1.442695, %v2200_v17  ;;  %v2462_v56 = vmul.f32 -1.442695, %v2201_v18 }
 0x581   : > { %2624 = vpow2.f32 %v2461_v50 }
 0x582   : > { %2626 = vpow2.f32 %v2462_v56 }
 0x583   : > { %v2197_v25 = vpop.f32.mrf.mxu3  ;;  %v2177_v53 = vpop.f32.mrf.mxu2 }
 0x584   : > { %v2203_v1 = vadd.f32 %v2197_v25, %v1498_v30  ;;  %v2202_v19 = vadd.f32 %v2177_v53, %v1469_v55 }
 0x586   : > { %v2464_v21 = vmul.f32 -1.442695, %v2203_v1 }
 0x587   : > { %v2625_v15 = vpop.eup %2624 }
 0x588   : > { %v2627_v26 = vpop.eup %2626  ;;  %v2220_v62 = vadd.f32 1.0, %v2625_v15  ;;  %2628 = vpow2.f32 %v2464_v21 }
 0x589   : > { %v2221_v27 = vadd.f32 1.0, %v2627_v26 }
 0x58a   : > { %2630 = vrcp.f32 %v2220_v62  ;;  %v2235_v38 = vand.u32 2147483648, %v2220_v62  ;;  %v2233_v23 = vand.u32 2147483647, %v2220_v62  ;;  %vm2229_vm7 = vweird.f32 %v2220_v62 }
 0x58b   : > { %2632 = vrcp.f32 %v2221_v27  ;;  %v2250_v5 = vand.u32 2147483648, %v2221_v27  ;;  %v2248_v61 = vand.u32 2147483647, %v2221_v27  ;;  %vm2244_vm8 = vweird.f32 %v2221_v27 }
 0x58c   : > { %v2236_v33 = vor.u32 1.1754944e-38, %v2235_v38  ;;  %vm2234_vm11 = vcmp.eq.f32.partialorder %v2233_v23, 8.507059e+37 }
 0x58d   : > { %v2251_v40 = vor.u32 1.1754944e-38, %v2250_v5  ;;  %vm2249_vm12 = vcmp.eq.f32.partialorder %v2248_v61, 8.507059e+37 }
 0x58e   : > { %v2629_v39 = vpop.eup %2628 }
 0x58f   : > { %v2223_v28 = vadd.f32 1.0, %v2629_v39 }
 0x590   : > { %v2631_v10 = vpop.eup %2630 }
 0x591   : > { %v2633_v54 = vpop.eup %2632  ;;  %v2225_v22 = vmul.f32 %v2631_v10, %v2220_v62  ;;  %2634 = vrcp.f32 %v2223_v28  ;;  %vm2230_vm5 = vweird.f32 %v2631_v10  ;;  %v2280_v4 = vand.u32 2147483648, %v2223_v28 }
 0x592   : > { %v2240_v49 = vmul.f32 %v2633_v54, %v2221_v27  ;;  %2636 = vtanh.f32 %v2202_v19  ;;  %vm2245_vm6 = vweird.f32 %v2633_v54  ;;  %vm2231_vm9 = vmor %vm2229_vm7, %vm2230_vm5  ;;  %vm2274_vm14 = vweird.f32 %v2223_v28 }
 0x593   : > { %v2226_v34 = vsub.f32 1.0, %v2225_v22  ;;  %vm2246_vm10 = vmor %vm2244_vm8, %vm2245_vm6  ;;  %v2278_v7 = vand.u32 2147483647, %v2223_v28  ;;  %v2281_v52 = vor.u32 1.1754944e-38, %v2280_v4 }
 0x594   : > { %v2241_v14 = vsub.f32 1.0, %v2240_v49 }
 0x595   : > { %v2227_v29 = vmul.f32 %v2631_v10, %v2226_v34  ;;  %vm2279_vm0 = vcmp.eq.f32.partialorder %v2278_v7, 8.507059e+37 }
 0x596   : > { %v2242_v31 = vmul.f32 %v2633_v54, %v2241_v14 }
 0x597   : > { %v2635_v32 = vpop.eup %2634  ;;  %v2228_v24 = vadd.f32 %v2631_v10, %v2227_v29 }
 0x598   : > { %v2243_v35 = vadd.f32 %v2633_v54, %v2242_v31  ;;  %v2270_v36 = vmul.f32 %v2635_v32, %v2223_v28  ;;  %v2637_v42 = vpop.eup %2636  ;;  %vm2275_vm13 = vweird.f32 %v2635_v32 }
 0x599   : > { %v2232_v41 = vsel %vm2231_vm9, %v2631_v10, %v2228_v24  ;;  %vm2276_vm15 = vmor %vm2274_vm14, %vm2275_vm13 }
 0x59a   : > { %v2237_v43 = vsel %vm2234_vm11, %v2236_v33, %v2232_v41  ;;  %v2247_v45 = vsel %vm2246_vm10, %v2633_v54, %v2243_v35  ;;  %v2271_v46 = vsub.f32 1.0, %v2270_v36 }
 0x59b   : > { %v2252_v47 = vsel %vm2249_vm12, %v2251_v40, %v2247_v45  ;;  %v2289_v48 = vmul.f32 %v2637_v42, %v2237_v43 }
 0x59c   : > { %v2288_v60 = vmul.f32 %v2252_v47, %v3845_v8  ;;  %v2272_v59 = vmul.f32 %v2635_v32, %v2271_v46 }
 0x59e   : > { %v2290_v57 = vadd.f32 %v2289_v48, %v2288_v60  ;;  %v2273_v6 = vadd.f32 %v2635_v32, %v2272_v59 }
 0x5a0   : > { %2638 = vtanh.f32 %v2290_v57  ;;  %2294 = vst [vmem:[#allocation5] sm:$0xff] %v2290_v57  ;;  %v2277_v44 = vsel %vm2276_vm15, %v2635_v32, %v2273_v6 }
 0x5a1   : > { %v2282_v9 = vsel %vm2279_vm0, %v2281_v52, %v2277_v44 }
 0x5a5   : > { %2298 = sbr.rel (%p2465_p8) target bundleno = 1611 (0x64b), region = 68 }
 0x5a6   : > { %v2639_v0 = vpop.eup %2638 }
 0x5a7   : > { %v2292_v58 = vmul.f32 %v2639_v0, %v2282_v9 }
 0x5a9   : > { %2293 = vst [vmem:[#allocation4 + $0x8] sm:$0xff] %v2292_v58 }
 0x5aa   : > { %v2314_v8 = vld [vmem:[#allocation11 + $0x78] sm:$0xff]  ;;  %v2313_v20 = vld [vmem:[#allocation11 + $0x70] sm:$0xff]  ;;  %v2312_v51 = vld [vmem:[#allocation11 + $0x68] sm:$0xff]  ;;  %vm2339_vm1 = vcmask 7168  }
 0x5ab   : > { %2319 = vmatpush.msra.mxu0 %v2314_v8  ;;  %v2311_v2 = vld [vmem:[#allocation11 + $0x60] sm:$0xff]  ;;  %v2310_v3 = vld [vmem:[#allocation11 + $0x58] sm:$0xff]  ;;  %v2309_v11 = vld [vmem:[#allocation11 + $0x50] sm:$0xff] }
 0x5ac   : > { %v2308_v12 = vld [vmem:[#allocation11 + $0x48] sm:$0xff]  ;;  %v2307_v13 = vld [vmem:[#allocation11 + $0x40] sm:$0xff]  ;;  %v2306_v16 = vld [vmem:[#allocation11 + $0x38] sm:$0xff] }
 0x5ad   : > { %2320 = vmatpush.msra.mxu0 %v2313_v20  ;;  %v2305_v17 = vld [vmem:[#allocation11 + $0x30] sm:$0xff]  ;;  %v2304_v18 = vld [vmem:[#allocation11 + $0x28] sm:$0xff]  ;;  %v2303_v50 = vld [vmem:[#allocation11 + $0x20] sm:$0xff] }
 0x5ae   : > { %v2302_v56 = vld [vmem:[#allocation11 + $0x18] sm:$0xff]  ;;  %v2301_v63 = vld [vmem:[#allocation11 + $0x10] sm:$0xff]  ;;  %v2300_v30 = vld [vmem:[#allocation11 + $0x8] sm:$0xff] }
 0x5af   : > { %2321 = vmatpush.msra.mxu0 %v2312_v51  ;;  %v2299_v25 = vld [vmem:[#allocation11] sm:$0xff]  ;;  %v2640_v1 = vld [vmem:[#allocation6] ss:$0 sm:$0xff] }
 0x5b1   : > { %2322 = vmatpush.msra.mxu0 %v2311_v2 }
 0x5b3   : > { %2323 = vmatpush.msra.mxu0 %v2310_v3 }
 0x5b5   : > { %2324 = vmatpush.msra.mxu0 %v2309_v11 }
 0x5b7   : > { %2325 = vmatpush.msra.mxu0 %v2308_v12 }
 0x5b9   : > { %2326 = vmatpush.msra.mxu0 %v2307_v13 }
 0x5bb   : > { %2327 = vmatpush.msra.mxu0 %v2306_v16 }
 0x5bd   : > { %2328 = vmatpush.msra.mxu0 %v2305_v17 }
 0x5bf   : > { %2329 = vmatpush.msra.mxu0 %v2304_v18 }
 0x5c1   : > { %2330 = vmatpush.msra.mxu0 %v2303_v50 }
 0x5c3   : > { %2331 = vmatpush.msra.mxu0 %v2302_v56 }
 0x5c5   : > { %2332 = vmatpush.msra.mxu0 %v2301_v63 }
 0x5c7   : > { %2333 = vmatpush.msra.mxu0 %v2300_v30 }
 0x5c9   : > { %2334 = vmatpush.msra.mxu0 %v2299_v25 }
 0x5ca   : > { %2335 = vmatmul.f32.vlgmr.msra.gmra.mxu0 %v2292_v58 }
 0x647   : > { %v2336_v21 = vpop.f32.mrf.mxu0 }
 0x648   : > { %v2337_v15 = vadd.f32 %v2640_v1, %v2336_v21 }
 0x64a   : > { %2340 = vst.msk [vmem:[%s3871_s7] sm:$0xff] %vm2339_vm1, %v2337_v15 }
 0x64b PF: > { %s21_s26 = sadd.s32 1, %s2745_s26  }
 0x64c   : > { %p18_p9 = scmp.ge.s32.totalorder %s21_s26, 4  }
 0x64e   :  { %20 = sbr.rel (!%p18_p9) target bundleno = 5 (0x5), region = 106 }
 0x653   :  { %2352 = vsyncpa [#allocation8], 1 }
 0x654   :  { %2354 = vsyncpa [#allocation8 + $0x1], 1 }
 0x655   :  { %2355 = vsyncpa [#allocation10], 1 }

</bundles_post_ra>
